<compile_context>
chip_gen: v7x
topology: tpu7x:2x2x1
jax: 0.10.0
libtpu: 0.0.40
codegen_flags: <defaults>
</compile_context>

<pallas_src>
import functools
import math

import jax
import jax.numpy as jnp
from jax.experimental import pallas as pl
from jax.experimental.pallas import tpu as pltpu


_SQRT_2_OVER_PI = 0.7978845608028654


def _gelu_tanh(x):
    # tanh-approximation GELU; tanh lowers to the EUP (idle slot in this region).
    return 0.5 * x * (1.0 + jnp.tanh(_SQRT_2_OVER_PI * (x + 0.044715 * (x * x * x))))


def _layernorm(v, gamma, beta, eps=1e-5):
    # PyTorch nn.LayerNorm semantics: biased variance, eps inside sqrt.
    mu = jnp.mean(v, axis=-1, keepdims=True)
    var = jnp.mean((v - mu) ** 2, axis=-1, keepdims=True)
    return (v - mu) * jax.lax.rsqrt(var + eps) * gamma + beta


def _res_encoder_kernel(xres_ref, xkv_ref,
                        wq_ref, wk_ref, wv_ref, wp_ref,
                        g1_ref, be1_ref, w1_ref, b1_ref, w2_ref, b2_ref,
                        g2_ref, be2_ref,
                        xout_ref, prev_ref,
                        k_cache, v_cache,
                        *, compute_dtype):
    """One grid step = one (batch, query-tile) block.  K/V cached per batch."""
    cd = compute_dtype
    f32 = jnp.float32
    low_precision = cd != jnp.dtype(jnp.float32)

    H, T, S = xkv_ref.shape            # per-batch head-split input block
    TQ = xres_ref.shape[0]
    qi = pl.program_id(1)

    # ---- per-batch K/V projection cache: computed once (qi == 0), persists in VMEM
    #      scratch across the "arbitrary" query-tile axis and is reused by every tile.
    @pl.when(qi == 0)
    def _():
        xkv = xkv_ref[...]                                          # (H, T, S) cd
        wk3 = jnp.broadcast_to(wk_ref[...], (H, S, S))              # replicate in-regs
        wv3 = jnp.broadcast_to(wv_ref[...], (H, S, S))
        k_cache[...] = jnp.einsum('hts,hsd->htd', xkv, wk3,
                                  preferred_element_type=f32).astype(cd)
        v_cache[...] = jnp.einsum('hts,hsd->htd', xkv, wv3,
                                  preferred_element_type=f32).astype(cd)

    # ---- query projection for this tile (1/sqrt(S) pre-folded into wq on the host);
    #      the tile is sliced straight out of the already-resident per-batch block.
    q_start = pl.multiple_of(qi * TQ, TQ)
    xq = xkv_ref[:, pl.ds(q_start, TQ), :]                          # (H, TQ, S) cd
    wq3 = jnp.broadcast_to(wq_ref[...], (H, S, S))
    q = jnp.einsum('hts,hsd->htd', xq, wq3,
                   preferred_element_type=f32).astype(cd)           # (H, TQ, S)

    # ---- residual attention scores; pre-softmax scores are the `prev` output.
    scores = jnp.einsum('hqs,hks->hqk', q, k_cache[...],
                        preferred_element_type=f32)                 # (H, TQ, T) f32
    prev_ref[...] = scores.astype(prev_ref.dtype)

    # ---- softmax over the key axis; normalization applied AFTER att@v (EUP reciprocal,
    #      no (TQ,T)-sized divide).  In the bf16 path exp runs in bf16 and the denominator
    #      is accumulated (f32) from the SAME bf16 values that feed the matmul.
    m = jnp.max(scores, axis=-1, keepdims=True)
    z = scores - m
    e = jnp.exp(z.astype(jnp.bfloat16)) if low_precision else jnp.exp(z)
    denom = jnp.sum(e.astype(f32), axis=-1, keepdims=True)          # (H, TQ, 1) f32
    ctx = jnp.einsum('hqk,hks->hqs', e.astype(cd), v_cache[...],
                     preferred_element_type=f32)                    # (H, TQ, S) f32
    ctx = ctx * pl.reciprocal(denom, approx=low_precision)

    # ---- output projection: per-head (S,E) slabs of proj^T, summed over heads.
    # TODO(synk): fuse the head reduction into the contraction once multi-contracting-dim
    #             dot_general lowering is guaranteed ('hqs,hse->qe').
    rmha_h = jnp.einsum('hqs,hse->hqe', ctx.astype(cd), wp_ref[...],
                        preferred_element_type=f32)                 # (H, TQ, E)
    rmha = jnp.sum(rmha_h, axis=0)                                  # (TQ, E)
    # self.dp (Dropout) -> identity at inference.

    y1 = _layernorm(xres_ref[...] + rmha, g1_ref[...], be1_ref[...])   # (TQ, E) f32

    # ---- feed-forward (f32 stats/activations, MXU operands in compute dtype).
    h1 = jnp.dot(y1.astype(cd), w1_ref[...],
                 preferred_element_type=f32) + b1_ref[...]          # (TQ, 4E)
    g = _gelu_tanh(h1)
    h2 = jnp.dot(g.astype(cd), w2_ref[...],
                 preferred_element_type=f32) + b2_ref[...]          # (TQ, E)
    # ff Dropout -> identity at inference.

    xout_ref[...] = _layernorm(y1 + h2, g2_ref[...], be2_ref[...]).astype(xout_ref.dtype)


def _vmem_capacity_bytes():
    try:
        cap = getattr(pltpu.get_tpu_info(), "vmem_capacity_bytes", None)
        if cap:
            return int(cap)
    except Exception:
        pass
    return None


def _pick_q_tile(T, vmem_budget_bytes):
    if T <= 128:
        return T
    # 256-wide tiles only on >=128 MiB chips (v5e/v6e); keep the 128 cap for 64 MiB v7x.
    max_tile = 256 if vmem_budget_bytes >= 100 * 1024 * 1024 else 128
    for cand in (256, 128, 64, 32, 16, 8):
        if cand <= max_tile and T % cand == 0:
            return cand
    return T


def res_encoder_block(x, params, *, head_cnt, emb_s,
                      compute_dtype=jnp.bfloat16,
                      prev_dtype=jnp.bfloat16,
                      q_tile=None,
                      return_torch_layout=False):
    """Forward pass of ResEncoderBlock (prev=None). Returns (x_out, prev).

    prev is returned in (B, H, T, T) layout (lane-dense, no post-kernel transpose) and
    bfloat16 by default (it is by far the largest HBM writeback); pass
    return_torch_layout=True for PyTorch's (B, T, T, H) / prev_dtype=jnp.float32 for f32.
    """
    B, T, E = x.shape
    S, H = emb_s, head_cnt
    assert E == S * H

    cap = _vmem_capacity_bytes()
    if cap is None:
        vmem_limit = 64 * 1024 * 1024          # conservative: works on every generation
        tq_budget = 64 * 1024 * 1024
    else:
        vmem_limit = int(cap * 0.85)           # ~15% headroom for compiler scratch
        tq_budget = cap

    TQ = q_tile if q_tile is not None else _pick_q_tile(T, tq_budget)
    assert T % TQ == 0
    nq = T // TQ

    f32 = jnp.float32
    cd = jnp.dtype(compute_dtype)
    inv_sqrt_s = 1.0 / math.sqrt(S)

    # ---- host-side weight prep (PyTorch Linear stores (out, in); kernel does x @ W).
    #      Single (S,S) slab per projection (no H-fold broadcast on the host).
    kqv_w = params["kqv_w"].astype(f32)                 # (3S, S): rows = k | q | v
    wk = kqv_w[0 * S:1 * S, :].T.astype(cd)                            # (S, S)
    wq = (kqv_w[1 * S:2 * S, :].T * inv_sqrt_s).astype(cd)             # (S, S), scaled
    wv = kqv_w[2 * S:3 * S, :].T.astype(cd)                            # (S, S)
    wp3 = params["proj_w"].astype(f32).T.reshape(H, S, E).astype(cd)   # (H, S, E)
    w1 = params["ff1_w"].astype(f32).T.astype(cd)       # (E, 4E)
    w2 = params["ff2_w"].astype(f32).T.astype(cd)       # (4E, E)
    b1 = params["ff1_b"].astype(f32).reshape(1, 4 * E)
    b2 = params["ff2_b"].astype(f32).reshape(1, E)
    g1 = params["ln1_w"].astype(f32).reshape(1, E)
    be1 = params["ln1_b"].astype(f32).reshape(1, E)
    g2 = params["ln2_w"].astype(f32).reshape(1, E)
    be2 = params["ln2_b"].astype(f32).reshape(1, E)

    # ---- input views
    x_res = x.astype(f32)                                                    # (B, T, E)
    x_heads = jnp.transpose(x.reshape(B, T, H, S), (0, 2, 1, 3)).astype(cd)  # (B, H, T, S)

    kernel = functools.partial(_res_encoder_kernel, compute_dtype=cd)

    def run(single_buffer_weights):
        def wspec(shape):
            idx = lambda b, qi, n=len(shape): (0,) * n
            if single_buffer_weights:
                # Weights never change across grid steps: single-buffer them.
                return pl.BlockSpec(shape, idx, pipeline_mode=pl.Buffered(1))
            return pl.BlockSpec(shape, idx)

        in_specs = [
            pl.BlockSpec((None, TQ, E), lambda b, qi: (b, qi, 0)),      # x (residual tile)
            pl.BlockSpec((None, H, T, S), lambda b, qi: (b, 0, 0, 0)),  # head-split x (per batch)
            wspec((S, S)),           # wq (1/sqrt(S) folded in)
            wspec((S, S)),           # wk
            wspec((S, S)),           # wv
            wspec((H, S, E)),        # proj^T, head-major
            wspec((1, E)),           # ln1 gamma
            wspec((1, E)),           # ln1 beta
            wspec((E, 4 * E)),       # ff1 weight^T   TODO(synk): 4E-dim tiling for v7x
            wspec((1, 4 * E)),       # ff1 bias
            wspec((4 * E, E)),       # ff2 weight^T
            wspec((1, E)),           # ff2 bias
            wspec((1, E)),           # ln2 gamma
            wspec((1, E)),           # ln2 beta
        ]
        out_specs = (
            pl.BlockSpec((None, TQ, E), lambda b, qi: (b, qi, 0)),
            pl.BlockSpec((None, H, TQ, T), lambda b, qi: (b, 0, qi, 0)),
        )
        return pl.pallas_call(
            kernel,
            out_shape=(jax.ShapeDtypeStruct((B, T, E), f32),
                       jax.ShapeDtypeStruct((B, H, T, T), jnp.dtype(prev_dtype))),
            grid_spec=pltpu.PrefetchScalarGridSpec(
                num_scalar_prefetch=0,
                grid=(B, nq),
                in_specs=in_specs,
                out_specs=out_specs,
                scratch_shapes=[pltpu.VMEM((H, T, S), cd),   # K cache (per batch)
                                pltpu.VMEM((H, T, S), cd)]), # V cache (per batch)
            compiler_params=pltpu.CompilerParams(
                # batch axis parallel (megacore on v7x), query-tile axis arbitrary so the
                # per-batch K/V scratch cache is carried across tiles.
                dimension_semantics=("parallel", "arbitrary"),
                vmem_limit_bytes=vmem_limit),
        )(x_res, x_heads, wq, wk, wv, wp3,
          g1, be1, w1, b1, w2, b2, g2, be2)

    try:
        x_out, prev_bhtt = run(single_buffer_weights=True)
    except Exception:
        # The two configs differ ONLY in the weights' pipeline_mode, so any genuine
        # lowering / shape error re-raises from this retry (nothing is silently swallowed).
        x_out, prev_bhtt = run(single_buffer_weights=False)

    if return_torch_layout:
        prev_bhtt = jnp.transpose(prev_bhtt, (0, 2, 3, 1))   # (B, T, T, H), extra HBM pass
    return x_out, prev_bhtt


def _reference(x, params, head_cnt, emb_s):
    """Pure-JAX reference of the PyTorch forward (prev=None, dropout=identity)."""
    B, T, E = x.shape
    S, H = emb_s, head_cnt
    hp = jax.lax.Precision.HIGHEST
    xh = x.reshape(B, T, H, S)
    kqv = jnp.einsum("bthi,oi->btho", xh, params["kqv_w"], precision=hp)
    k, q, v = kqv[..., :S], kqv[..., S:2 * S], kqv[..., 2 * S:]
    att_score = jnp.einsum("bihk,bjhk->bijh", q, k, precision=hp) / math.sqrt(S)
    att = jax.nn.softmax(att_score, axis=2)
    res = jnp.einsum("btih,bihs->bths", att, v, precision=hp).reshape(B, T, E)
    rmha = jnp.einsum("bte,oe->bto", res, params["proj_w"], precision=hp)

    def ln(vv, g, b):
        mu = jnp.mean(vv, axis=-1, keepdims=True)
        var = jnp.mean((vv - mu) ** 2, axis=-1, keepdims=True)
        return (vv - mu) / jnp.sqrt(var + 1e-5) * g + b

    y1 = ln(x + rmha, params["ln1_w"], params["ln1_b"])
    h1 = jnp.einsum("bte,oe->bto", y1, params["ff1_w"], precision=hp) + params["ff1_b"]
    g = 0.5 * h1 * (1.0 + jax.scipy.special.erf(h1 / math.sqrt(2.0)))
    h2 = jnp.einsum("btf,of->bto", g, params["ff2_w"], precision=hp) + params["ff2_b"]
    y2 = ln(y1 + h2, params["ln2_w"], params["ln2_b"])
    return y2, att_score


if __name__ == "__main__":
    B, T, H, S = 2, 8, 2, 32        # small shapes; emb = H * S = 64
    E = H * S
    key = jax.random.PRNGKey(0)
    ks = jax.random.split(key, 8)
    params = {
        "kqv_w": jax.random.normal(ks[0], (3 * S, S), jnp.float32) / math.sqrt(S),
        "proj_w": jax.random.normal(ks[1], (E, E), jnp.float32) / math.sqrt(E),
        "ln1_w": jnp.ones((E,), jnp.float32),
        "ln1_b": jnp.zeros((E,), jnp.float32),
        "ff1_w": jax.random.normal(ks[2], (4 * E, E), jnp.float32) / math.sqrt(E),
        "ff1_b": jax.random.normal(ks[3], (4 * E,), jnp.float32) * 0.01,
        "ff2_w": jax.random.normal(ks[4], (E, 4 * E), jnp.float32) / math.sqrt(4 * E),
        "ff2_b": jax.random.normal(ks[5], (E,), jnp.float32) * 0.01,
        "ln2_w": jnp.ones((E,), jnp.float32),
        "ln2_b": jnp.zeros((E,), jnp.float32),
    }
    x = jax.random.normal(ks[6], (B, T, E), jnp.float32)

    # Production path: bf16 MXU operands + bf16 prev writeback, f32 statistics inside.
    y_bf16, prev_bf16 = res_encoder_block(x, params, head_cnt=H, emb_s=S)
    # f32 path for a tight numerical check.
    y_f32, prev_f32 = res_encoder_block(x, params, head_cnt=H, emb_s=S,
                                        compute_dtype=jnp.float32,
                                        prev_dtype=jnp.float32)
    jax.block_until_ready((y_bf16, prev_bf16, y_f32, prev_f32))

    y_ref, att_score_ref = _reference(x, params, H, S)          # prev in (B,T,T,H)
    prev_ref_bhtt = jnp.transpose(att_score_ref, (0, 3, 1, 2))  # -> (B,H,T,T)

    assert y_f32.shape == (B, T, E) and prev_f32.shape == (B, H, T, T)
    assert jnp.allclose(prev_f32, prev_ref_bhtt, atol=1e-2, rtol=1e-2)
    assert jnp.allclose(y_f32, y_ref, atol=1e-2, rtol=1e-2)
    assert jnp.allclose(prev_bf16.astype(jnp.float32), prev_ref_bhtt, atol=1e-1, rtol=1e-1)
    assert jnp.allclose(y_bf16, y_ref, atol=1e-1, rtol=1e-1)
    print("KERNEL_OK")
</pallas_src>

<mosaic_0001>
module attributes {stable_mosaic.version = 11 : i64} {
  func.func @_res_encoder_kernel(%arg0: i32, %arg1: i32, %arg2: memref<1x8x64xf32, #tpu.memory_space<vmem>>, %arg3: memref<1x2x8x32xbf16, #tpu.memory_space<vmem>>, %arg4: memref<32x32xbf16, #tpu.memory_space<vmem>>, %arg5: memref<32x32xbf16, #tpu.memory_space<vmem>>, %arg6: memref<32x32xbf16, #tpu.memory_space<vmem>>, %arg7: memref<2x32x64xbf16, #tpu.memory_space<vmem>>, %arg8: memref<1x64xf32, #tpu.memory_space<vmem>>, %arg9: memref<1x64xf32, #tpu.memory_space<vmem>>, %arg10: memref<64x256xbf16, #tpu.memory_space<vmem>>, %arg11: memref<1x256xf32, #tpu.memory_space<vmem>>, %arg12: memref<256x64xbf16, #tpu.memory_space<vmem>>, %arg13: memref<1x64xf32, #tpu.memory_space<vmem>>, %arg14: memref<1x64xf32, #tpu.memory_space<vmem>>, %arg15: memref<1x64xf32, #tpu.memory_space<vmem>>, %arg16: memref<1x8x64xf32, #tpu.memory_space<vmem>>, %arg17: memref<1x2x8x8xbf16, #tpu.memory_space<vmem>>, %arg18: memref<2x8x32xbf16, #tpu.memory_space<vmem>>, %arg19: memref<2x8x32xbf16, #tpu.memory_space<vmem>>) attributes {dimension_semantics = [#tpu.dimension_semantics<parallel>, #tpu.dimension_semantics<arbitrary>], iteration_bounds = array<i64: 2, 1>, scalar_prefetch = 0 : i64, scratch_operands = 2 : i64, tpu.core_type = #tpu.core_type<tc>, window_params = [{transform_indices = @transform_0, window_bounds = array<i64: 1, 8, 64>}, {transform_indices = @transform_1, window_bounds = array<i64: 1, 2, 8, 32>}, {pipeline_mode = #tpu.pipeline_mode<synchronous>, transform_indices = @transform_2, window_bounds = array<i64: 32, 32>}, {pipeline_mode = #tpu.pipeline_mode<synchronous>, transform_indices = @transform_3, window_bounds = array<i64: 32, 32>}, {pipeline_mode = #tpu.pipeline_mode<synchronous>, transform_indices = @transform_4, window_bounds = array<i64: 32, 32>}, {pipeline_mode = #tpu.pipeline_mode<synchronous>, transform_indices = @transform_5, window_bounds = array<i64: 2, 32, 64>}, {pipeline_mode = #tpu.pipeline_mode<synchronous>, transform_indices = @transform_6, window_bounds = array<i64: 1, 64>}, {pipeline_mode = #tpu.pipeline_mode<synchronous>, transform_indices = @transform_7, window_bounds = array<i64: 1, 64>}, {pipeline_mode = #tpu.pipeline_mode<synchronous>, transform_indices = @transform_8, window_bounds = array<i64: 64, 256>}, {pipeline_mode = #tpu.pipeline_mode<synchronous>, transform_indices = @transform_9, window_bounds = array<i64: 1, 256>}, {pipeline_mode = #tpu.pipeline_mode<synchronous>, transform_indices = @transform_10, window_bounds = array<i64: 256, 64>}, {pipeline_mode = #tpu.pipeline_mode<synchronous>, transform_indices = @transform_11, window_bounds = array<i64: 1, 64>}, {pipeline_mode = #tpu.pipeline_mode<synchronous>, transform_indices = @transform_12, window_bounds = array<i64: 1, 64>}, {pipeline_mode = #tpu.pipeline_mode<synchronous>, transform_indices = @transform_13, window_bounds = array<i64: 1, 64>}, {transform_indices = @transform_14, window_bounds = array<i64: 1, 8, 64>}, {transform_indices = @transform_15, window_bounds = array<i64: 1, 2, 8, 8>}]} {
    %c0_i32 = arith.constant 0 : i32
    %0 = arith.cmpi eq, %arg1, %c0_i32 : i32
    %1 = arith.extui %0 : i1 to i32
    %c0_i32_0 = arith.constant 0 : i32
    %2 = arith.cmpi ne, %1, %c0_i32_0 : i32
    scf.if %2 {
      %c0_62 = arith.constant 0 : index
      %c0_63 = arith.constant 0 : index
      %c0_64 = arith.constant 0 : index
      %c0_65 = arith.constant 0 : index
      %117 = vector.load %arg3[%c0_62, %c0_63, %c0_64, %c0_65] : memref<1x2x8x32xbf16, #tpu.memory_space<vmem>>, vector<1x2x8x32xbf16>
      %118 = vector.shape_cast %117 : vector<1x2x8x32xbf16> to vector<2x8x32xbf16>
      %c0_66 = arith.constant 0 : index
      %c0_67 = arith.constant 0 : index
      %119 = vector.load %arg5[%c0_66, %c0_67] : memref<32x32xbf16, #tpu.memory_space<vmem>>, vector<32x32xbf16>
      %120 = vector.shape_cast %119 : vector<32x32xbf16> to vector<1x32x32xbf16>
      %121 = vector.broadcast %120 : vector<1x32x32xbf16> to vector<2x32x32xbf16>
      %c0_68 = arith.constant 0 : index
      %c0_69 = arith.constant 0 : index
      %122 = vector.load %arg6[%c0_68, %c0_69] : memref<32x32xbf16, #tpu.memory_space<vmem>>, vector<32x32xbf16>
      %123 = vector.shape_cast %122 : vector<32x32xbf16> to vector<1x32x32xbf16>
      %124 = vector.broadcast %123 : vector<1x32x32xbf16> to vector<2x32x32xbf16>
      "tpu.trace_start"() <{level = 10 : i32, message = "hts,hsd->htd"}> : () -> ()
      %cst_70 = arith.constant dense<0.000000e+00> : vector<2x8x32xf32>
      %125 = tpu.matmul %118, %121, %cst_70 {dimension_numbers = #tpu.dot_dimension_numbers<[2], [1], [1], [2], [0, 0, 0, 1, 1, 2], [0], [0]>} : vector<2x8x32xbf16>, vector<2x32x32xbf16>, vector<2x8x32xf32> -> vector<2x8x32xf32>
      "tpu.trace_stop"() : () -> ()
      %126 = arith.truncf %125 : vector<2x8x32xf32> to vector<2x8x32xbf16>
      %c0_71 = arith.constant 0 : index
      %c0_72 = arith.constant 0 : index
      %c0_73 = arith.constant 0 : index
      %127 = vector.load %arg18[%c0_71, %c0_72, %c0_73] : memref<2x8x32xbf16, #tpu.memory_space<vmem>>, vector<2x8x32xbf16>
      tpu.vector_store %arg18[%c0_71, %c0_72, %c0_73], %126 {strides = array<i32>} : memref<2x8x32xbf16, #tpu.memory_space<vmem>>, vector<2x8x32xbf16>,
      "tpu.trace_start"() <{level = 10 : i32, message = "hts,hsd->htd"}> : () -> ()
      %cst_74 = arith.constant dense<0.000000e+00> : vector<2x8x32xf32>
      %128 = tpu.matmul %118, %124, %cst_74 {dimension_numbers = #tpu.dot_dimension_numbers<[2], [1], [1], [2], [0, 0, 0, 1, 1, 2], [0], [0]>} : vector<2x8x32xbf16>, vector<2x32x32xbf16>, vector<2x8x32xf32> -> vector<2x8x32xf32>
      "tpu.trace_stop"() : () -> ()
      %129 = arith.truncf %128 : vector<2x8x32xf32> to vector<2x8x32xbf16>
      %c0_75 = arith.constant 0 : index
      %c0_76 = arith.constant 0 : index
      %c0_77 = arith.constant 0 : index
      %130 = vector.load %arg19[%c0_75, %c0_76, %c0_77] : memref<2x8x32xbf16, #tpu.memory_space<vmem>>, vector<2x8x32xbf16>
      tpu.vector_store %arg19[%c0_75, %c0_76, %c0_77], %129 {strides = array<i32>} : memref<2x8x32xbf16, #tpu.memory_space<vmem>>, vector<2x8x32xbf16>,
    } else {
    }
    %c8_i32 = arith.constant 8 : i32
    %3 = arith.muli %arg1, %c8_i32 : i32
    %4 = tpu.assume_multiple %3, 8 : i32
    %c0 = arith.constant 0 : index
    %c0_1 = arith.constant 0 : index
    %5 = arith.index_cast %4 : i32 to index
    %c0_2 = arith.constant 0 : index
    %6 = vector.load %arg3[%c0, %c0_1, %5, %c0_2] : memref<1x2x8x32xbf16, #tpu.memory_space<vmem>>, vector<1x2x8x32xbf16>
    %7 = vector.shape_cast %6 : vector<1x2x8x32xbf16> to vector<2x8x32xbf16>
    %c0_3 = arith.constant 0 : index
    %c0_4 = arith.constant 0 : index
    %8 = vector.load %arg4[%c0_3, %c0_4] : memref<32x32xbf16, #tpu.memory_space<vmem>>, vector<32x32xbf16>
    %9 = vector.shape_cast %8 : vector<32x32xbf16> to vector<1x32x32xbf16>
    %10 = vector.broadcast %9 : vector<1x32x32xbf16> to vector<2x32x32xbf16>
    "tpu.trace_start"() <{level = 10 : i32, message = "hts,hsd->htd"}> : () -> ()
    %cst = arith.constant dense<0.000000e+00> : vector<2x8x32xf32>
    %11 = tpu.matmul %7, %10, %cst {dimension_numbers = #tpu.dot_dimension_numbers<[2], [1], [1], [2], [0, 0, 0, 1, 1, 2], [0], [0]>} : vector<2x8x32xbf16>, vector<2x32x32xbf16>, vector<2x8x32xf32> -> vector<2x8x32xf32>
    "tpu.trace_stop"() : () -> ()
    %12 = arith.truncf %11 : vector<2x8x32xf32> to vector<2x8x32xbf16>
    %c0_5 = arith.constant 0 : index
    %c0_6 = arith.constant 0 : index
    %c0_7 = arith.constant 0 : index
    %13 = vector.load %arg18[%c0_5, %c0_6, %c0_7] : memref<2x8x32xbf16, #tpu.memory_space<vmem>>, vector<2x8x32xbf16>
    "tpu.trace_start"() <{level = 10 : i32, message = "hqs,hks->hqk"}> : () -> ()
    %cst_8 = arith.constant dense<0.000000e+00> : vector<2x8x8xf32>
    %14 = tpu.matmul %12, %13, %cst_8 {dimension_numbers = #tpu.dot_dimension_numbers<[2], [2], [1], [1], [0, 0, 0, 1, 1, 1], [0], [0]>} : vector<2x8x32xbf16>, vector<2x8x32xbf16>, vector<2x8x8xf32> -> vector<2x8x8xf32>
    "tpu.trace_stop"() : () -> ()
    %15 = arith.truncf %14 : vector<2x8x8xf32> to vector<2x8x8xbf16>
    %c0_9 = arith.constant 0 : index
    %c0_10 = arith.constant 0 : index
    %c0_11 = arith.constant 0 : index
    %c0_12 = arith.constant 0 : index
    %16 = vector.load %arg17[%c0_9, %c0_10, %c0_11, %c0_12] : memref<1x2x8x8xbf16, #tpu.memory_space<vmem>>, vector<1x2x8x8xbf16>
    %17 = vector.shape_cast %16 : vector<1x2x8x8xbf16> to vector<2x8x8xbf16>
    %18 = vector.shape_cast %15 : vector<2x8x8xbf16> to vector<1x2x8x8xbf16>
    tpu.vector_store %arg17[%c0_9, %c0_10, %c0_11, %c0_12], %18 {strides = array<i32>} : memref<1x2x8x8xbf16, #tpu.memory_space<vmem>>, vector<1x2x8x8xbf16>,
    %cst_13 = arith.constant dense<0xFF800000> : vector<2x8xf32>
    %19 = vector.multi_reduction <maximumf>, %14, %cst_13 [2] : vector<2x8x8xf32> to vector<2x8xf32>
    %20 = vector.shape_cast %19 : vector<2x8xf32> to vector<2x8x1xf32>
    %21 = vector.broadcast %20 : vector<2x8x1xf32> to vector<2x8x8xf32>
    %22 = arith.subf %14, %21 : vector<2x8x8xf32>
    %23 = arith.truncf %22 : vector<2x8x8xf32> to vector<2x8x8xbf16>
    %24 = math.exp %23 : vector<2x8x8xbf16>
    %25 = arith.extf %24 : vector<2x8x8xbf16> to vector<2x8x8xf32>
    %cst_14 = arith.constant dense<0.000000e+00> : vector<2x8xf32>
    %26 = vector.multi_reduction <add>, %25, %cst_14 [2] : vector<2x8x8xf32> to vector<2x8xf32>
    %27 = vector.shape_cast %26 : vector<2x8xf32> to vector<2x8x1xf32>
    %c0_15 = arith.constant 0 : index
    %c0_16 = arith.constant 0 : index
    %c0_17 = arith.constant 0 : index
    %28 = vector.load %arg19[%c0_15, %c0_16, %c0_17] : memref<2x8x32xbf16, #tpu.memory_space<vmem>>, vector<2x8x32xbf16>
    "tpu.trace_start"() <{level = 10 : i32, message = "hqk,hks->hqs"}> : () -> ()
    %cst_18 = arith.constant dense<0.000000e+00> : vector<2x8x32xf32>
    %29 = tpu.matmul %24, %28, %cst_18 {dimension_numbers = #tpu.dot_dimension_numbers<[2], [1], [1], [2], [0, 0, 0, 1, 1, 2], [0], [0]>} : vector<2x8x8xbf16>, vector<2x8x32xbf16>, vector<2x8x32xf32> -> vector<2x8x32xf32>
    "tpu.trace_stop"() : () -> ()
    %30 = tpu.reciprocal %27 {approx = true} : vector<2x8x1xf32> -> vector<2x8x1xf32>
    %31 = vector.broadcast %30 : vector<2x8x1xf32> to vector<2x8x32xf32>
    %32 = arith.mulf %29, %31 : vector<2x8x32xf32>
    %33 = arith.truncf %32 : vector<2x8x32xf32> to vector<2x8x32xbf16>
    %c0_19 = arith.constant 0 : index
    %c0_20 = arith.constant 0 : index
    %c0_21 = arith.constant 0 : index
    %34 = vector.load %arg7[%c0_19, %c0_20, %c0_21] : memref<2x32x64xbf16, #tpu.memory_space<vmem>>, vector<2x32x64xbf16>
    "tpu.trace_start"() <{level = 10 : i32, message = "hqs,hse->hqe"}> : () -> ()
    %cst_22 = arith.constant dense<0.000000e+00> : vector<2x8x64xf32>
    %35 = tpu.matmul %33, %34, %cst_22 {dimension_numbers = #tpu.dot_dimension_numbers<[2], [1], [1], [2], [0, 0, 0, 1, 1, 2], [0], [0]>} : vector<2x8x32xbf16>, vector<2x32x64xbf16>, vector<2x8x64xf32> -> vector<2x8x64xf32>
    "tpu.trace_stop"() : () -> ()
    %cst_23 = arith.constant dense<0.000000e+00> : vector<8x64xf32>
    %36 = vector.multi_reduction <add>, %35, %cst_23 [0] : vector<2x8x64xf32> to vector<8x64xf32>
    %c0_24 = arith.constant 0 : index
    %c0_25 = arith.constant 0 : index
    %c0_26 = arith.constant 0 : index
    %37 = vector.load %arg2[%c0_24, %c0_25, %c0_26] : memref<1x8x64xf32, #tpu.memory_space<vmem>>, vector<1x8x64xf32>
    %38 = vector.shape_cast %37 : vector<1x8x64xf32> to vector<8x64xf32>
    %39 = arith.addf %38, %36 : vector<8x64xf32>
    %c0_27 = arith.constant 0 : index
    %c0_28 = arith.constant 0 : index
    %40 = vector.load %arg8[%c0_27, %c0_28] : memref<1x64xf32, #tpu.memory_space<vmem>>, vector<1x64xf32>
    %c0_29 = arith.constant 0 : index
    %c0_30 = arith.constant 0 : index
    %41 = vector.load %arg9[%c0_29, %c0_30] : memref<1x64xf32, #tpu.memory_space<vmem>>, vector<1x64xf32>
    %cst_31 = arith.constant dense<0.000000e+00> : vector<8xf32>
    %42 = vector.multi_reduction <add>, %39, %cst_31 [1] : vector<8x64xf32> to vector<8xf32>
    %43 = vector.shape_cast %42 : vector<8xf32> to vector<8x1xf32>
    %cst_32 = arith.constant 6.400000e+01 : f32
    %44 = vector.broadcast %cst_32 : f32 to vector<8x1xf32>
    %45 = arith.divf %43, %44 : vector<8x1xf32>
    %46 = vector.broadcast %45 : vector<8x1xf32> to vector<8x64xf32>
    %47 = arith.subf %39, %46 : vector<8x64xf32>
    %48 = arith.mulf %47, %47 : vector<8x64xf32>
    %cst_33 = arith.constant dense<0.000000e+00> : vector<8xf32>
    %49 = vector.multi_reduction <add>, %48, %cst_33 [1] : vector<8x64xf32> to vector<8xf32>
    %50 = vector.shape_cast %49 : vector<8xf32> to vector<8x1xf32>
    %cst_34 = arith.constant 6.400000e+01 : f32
    %51 = vector.broadcast %cst_34 : f32 to vector<8x1xf32>
    %52 = arith.divf %50, %51 : vector<8x1xf32>
    %53 = vector.broadcast %45 : vector<8x1xf32> to vector<8x64xf32>
    %54 = arith.subf %39, %53 : vector<8x64xf32>
    %cst_35 = arith.constant 9.99999974E-6 : f32
    %55 = vector.broadcast %cst_35 : f32 to vector<8x1xf32>
    %56 = arith.addf %52, %55 : vector<8x1xf32>
    %57 = math.rsqrt %56 : vector<8x1xf32>
    %58 = vector.broadcast %57 : vector<8x1xf32> to vector<8x64xf32>
    %59 = arith.mulf %54, %58 : vector<8x64xf32>
    %60 = vector.broadcast %40 : vector<1x64xf32> to vector<8x64xf32>
    %61 = arith.mulf %59, %60 : vector<8x64xf32>
    %62 = vector.broadcast %41 : vector<1x64xf32> to vector<8x64xf32>
    %63 = arith.addf %61, %62 : vector<8x64xf32>
    %64 = arith.truncf %63 : vector<8x64xf32> to vector<8x64xbf16>
    %c0_36 = arith.constant 0 : index
    %c0_37 = arith.constant 0 : index
    %65 = vector.load %arg10[%c0_36, %c0_37] : memref<64x256xbf16, #tpu.memory_space<vmem>>, vector<64x256xbf16>
    %cst_38 = arith.constant dense<0.000000e+00> : vector<8x256xf32>
    %66 = tpu.matmul %64, %65, %cst_38 {dimension_numbers = #tpu.dot_dimension_numbers<[1], [0], [0], [1], [0, 0, 1, 1], [], []>} : vector<8x64xbf16>, vector<64x256xbf16>, vector<8x256xf32> -> vector<8x256xf32>
    %c0_39 = arith.constant 0 : index
    %c0_40 = arith.constant 0 : index
    %67 = vector.load %arg11[%c0_39, %c0_40] : memref<1x256xf32, #tpu.memory_space<vmem>>, vector<1x256xf32>
    %68 = vector.broadcast %67 : vector<1x256xf32> to vector<8x256xf32>
    %69 = arith.addf %66, %68 : vector<8x256xf32>
    %cst_41 = arith.constant 5.000000e-01 : f32
    %70 = vector.broadcast %cst_41 : f32 to vector<8x256xf32>
    %71 = arith.mulf %70, %69 : vector<8x256xf32>
    %72 = arith.mulf %69, %69 : vector<8x256xf32>
    %73 = arith.mulf %72, %69 : vector<8x256xf32>
    %cst_42 = arith.constant 4.471500e-02 : f32
    %74 = vector.broadcast %cst_42 : f32 to vector<8x256xf32>
    %75 = arith.mulf %74, %73 : vector<8x256xf32>
    %76 = arith.addf %69, %75 : vector<8x256xf32>
    %cst_43 = arith.constant 0.797884583 : f32
    %77 = vector.broadcast %cst_43 : f32 to vector<8x256xf32>
    %78 = arith.mulf %77, %76 : vector<8x256xf32>
    %79 = math.tanh %78 : vector<8x256xf32>
    %cst_44 = arith.constant 1.000000e+00 : f32
    %80 = vector.broadcast %cst_44 : f32 to vector<8x256xf32>
    %81 = arith.addf %80, %79 : vector<8x256xf32>
    %82 = arith.mulf %71, %81 : vector<8x256xf32>
    %83 = arith.truncf %82 : vector<8x256xf32> to vector<8x256xbf16>
    %c0_45 = arith.constant 0 : index
    %c0_46 = arith.constant 0 : index
    %84 = vector.load %arg12[%c0_45, %c0_46] : memref<256x64xbf16, #tpu.memory_space<vmem>>, vector<256x64xbf16>
    %cst_47 = arith.constant dense<0.000000e+00> : vector<8x64xf32>
    %85 = tpu.matmul %83, %84, %cst_47 {dimension_numbers = #tpu.dot_dimension_numbers<[1], [0], [0], [1], [0, 0, 1, 1], [], []>} : vector<8x256xbf16>, vector<256x64xbf16>, vector<8x64xf32> -> vector<8x64xf32>
    %c0_48 = arith.constant 0 : index
    %c0_49 = arith.constant 0 : index
    %86 = vector.load %arg13[%c0_48, %c0_49] : memref<1x64xf32, #tpu.memory_space<vmem>>, vector<1x64xf32>
    %87 = vector.broadcast %86 : vector<1x64xf32> to vector<8x64xf32>
    %88 = arith.addf %85, %87 : vector<8x64xf32>
    %89 = arith.addf %63, %88 : vector<8x64xf32>
    %c0_50 = arith.constant 0 : index
    %c0_51 = arith.constant 0 : index
    %90 = vector.load %arg14[%c0_50, %c0_51] : memref<1x64xf32, #tpu.memory_space<vmem>>, vector<1x64xf32>
    %c0_52 = arith.constant 0 : index
    %c0_53 = arith.constant 0 : index
    %91 = vector.load %arg15[%c0_52, %c0_53] : memref<1x64xf32, #tpu.memory_space<vmem>>, vector<1x64xf32>
    %cst_54 = arith.constant dense<0.000000e+00> : vector<8xf32>
    %92 = vector.multi_reduction <add>, %89, %cst_54 [1] : vector<8x64xf32> to vector<8xf32>
    %93 = vector.shape_cast %92 : vector<8xf32> to vector<8x1xf32>
    %cst_55 = arith.constant 6.400000e+01 : f32
    %94 = vector.broadcast %cst_55 : f32 to vector<8x1xf32>
    %95 = arith.divf %93, %94 : vector<8x1xf32>
    %96 = vector.broadcast %95 : vector<8x1xf32> to vector<8x64xf32>
    %97 = arith.subf %89, %96 : vector<8x64xf32>
    %98 = arith.mulf %97, %97 : vector<8x64xf32>
    %cst_56 = arith.constant dense<0.000000e+00> : vector<8xf32>
    %99 = vector.multi_reduction <add>, %98, %cst_56 [1] : vector<8x64xf32> to vector<8xf32>
    %100 = vector.shape_cast %99 : vector<8xf32> to vector<8x1xf32>
    %cst_57 = arith.constant 6.400000e+01 : f32
    %101 = vector.broadcast %cst_57 : f32 to vector<8x1xf32>
    %102 = arith.divf %100, %101 : vector<8x1xf32>
    %103 = vector.broadcast %95 : vector<8x1xf32> to vector<8x64xf32>
    %104 = arith.subf %89, %103 : vector<8x64xf32>
    %cst_58 = arith.constant 9.99999974E-6 : f32
    %105 = vector.broadcast %cst_58 : f32 to vector<8x1xf32>
    %106 = arith.addf %102, %105 : vector<8x1xf32>
    %107 = math.rsqrt %106 : vector<8x1xf32>
    %108 = vector.broadcast %107 : vector<8x1xf32> to vector<8x64xf32>
    %109 = arith.mulf %104, %108 : vector<8x64xf32>
    %110 = vector.broadcast %90 : vector<1x64xf32> to vector<8x64xf32>
    %111 = arith.mulf %109, %110 : vector<8x64xf32>
    %112 = vector.broadcast %91 : vector<1x64xf32> to vector<8x64xf32>
    %113 = arith.addf %111, %112 : vector<8x64xf32>
    %c0_59 = arith.constant 0 : index
    %c0_60 = arith.constant 0 : index
    %c0_61 = arith.constant 0 : index
    %114 = vector.load %arg16[%c0_59, %c0_60, %c0_61] : memref<1x8x64xf32, #tpu.memory_space<vmem>>, vector<1x8x64xf32>
    %115 = vector.shape_cast %114 : vector<1x8x64xf32> to vector<8x64xf32>
    %116 = vector.shape_cast %113 : vector<8x64xf32> to vector<1x8x64xf32>
    tpu.vector_store %arg16[%c0_59, %c0_60, %c0_61], %116 {strides = array<i32>} : memref<1x8x64xf32, #tpu.memory_space<vmem>>, vector<1x8x64xf32>,
    return
  }
  func.func @transform_0(%arg0: i32, %arg1: i32) -> (i32, i32, i32) {
    %c0_i32 = arith.constant 0 : i32
    %c0_i32_0 = arith.constant 0 : i32
    return %arg0, %arg1, %c0_i32 : i32, i32, i32
  }
  func.func @transform_1(%arg0: i32, %arg1: i32) -> (i32, i32, i32, i32) {
    %c0_i32 = arith.constant 0 : i32
    %c0_i32_0 = arith.constant 0 : i32
    %c0_i32_1 = arith.constant 0 : i32
    %c0_i32_2 = arith.constant 0 : i32
    return %arg0, %c0_i32, %c0_i32_0, %c0_i32_1 : i32, i32, i32, i32
  }
  func.func @transform_2(%arg0: i32, %arg1: i32) -> (i32, i32) {
    %c0_i32 = arith.constant 0 : i32
    %c0_i32_0 = arith.constant 0 : i32
    %c0_i32_1 = arith.constant 0 : i32
    return %c0_i32, %c0_i32_0 : i32, i32
  }
  func.func @transform_3(%arg0: i32, %arg1: i32) -> (i32, i32) {
    %c0_i32 = arith.constant 0 : i32
    %c0_i32_0 = arith.constant 0 : i32
    %c0_i32_1 = arith.constant 0 : i32
    return %c0_i32, %c0_i32_0 : i32, i32
  }
  func.func @transform_4(%arg0: i32, %arg1: i32) -> (i32, i32) {
    %c0_i32 = arith.constant 0 : i32
    %c0_i32_0 = arith.constant 0 : i32
    %c0_i32_1 = arith.constant 0 : i32
    return %c0_i32, %c0_i32_0 : i32, i32
  }
  func.func @transform_5(%arg0: i32, %arg1: i32) -> (i32, i32, i32) {
    %c0_i32 = arith.constant 0 : i32
    %c0_i32_0 = arith.constant 0 : i32
    %c0_i32_1 = arith.constant 0 : i32
    %c0_i32_2 = arith.constant 0 : i32
    return %c0_i32, %c0_i32_0, %c0_i32_1 : i32, i32, i32
  }
  func.func @transform_6(%arg0: i32, %arg1: i32) -> (i32, i32) {
    %c0_i32 = arith.constant 0 : i32
    %c0_i32_0 = arith.constant 0 : i32
    %c0_i32_1 = arith.constant 0 : i32
    return %c0_i32, %c0_i32_0 : i32, i32
  }
  func.func @transform_7(%arg0: i32, %arg1: i32) -> (i32, i32) {
    %c0_i32 = arith.constant 0 : i32
    %c0_i32_0 = arith.constant 0 : i32
    %c0_i32_1 = arith.constant 0 : i32
    return %c0_i32, %c0_i32_0 : i32, i32
  }
  func.func @transform_8(%arg0: i32, %arg1: i32) -> (i32, i32) {
    %c0_i32 = arith.constant 0 : i32
    %c0_i32_0 = arith.constant 0 : i32
    %c0_i32_1 = arith.constant 0 : i32
    return %c0_i32, %c0_i32_0 : i32, i32
  }
  func.func @transform_9(%arg0: i32, %arg1: i32) -> (i32, i32) {
    %c0_i32 = arith.constant 0 : i32
    %c0_i32_0 = arith.constant 0 : i32
    %c0_i32_1 = arith.constant 0 : i32
    return %c0_i32, %c0_i32_0 : i32, i32
  }
  func.func @transform_10(%arg0: i32, %arg1: i32) -> (i32, i32) {
    %c0_i32 = arith.constant 0 : i32
    %c0_i32_0 = arith.constant 0 : i32
    %c0_i32_1 = arith.constant 0 : i32
    return %c0_i32, %c0_i32_0 : i32, i32
  }
  func.func @transform_11(%arg0: i32, %arg1: i32) -> (i32, i32) {
    %c0_i32 = arith.constant 0 : i32
    %c0_i32_0 = arith.constant 0 : i32
    %c0_i32_1 = arith.constant 0 : i32
    return %c0_i32, %c0_i32_0 : i32, i32
  }
  func.func @transform_12(%arg0: i32, %arg1: i32) -> (i32, i32) {
    %c0_i32 = arith.constant 0 : i32
    %c0_i32_0 = arith.constant 0 : i32
    %c0_i32_1 = arith.constant 0 : i32
    return %c0_i32, %c0_i32_0 : i32, i32
  }
  func.func @transform_13(%arg0: i32, %arg1: i32) -> (i32, i32) {
    %c0_i32 = arith.constant 0 : i32
    %c0_i32_0 = arith.constant 0 : i32
    %c0_i32_1 = arith.constant 0 : i32
    return %c0_i32, %c0_i32_0 : i32, i32
  }
  func.func @transform_14(%arg0: i32, %arg1: i32) -> (i32, i32, i32) {
    %c0_i32 = arith.constant 0 : i32
    %c0_i32_0 = arith.constant 0 : i32
    return %arg0, %arg1, %c0_i32 : i32, i32, i32
  }
  func.func @transform_15(%arg0: i32, %arg1: i32) -> (i32, i32, i32, i32) {
    %c0_i32 = arith.constant 0 : i32
    %c0_i32_0 = arith.constant 0 : i32
    %c0_i32_1 = arith.constant 0 : i32
    return %arg0, %c0_i32, %arg1, %c0_i32_0 : i32, i32, i32, i32
  }
}

module attributes {stable_mosaic.version = 11 : i64} {
  func.func @_res_encoder_kernel(%arg0: i32, %arg1: i32, %arg2: memref<1x8x64xf32, #tpu.memory_space<vmem>>, %arg3: memref<1x2x8x32xbf16, #tpu.memory_space<vmem>>, %arg4: memref<32x32xbf16, #tpu.memory_space<vmem>>, %arg5: memref<32x32xbf16, #tpu.memory_space<vmem>>, %arg6: memref<32x32xbf16, #tpu.memory_space<vmem>>, %arg7: memref<2x32x64xbf16, #tpu.memory_space<vmem>>, %arg8: memref<1x64xf32, #tpu.memory_space<vmem>>, %arg9: memref<1x64xf32, #tpu.memory_space<vmem>>, %arg10: memref<64x256xbf16, #tpu.memory_space<vmem>>, %arg11: memref<1x256xf32, #tpu.memory_space<vmem>>, %arg12: memref<256x64xbf16, #tpu.memory_space<vmem>>, %arg13: memref<1x64xf32, #tpu.memory_space<vmem>>, %arg14: memref<1x64xf32, #tpu.memory_space<vmem>>, %arg15: memref<1x64xf32, #tpu.memory_space<vmem>>, %arg16: memref<1x8x64xf32, #tpu.memory_space<vmem>>, %arg17: memref<1x2x8x8xbf16, #tpu.memory_space<vmem>>, %arg18: memref<2x8x32xbf16, #tpu.memory_space<vmem>>, %arg19: memref<2x8x32xbf16, #tpu.memory_space<vmem>>) attributes {dimension_semantics = [#tpu.dimension_semantics<parallel>, #tpu.dimension_semantics<arbitrary>], iteration_bounds = array<i64: 2, 1>, scalar_prefetch = 0 : i64, scratch_operands = 2 : i64, tpu.core_type = #tpu.core_type<tc>, window_params = [{transform_indices = @transform_0, window_bounds = array<i64: 1, 8, 64>}, {transform_indices = @transform_1, window_bounds = array<i64: 1, 2, 8, 32>}, {pipeline_mode = #tpu.pipeline_mode<synchronous>, transform_indices = @transform_2, window_bounds = array<i64: 32, 32>}, {pipeline_mode = #tpu.pipeline_mode<synchronous>, transform_indices = @transform_3, window_bounds = array<i64: 32, 32>}, {pipeline_mode = #tpu.pipeline_mode<synchronous>, transform_indices = @transform_4, window_bounds = array<i64: 32, 32>}, {pipeline_mode = #tpu.pipeline_mode<synchronous>, transform_indices = @transform_5, window_bounds = array<i64: 2, 32, 64>}, {pipeline_mode = #tpu.pipeline_mode<synchronous>, transform_indices = @transform_6, window_bounds = array<i64: 1, 64>}, {pipeline_mode = #tpu.pipeline_mode<synchronous>, transform_indices = @transform_7, window_bounds = array<i64: 1, 64>}, {pipeline_mode = #tpu.pipeline_mode<synchronous>, transform_indices = @transform_8, window_bounds = array<i64: 64, 256>}, {pipeline_mode = #tpu.pipeline_mode<synchronous>, transform_indices = @transform_9, window_bounds = array<i64: 1, 256>}, {pipeline_mode = #tpu.pipeline_mode<synchronous>, transform_indices = @transform_10, window_bounds = array<i64: 256, 64>}, {pipeline_mode = #tpu.pipeline_mode<synchronous>, transform_indices = @transform_11, window_bounds = array<i64: 1, 64>}, {pipeline_mode = #tpu.pipeline_mode<synchronous>, transform_indices = @transform_12, window_bounds = array<i64: 1, 64>}, {pipeline_mode = #tpu.pipeline_mode<synchronous>, transform_indices = @transform_13, window_bounds = array<i64: 1, 64>}, {transform_indices = @transform_14, window_bounds = array<i64: 1, 8, 64>}, {transform_indices = @transform_15, window_bounds = array<i64: 1, 2, 8, 8>}]} {
    %c0_i32 = arith.constant 0 : i32
    %0 = arith.cmpi eq, %arg1, %c0_i32 : i32
    %1 = arith.extui %0 : i1 to i32
    %c0_i32_0 = arith.constant 0 : i32
    %2 = arith.cmpi ne, %1, %c0_i32_0 : i32
    scf.if %2 {
      %c0_62 = arith.constant 0 : index
      %c0_63 = arith.constant 0 : index
      %c0_64 = arith.constant 0 : index
      %c0_65 = arith.constant 0 : index
      %117 = vector.load %arg3[%c0_62, %c0_63, %c0_64, %c0_65] : memref<1x2x8x32xbf16, #tpu.memory_space<vmem>>, vector<1x2x8x32xbf16>
      %118 = vector.shape_cast %117 : vector<1x2x8x32xbf16> to vector<2x8x32xbf16>
      %c0_66 = arith.constant 0 : index
      %c0_67 = arith.constant 0 : index
      %119 = vector.load %arg5[%c0_66, %c0_67] : memref<32x32xbf16, #tpu.memory_space<vmem>>, vector<32x32xbf16>
      %120 = vector.shape_cast %119 : vector<32x32xbf16> to vector<1x32x32xbf16>
      %121 = vector.broadcast %120 : vector<1x32x32xbf16> to vector<2x32x32xbf16>
      %c0_68 = arith.constant 0 : index
      %c0_69 = arith.constant 0 : index
      %122 = vector.load %arg6[%c0_68, %c0_69] : memref<32x32xbf16, #tpu.memory_space<vmem>>, vector<32x32xbf16>
      %123 = vector.shape_cast %122 : vector<32x32xbf16> to vector<1x32x32xbf16>
      %124 = vector.broadcast %123 : vector<1x32x32xbf16> to vector<2x32x32xbf16>
      "tpu.trace_start"() <{level = 10 : i32, message = "hts,hsd->htd"}> : () -> ()
      %cst_70 = arith.constant dense<0.000000e+00> : vector<2x8x32xf32>
      %125 = tpu.matmul %118, %121, %cst_70 {dimension_numbers = #tpu.dot_dimension_numbers<[2], [1], [1], [2], [0, 0, 0, 1, 1, 2], [0], [0]>} : vector<2x8x32xbf16>, vector<2x32x32xbf16>, vector<2x8x32xf32> -> vector<2x8x32xf32>
      "tpu.trace_stop"() : () -> ()
      %126 = arith.truncf %125 : vector<2x8x32xf32> to vector<2x8x32xbf16>
      %c0_71 = arith.constant 0 : index
      %c0_72 = arith.constant 0 : index
      %c0_73 = arith.constant 0 : index
      %127 = vector.load %arg18[%c0_71, %c0_72, %c0_73] : memref<2x8x32xbf16, #tpu.memory_space<vmem>>, vector<2x8x32xbf16>
      tpu.vector_store %arg18[%c0_71, %c0_72, %c0_73], %126 {strides = array<i32>} : memref<2x8x32xbf16, #tpu.memory_space<vmem>>, vector<2x8x32xbf16>,
      "tpu.trace_start"() <{level = 10 : i32, message = "hts,hsd->htd"}> : () -> ()
      %cst_74 = arith.constant dense<0.000000e+00> : vector<2x8x32xf32>
      %128 = tpu.matmul %118, %124, %cst_74 {dimension_numbers = #tpu.dot_dimension_numbers<[2], [1], [1], [2], [0, 0, 0, 1, 1, 2], [0], [0]>} : vector<2x8x32xbf16>, vector<2x32x32xbf16>, vector<2x8x32xf32> -> vector<2x8x32xf32>
      "tpu.trace_stop"() : () -> ()
      %129 = arith.truncf %128 : vector<2x8x32xf32> to vector<2x8x32xbf16>
      %c0_75 = arith.constant 0 : index
      %c0_76 = arith.constant 0 : index
      %c0_77 = arith.constant 0 : index
      %130 = vector.load %arg19[%c0_75, %c0_76, %c0_77] : memref<2x8x32xbf16, #tpu.memory_space<vmem>>, vector<2x8x32xbf16>
      tpu.vector_store %arg19[%c0_75, %c0_76, %c0_77], %129 {strides = array<i32>} : memref<2x8x32xbf16, #tpu.memory_space<vmem>>, vector<2x8x32xbf16>,
    } else {
    }
    %c8_i32 = arith.constant 8 : i32
    %3 = arith.muli %arg1, %c8_i32 : i32
    %4 = tpu.assume_multiple %3, 8 : i32
    %c0 = arith.constant 0 : index
    %c0_1 = arith.constant 0 : index
    %5 = arith.index_cast %4 : i32 to index
    %c0_2 = arith.constant 0 : index
    %6 = vector.load %arg3[%c0, %c0_1, %5, %c0_2] : memref<1x2x8x32xbf16, #tpu.memory_space<vmem>>, vector<1x2x8x32xbf16>
    %7 = vector.shape_cast %6 : vector<1x2x8x32xbf16> to vector<2x8x32xbf16>
    %c0_3 = arith.constant 0 : index
    %c0_4 = arith.constant 0 : index
    %8 = vector.load %arg4[%c0_3, %c0_4] : memref<32x32xbf16, #tpu.memory_space<vmem>>, vector<32x32xbf16>
    %9 = vector.shape_cast %8 : vector<32x32xbf16> to vector<1x32x32xbf16>
    %10 = vector.broadcast %9 : vector<1x32x32xbf16> to vector<2x32x32xbf16>
    "tpu.trace_start"() <{level = 10 : i32, message = "hts,hsd->htd"}> : () -> ()
    %cst = arith.constant dense<0.000000e+00> : vector<2x8x32xf32>
    %11 = tpu.matmul %7, %10, %cst {dimension_numbers = #tpu.dot_dimension_numbers<[2], [1], [1], [2], [0, 0, 0, 1, 1, 2], [0], [0]>} : vector<2x8x32xbf16>, vector<2x32x32xbf16>, vector<2x8x32xf32> -> vector<2x8x32xf32>
    "tpu.trace_stop"() : () -> ()
    %12 = arith.truncf %11 : vector<2x8x32xf32> to vector<2x8x32xbf16>
    %c0_5 = arith.constant 0 : index
    %c0_6 = arith.constant 0 : index
    %c0_7 = arith.constant 0 : index
    %13 = vector.load %arg18[%c0_5, %c0_6, %c0_7] : memref<2x8x32xbf16, #tpu.memory_space<vmem>>, vector<2x8x32xbf16>
    "tpu.trace_start"() <{level = 10 : i32, message = "hqs,hks->hqk"}> : () -> ()
    %cst_8 = arith.constant dense<0.000000e+00> : vector<2x8x8xf32>
    %14 = tpu.matmul %12, %13, %cst_8 {dimension_numbers = #tpu.dot_dimension_numbers<[2], [2], [1], [1], [0, 0, 0, 1, 1, 1], [0], [0]>} : vector<2x8x32xbf16>, vector<2x8x32xbf16>, vector<2x8x8xf32> -> vector<2x8x8xf32>
    "tpu.trace_stop"() : () -> ()
    %15 = arith.truncf %14 : vector<2x8x8xf32> to vector<2x8x8xbf16>
    %c0_9 = arith.constant 0 : index
    %c0_10 = arith.constant 0 : index
    %c0_11 = arith.constant 0 : index
    %c0_12 = arith.constant 0 : index
    %16 = vector.load %arg17[%c0_9, %c0_10, %c0_11, %c0_12] : memref<1x2x8x8xbf16, #tpu.memory_space<vmem>>, vector<1x2x8x8xbf16>
    %17 = vector.shape_cast %16 : vector<1x2x8x8xbf16> to vector<2x8x8xbf16>
    %18 = vector.shape_cast %15 : vector<2x8x8xbf16> to vector<1x2x8x8xbf16>
    tpu.vector_store %arg17[%c0_9, %c0_10, %c0_11, %c0_12], %18 {strides = array<i32>} : memref<1x2x8x8xbf16, #tpu.memory_space<vmem>>, vector<1x2x8x8xbf16>,
    %cst_13 = arith.constant dense<0xFF800000> : vector<2x8xf32>
    %19 = vector.multi_reduction <maximumf>, %14, %cst_13 [2] : vector<2x8x8xf32> to vector<2x8xf32>
    %20 = vector.shape_cast %19 : vector<2x8xf32> to vector<2x8x1xf32>
    %21 = vector.broadcast %20 : vector<2x8x1xf32> to vector<2x8x8xf32>
    %22 = arith.subf %14, %21 : vector<2x8x8xf32>
    %23 = arith.truncf %22 : vector<2x8x8xf32> to vector<2x8x8xbf16>
    %24 = math.exp %23 : vector<2x8x8xbf16>
    %25 = arith.extf %24 : vector<2x8x8xbf16> to vector<2x8x8xf32>
    %cst_14 = arith.constant dense<0.000000e+00> : vector<2x8xf32>
    %26 = vector.multi_reduction <add>, %25, %cst_14 [2] : vector<2x8x8xf32> to vector<2x8xf32>
    %27 = vector.shape_cast %26 : vector<2x8xf32> to vector<2x8x1xf32>
    %c0_15 = arith.constant 0 : index
    %c0_16 = arith.constant 0 : index
    %c0_17 = arith.constant 0 : index
    %28 = vector.load %arg19[%c0_15, %c0_16, %c0_17] : memref<2x8x32xbf16, #tpu.memory_space<vmem>>, vector<2x8x32xbf16>
    "tpu.trace_start"() <{level = 10 : i32, message = "hqk,hks->hqs"}> : () -> ()
    %cst_18 = arith.constant dense<0.000000e+00> : vector<2x8x32xf32>
    %29 = tpu.matmul %24, %28, %cst_18 {dimension_numbers = #tpu.dot_dimension_numbers<[2], [1], [1], [2], [0, 0, 0, 1, 1, 2], [0], [0]>} : vector<2x8x8xbf16>, vector<2x8x32xbf16>, vector<2x8x32xf32> -> vector<2x8x32xf32>
    "tpu.trace_stop"() : () -> ()
    %30 = tpu.reciprocal %27 {approx = true} : vector<2x8x1xf32> -> vector<2x8x1xf32>
    %31 = vector.broadcast %30 : vector<2x8x1xf32> to vector<2x8x32xf32>
    %32 = arith.mulf %29, %31 : vector<2x8x32xf32>
    %33 = arith.truncf %32 : vector<2x8x32xf32> to vector<2x8x32xbf16>
    %c0_19 = arith.constant 0 : index
    %c0_20 = arith.constant 0 : index
    %c0_21 = arith.constant 0 : index
    %34 = vector.load %arg7[%c0_19, %c0_20, %c0_21] : memref<2x32x64xbf16, #tpu.memory_space<vmem>>, vector<2x32x64xbf16>
    "tpu.trace_start"() <{level = 10 : i32, message = "hqs,hse->hqe"}> : () -> ()
    %cst_22 = arith.constant dense<0.000000e+00> : vector<2x8x64xf32>
    %35 = tpu.matmul %33, %34, %cst_22 {dimension_numbers = #tpu.dot_dimension_numbers<[2], [1], [1], [2], [0, 0, 0, 1, 1, 2], [0], [0]>} : vector<2x8x32xbf16>, vector<2x32x64xbf16>, vector<2x8x64xf32> -> vector<2x8x64xf32>
    "tpu.trace_stop"() : () -> ()
    %cst_23 = arith.constant dense<0.000000e+00> : vector<8x64xf32>
    %36 = vector.multi_reduction <add>, %35, %cst_23 [0] : vector<2x8x64xf32> to vector<8x64xf32>
    %c0_24 = arith.constant 0 : index
    %c0_25 = arith.constant 0 : index
    %c0_26 = arith.constant 0 : index
    %37 = vector.load %arg2[%c0_24, %c0_25, %c0_26] : memref<1x8x64xf32, #tpu.memory_space<vmem>>, vector<1x8x64xf32>
    %38 = vector.shape_cast %37 : vector<1x8x64xf32> to vector<8x64xf32>
    %39 = arith.addf %38, %36 : vector<8x64xf32>
    %c0_27 = arith.constant 0 : index
    %c0_28 = arith.constant 0 : index
    %40 = vector.load %arg8[%c0_27, %c0_28] : memref<1x64xf32, #tpu.memory_space<vmem>>, vector<1x64xf32>
    %c0_29 = arith.constant 0 : index
    %c0_30 = arith.constant 0 : index
    %41 = vector.load %arg9[%c0_29, %c0_30] : memref<1x64xf32, #tpu.memory_space<vmem>>, vector<1x64xf32>
    %cst_31 = arith.constant dense<0.000000e+00> : vector<8xf32>
    %42 = vector.multi_reduction <add>, %39, %cst_31 [1] : vector<8x64xf32> to vector<8xf32>
    %43 = vector.shape_cast %42 : vector<8xf32> to vector<8x1xf32>
    %cst_32 = arith.constant 6.400000e+01 : f32
    %44 = vector.broadcast %cst_32 : f32 to vector<8x1xf32>
    %45 = arith.divf %43, %44 : vector<8x1xf32>
    %46 = vector.broadcast %45 : vector<8x1xf32> to vector<8x64xf32>
    %47 = arith.subf %39, %46 : vector<8x64xf32>
    %48 = arith.mulf %47, %47 : vector<8x64xf32>
    %cst_33 = arith.constant dense<0.000000e+00> : vector<8xf32>
    %49 = vector.multi_reduction <add>, %48, %cst_33 [1] : vector<8x64xf32> to vector<8xf32>
    %50 = vector.shape_cast %49 : vector<8xf32> to vector<8x1xf32>
    %cst_34 = arith.constant 6.400000e+01 : f32
    %51 = vector.broadcast %cst_34 : f32 to vector<8x1xf32>
    %52 = arith.divf %50, %51 : vector<8x1xf32>
    %53 = vector.broadcast %45 : vector<8x1xf32> to vector<8x64xf32>
    %54 = arith.subf %39, %53 : vector<8x64xf32>
    %cst_35 = arith.constant 9.99999974E-6 : f32
    %55 = vector.broadcast %cst_35 : f32 to vector<8x1xf32>
    %56 = arith.addf %52, %55 : vector<8x1xf32>
    %57 = math.rsqrt %56 : vector<8x1xf32>
    %58 = vector.broadcast %57 : vector<8x1xf32> to vector<8x64xf32>
    %59 = arith.mulf %54, %58 : vector<8x64xf32>
    %60 = vector.broadcast %40 : vector<1x64xf32> to vector<8x64xf32>
    %61 = arith.mulf %59, %60 : vector<8x64xf32>
    %62 = vector.broadcast %41 : vector<1x64xf32> to vector<8x64xf32>
    %63 = arith.addf %61, %62 : vector<8x64xf32>
    %64 = arith.truncf %63 : vector<8x64xf32> to vector<8x64xbf16>
    %c0_36 = arith.constant 0 : index
    %c0_37 = arith.constant 0 : index
    %65 = vector.load %arg10[%c0_36, %c0_37] : memref<64x256xbf16, #tpu.memory_space<vmem>>, vector<64x256xbf16>
    %cst_38 = arith.constant dense<0.000000e+00> : vector<8x256xf32>
    %66 = tpu.matmul %64, %65, %cst_38 {dimension_numbers = #tpu.dot_dimension_numbers<[1], [0], [0], [1], [0, 0, 1, 1], [], []>} : vector<8x64xbf16>, vector<64x256xbf16>, vector<8x256xf32> -> vector<8x256xf32>
    %c0_39 = arith.constant 0 : index
    %c0_40 = arith.constant 0 : index
    %67 = vector.load %arg11[%c0_39, %c0_40] : memref<1x256xf32, #tpu.memory_space<vmem>>, vector<1x256xf32>
    %68 = vector.broadcast %67 : vector<1x256xf32> to vector<8x256xf32>
    %69 = arith.addf %66, %68 : vector<8x256xf32>
    %cst_41 = arith.constant 5.000000e-01 : f32
    %70 = vector.broadcast %cst_41 : f32 to vector<8x256xf32>
    %71 = arith.mulf %70, %69 : vector<8x256xf32>
    %72 = arith.mulf %69, %69 : vector<8x256xf32>
    %73 = arith.mulf %72, %69 : vector<8x256xf32>
    %cst_42 = arith.constant 4.471500e-02 : f32
    %74 = vector.broadcast %cst_42 : f32 to vector<8x256xf32>
    %75 = arith.mulf %74, %73 : vector<8x256xf32>
    %76 = arith.addf %69, %75 : vector<8x256xf32>
    %cst_43 = arith.constant 0.797884583 : f32
    %77 = vector.broadcast %cst_43 : f32 to vector<8x256xf32>
    %78 = arith.mulf %77, %76 : vector<8x256xf32>
    %79 = math.tanh %78 : vector<8x256xf32>
    %cst_44 = arith.constant 1.000000e+00 : f32
    %80 = vector.broadcast %cst_44 : f32 to vector<8x256xf32>
    %81 = arith.addf %80, %79 : vector<8x256xf32>
    %82 = arith.mulf %71, %81 : vector<8x256xf32>
    %83 = arith.truncf %82 : vector<8x256xf32> to vector<8x256xbf16>
    %c0_45 = arith.constant 0 : index
    %c0_46 = arith.constant 0 : index
    %84 = vector.load %arg12[%c0_45, %c0_46] : memref<256x64xbf16, #tpu.memory_space<vmem>>, vector<256x64xbf16>
    %cst_47 = arith.constant dense<0.000000e+00> : vector<8x64xf32>
    %85 = tpu.matmul %83, %84, %cst_47 {dimension_numbers = #tpu.dot_dimension_numbers<[1], [0], [0], [1], [0, 0, 1, 1], [], []>} : vector<8x256xbf16>, vector<256x64xbf16>, vector<8x64xf32> -> vector<8x64xf32>
    %c0_48 = arith.constant 0 : index
    %c0_49 = arith.constant 0 : index
    %86 = vector.load %arg13[%c0_48, %c0_49] : memref<1x64xf32, #tpu.memory_space<vmem>>, vector<1x64xf32>
    %87 = vector.broadcast %86 : vector<1x64xf32> to vector<8x64xf32>
    %88 = arith.addf %85, %87 : vector<8x64xf32>
    %89 = arith.addf %63, %88 : vector<8x64xf32>
    %c0_50 = arith.constant 0 : index
    %c0_51 = arith.constant 0 : index
    %90 = vector.load %arg14[%c0_50, %c0_51] : memref<1x64xf32, #tpu.memory_space<vmem>>, vector<1x64xf32>
    %c0_52 = arith.constant 0 : index
    %c0_53 = arith.constant 0 : index
    %91 = vector.load %arg15[%c0_52, %c0_53] : memref<1x64xf32, #tpu.memory_space<vmem>>, vector<1x64xf32>
    %cst_54 = arith.constant dense<0.000000e+00> : vector<8xf32>
    %92 = vector.multi_reduction <add>, %89, %cst_54 [1] : vector<8x64xf32> to vector<8xf32>
    %93 = vector.shape_cast %92 : vector<8xf32> to vector<8x1xf32>
    %cst_55 = arith.constant 6.400000e+01 : f32
    %94 = vector.broadcast %cst_55 : f32 to vector<8x1xf32>
    %95 = arith.divf %93, %94 : vector<8x1xf32>
    %96 = vector.broadcast %95 : vector<8x1xf32> to vector<8x64xf32>
    %97 = arith.subf %89, %96 : vector<8x64xf32>
    %98 = arith.mulf %97, %97 : vector<8x64xf32>
    %cst_56 = arith.constant dense<0.000000e+00> : vector<8xf32>
    %99 = vector.multi_reduction <add>, %98, %cst_56 [1] : vector<8x64xf32> to vector<8xf32>
    %100 = vector.shape_cast %99 : vector<8xf32> to vector<8x1xf32>
    %cst_57 = arith.constant 6.400000e+01 : f32
    %101 = vector.broadcast %cst_57 : f32 to vector<8x1xf32>
    %102 = arith.divf %100, %101 : vector<8x1xf32>
    %103 = vector.broadcast %95 : vector<8x1xf32> to vector<8x64xf32>
    %104 = arith.subf %89, %103 : vector<8x64xf32>
    %cst_58 = arith.constant 9.99999974E-6 : f32
    %105 = vector.broadcast %cst_58 : f32 to vector<8x1xf32>
    %106 = arith.addf %102, %105 : vector<8x1xf32>
    %107 = math.rsqrt %106 : vector<8x1xf32>
    %108 = vector.broadcast %107 : vector<8x1xf32> to vector<8x64xf32>
    %109 = arith.mulf %104, %108 : vector<8x64xf32>
    %110 = vector.broadcast %90 : vector<1x64xf32> to vector<8x64xf32>
    %111 = arith.mulf %109, %110 : vector<8x64xf32>
    %112 = vector.broadcast %91 : vector<1x64xf32> to vector<8x64xf32>
    %113 = arith.addf %111, %112 : vector<8x64xf32>
    %c0_59 = arith.constant 0 : index
    %c0_60 = arith.constant 0 : index
    %c0_61 = arith.constant 0 : index
    %114 = vector.load %arg16[%c0_59, %c0_60, %c0_61] : memref<1x8x64xf32, #tpu.memory_space<vmem>>, vector<1x8x64xf32>
    %115 = vector.shape_cast %114 : vector<1x8x64xf32> to vector<8x64xf32>
    %116 = vector.shape_cast %113 : vector<8x64xf32> to vector<1x8x64xf32>
    tpu.vector_store %arg16[%c0_59, %c0_60, %c0_61], %116 {strides = array<i32>} : memref<1x8x64xf32, #tpu.memory_space<vmem>>, vector<1x8x64xf32>,
    return
  }
  func.func @transform_0(%arg0: i32, %arg1: i32) -> (i32, i32, i32) {
    %c0_i32 = arith.constant 0 : i32
    %c0_i32_0 = arith.constant 0 : i32
    return %arg0, %arg1, %c0_i32 : i32, i32, i32
  }
  func.func @transform_1(%arg0: i32, %arg1: i32) -> (i32, i32, i32, i32) {
    %c0_i32 = arith.constant 0 : i32
    %c0_i32_0 = arith.constant 0 : i32
    %c0_i32_1 = arith.constant 0 : i32
    %c0_i32_2 = arith.constant 0 : i32
    return %arg0, %c0_i32, %c0_i32_0, %c0_i32_1 : i32, i32, i32, i32
  }
  func.func @transform_2(%arg0: i32, %arg1: i32) -> (i32, i32) {
    %c0_i32 = arith.constant 0 : i32
    %c0_i32_0 = arith.constant 0 : i32
    %c0_i32_1 = arith.constant 0 : i32
    return %c0_i32, %c0_i32_0 : i32, i32
  }
  func.func @transform_3(%arg0: i32, %arg1: i32) -> (i32, i32) {
    %c0_i32 = arith.constant 0 : i32
    %c0_i32_0 = arith.constant 0 : i32
    %c0_i32_1 = arith.constant 0 : i32
    return %c0_i32, %c0_i32_0 : i32, i32
  }
  func.func @transform_4(%arg0: i32, %arg1: i32) -> (i32, i32) {
    %c0_i32 = arith.constant 0 : i32
    %c0_i32_0 = arith.constant 0 : i32
    %c0_i32_1 = arith.constant 0 : i32
    return %c0_i32, %c0_i32_0 : i32, i32
  }
  func.func @transform_5(%arg0: i32, %arg1: i32) -> (i32, i32, i32) {
    %c0_i32 = arith.constant 0 : i32
    %c0_i32_0 = arith.constant 0 : i32
    %c0_i32_1 = arith.constant 0 : i32
    %c0_i32_2 = arith.constant 0 : i32
    return %c0_i32, %c0_i32_0, %c0_i32_1 : i32, i32, i32
  }
  func.func @transform_6(%arg0: i32, %arg1: i32) -> (i32, i32) {
    %c0_i32 = arith.constant 0 : i32
    %c0_i32_0 = arith.constant 0 : i32
    %c0_i32_1 = arith.constant 0 : i32
    return %c0_i32, %c0_i32_0 : i32, i32
  }
  func.func @transform_7(%arg0: i32, %arg1: i32) -> (i32, i32) {
    %c0_i32 = arith.constant 0 : i32
    %c0_i32_0 = arith.constant 0 : i32
    %c0_i32_1 = arith.constant 0 : i32
    return %c0_i32, %c0_i32_0 : i32, i32
  }
  func.func @transform_8(%arg0: i32, %arg1: i32) -> (i32, i32) {
    %c0_i32 = arith.constant 0 : i32
    %c0_i32_0 = arith.constant 0 : i32
    %c0_i32_1 = arith.constant 0 : i32
    return %c0_i32, %c0_i32_0 : i32, i32
  }
  func.func @transform_9(%arg0: i32, %arg1: i32) -> (i32, i32) {
    %c0_i32 = arith.constant 0 : i32
    %c0_i32_0 = arith.constant 0 : i32
    %c0_i32_1 = arith.constant 0 : i32
    return %c0_i32, %c0_i32_0 : i32, i32
  }
  func.func @transform_10(%arg0: i32, %arg1: i32) -> (i32, i32) {
    %c0_i32 = arith.constant 0 : i32
    %c0_i32_0 = arith.constant 0 : i32
    %c0_i32_1 = arith.constant 0 : i32
    return %c0_i32, %c0_i32_0 : i32, i32
  }
  func.func @transform_11(%arg0: i32, %arg1: i32) -> (i32, i32) {
    %c0_i32 = arith.constant 0 : i32
    %c0_i32_0 = arith.constant 0 : i32
    %c0_i32_1 = arith.constant 0 : i32
    return %c0_i32, %c0_i32_0 : i32, i32
  }
  func.func @transform_12(%arg0: i32, %arg1: i32) -> (i32, i32) {
    %c0_i32 = arith.constant 0 : i32
    %c0_i32_0 = arith.constant 0 : i32
    %c0_i32_1 = arith.constant 0 : i32
    return %c0_i32, %c0_i32_0 : i32, i32
  }
  func.func @transform_13(%arg0: i32, %arg1: i32) -> (i32, i32) {
    %c0_i32 = arith.constant 0 : i32
    %c0_i32_0 = arith.constant 0 : i32
    %c0_i32_1 = arith.constant 0 : i32
    return %c0_i32, %c0_i32_0 : i32, i32
  }
  func.func @transform_14(%arg0: i32, %arg1: i32) -> (i32, i32, i32) {
    %c0_i32 = arith.constant 0 : i32
    %c0_i32_0 = arith.constant 0 : i32
    return %arg0, %arg1, %c0_i32 : i32, i32, i32
  }
  func.func @transform_15(%arg0: i32, %arg1: i32) -> (i32, i32, i32, i32) {
    %c0_i32 = arith.constant 0 : i32
    %c0_i32_0 = arith.constant 0 : i32
    %c0_i32_1 = arith.constant 0 : i32
    return %arg0, %c0_i32, %arg1, %c0_i32_0 : i32, i32, i32, i32
  }
}

</mosaic_0001>

<bundles_post_ra>
// kernel: tpu_custom_call.1
= control target key start
LH: loop header
LB: loop body
LE: loop exit
PB: predicated region body
PF: predicated region fallthrough
CT: control target
= control target key end

     0   :  { %s3864_s0 = inlined_call_operand.hbm [shape: f32[2,8,64], index: 0, kind: input, shape index: {}]   ;;  %s3865_s1 = inlined_call_operand.hbm [shape: bf16[2,2,8,32], index: 1, kind: input, shape index: {}]   ;;  %s3866_s2 = inlined_call_operand.hbm [shape: bf16[32,32], index: 2, kind: input, shape index: {}]   ;;  %s3867_s3 = inlined_call_operand.hbm [shape: bf16[32,32], index: 3, kind: input, shape index: {}]   ;;  %s3868_s4 = inlined_call_operand.hbm [shape: bf16[32,32], index: 4, kind: input, shape index: {}]   ;;  %s3869_s5 = inlined_call_operand.hbm [shape: bf16[2,32,64], index: 5, kind: input, shape index: {}]   ;;  %s3870_s6 = inlined_call_operand.hbm [shape: f32[1,64], index: 6, kind: input, shape index: {}]   ;;  %s3871_s7 = inlined_call_operand.hbm [shape: f32[1,64], index: 7, kind: input, shape index: {}]   ;;  %s3872_s8 = inlined_call_operand.hbm [shape: bf16[64,256], index: 8, kind: input, shape index: {}]   ;;  %s3873_s9 = inlined_call_operand.hbm [shape: f32[1,256], index: 9, kind: input, shape index: {}]   ;;  %s3874_s10 = inlined_call_operand.hbm [shape: bf16[256,64], index: 10, kind: input, shape index: {}]   ;;  %s3875_s11 = inlined_call_operand.hbm [shape: f32[1,64], index: 11, kind: input, shape index: {}]   ;;  %s3876_s12 = inlined_call_operand.hbm [shape: f32[1,64], index: 12, kind: input, shape index: {}]   ;;  %s3877_s13 = inlined_call_operand.hbm [shape: f32[1,64], index: 13, kind: input, shape index: {}]   ;;  %s3878_s14 = inlined_call_operand.hbm [shape: f32[2,8,64], index: 14, kind: output, shape index: {0}]   ;;  %s3879_s15 = inlined_call_operand.hbm [shape: bf16[2,2,8,8], index: 15, kind: output, shape index: {1}]  }
   0x1   :  { %3897 = sst [smem:[#allocation46_spill]] %s3864_s0 }
   0x2   :  { %3898 = sst [smem:[#allocation47_spill]] %s3865_s1 }
   0x3   :  { %3899 = sst [smem:[#allocation48_spill]] %s3866_s2 }
   0x4   :  { %3900 = sst [smem:[#allocation49_spill]] %s3867_s3 }
   0x5   :  { %3901 = sst [smem:[#allocation50_spill]] %s3868_s4 }
   0x6   :  { %3902 = sst [smem:[#allocation51_spill]] %s3869_s5 }
   0x7   :  { %3903 = sst [smem:[#allocation52_spill]] %s3870_s6 }
   0x8   :  { %3904 = sst [smem:[#allocation53_spill]] %s3871_s7 }
   0x9   :  { %3905 = sst [smem:[#allocation54_spill]] %s3872_s8 }
   0xa   :  { %3906 = sst [smem:[#allocation55_spill]] %s3873_s9 }
   0xb   :  { %3907 = sst [smem:[#allocation56_spill]] %s3874_s10 }
   0xc   :  { %3908 = sst [smem:[#allocation57_spill]] %s3878_s14 }
   0xd   :  { %3909 = sst [smem:[#allocation58_spill]] %s3879_s15 }
   0xe   :  { %21 = vsyncpa [#allocation5], 0 }
   0xf   :  { %23 = vsyncpa [#allocation5 + $0x1], 0 }
  0x10   :  { %24 = vsyncpa [#allocation8], 0 }
  0x11   :  { %26 = vsyncpa [#allocation8 + $0x1], 0 }
  0x12   :  { %27 = vsyncpa [#allocation11], 0 }
  0x13   :  { %28 = vsyncpa [#allocation14], 0 }
  0x14   :  { %29 = vsyncpa [#allocation17], 0 }
  0x15   :  { %30 = vsyncpa [#allocation20], 0 }
  0x16   :  { %31 = vsyncpa [#allocation23], 0 }
  0x17   :  { %32 = vsyncpa [#allocation26], 0 }
  0x18   :  { %33 = vsyncpa [#allocation6], 0 }
  0x19   :  { %35 = vsyncpa [#allocation6 + $0x1], 0 }
  0x1a   :  { %36 = vsyncpa [#allocation29], 0 }
  0x1b   :  { %38 = vsyncpa [#allocation29 + $0x1], 0  ;;  %s3215_s18 = smov 0   ;;  %s3217_s19 = smov 0  }
  0x1c   :  { %s3219_s20 = smov 0   ;;  %s3221_s21 = smov 0  }
  0x1d   :  { %s3223_s22 = smov 0   ;;  %s3225_s23 = smov 0  }
  0x1e LB: > { %3910 = sst [smem:[#allocation41_spill]] %s3088_s18  ;;  %s3246_s24 = sadd.s32 4294967295, %s3108_s23   ;;  %s3108_s23 = sphi %s3225_s23, %s44_s23   ;;  %s3104_s22 = sphi %s3223_s22, %s3973_s22   ;;  %s3100_s21 = sphi %s3221_s21, %s3972_s21   ;;  %s3096_s20 = sphi %s3219_s20, %s3971_s20   ;;  %s3092_s19 = sphi %s3217_s19, %s3970_s19   ;;  %s3088_s18 = sphi %s3215_s18, %s3969_s18  }
  0x1f   : > { %3911 = sst [smem:[#allocation42_spill]] %s3092_s19  ;;  %p2071_p0 = scmp.ge.s32.totalorder %s3108_s23, 1 }
  0x20   : > { %3912 = sst [smem:[#allocation43_spill]] %s3100_s21  ;;  %p3890_p1 = scmp.eq.s32.totalorder %s3246_s24, 0 }
  0x21   : > { %3913 = sst [smem:[#allocation44_spill]] %s3246_s24  ;;  %p423_p2 = scmp.lt.s32.totalorder %s3108_s23, 3 }
  0x22   : > { %s3110_s26 = smov [#allocation9]   ;;  %s3111_s29 = smov [#allocation10]  }
  0x23   : > { %p3251_p3 = pnand %p2071_p0, %p423_p2  ;;  %s435_s27 = sshll.u32 %s3110_s26, 4  ;;  %s3255_s27 = int_to_ptr.vmem [resolvable:$true] %s435_s27 }
  0x24   : > { %s448_s30 = sshll.u32 %s3111_s29, 4  ;;  %s3112_s16 = smov [#allocation13]   ;;  %s3266_s30 = int_to_ptr.vmem [resolvable:$true] %s448_s30 }
  0x25   : > { %s3914_s25 = scalar_select %p3251_p3, 1, 0 }
  0x26   : > { %p2366_p4 = pneg %p3251_p3  ;;  %s3268_s17 = sshll.u32 %s3112_s16, 4  ;;  %s475_s17 = int_to_ptr.vmem [resolvable:$true] %s3268_s17 }
  0x27   : > { %3915 = sst [smem:[#allocation45_spill]] %s3914_s25  ;;  %s3917_s2 = sld [smem:[#allocation48_spill]] }
  0x28   : > { %p3262_p6 = pnand %p2366_p4, %p3890_p1 }
  0x2a   : > { %p3278_p8 = pneg %p3262_p6 }
  0x2d   : > { %s2566_s15 = scalar_lea.hbm %s3917_s2, 256 }
  0x2e   : > { %p2567_p7 = scmp.ne.s32.totalorder %s3917_s2, %s2566_s15  ;;  %p2573_p11 = scmp.lt.u32.totalorder %s2566_s15, %s3917_s2 }
  0x30   : > { %p2569_p9 = pnand %p3278_p8, %p2567_p7 }
  0x32   : > { %p2570_p10 = pneg %p2569_p9 }
  0x34   : > { %p2575_p12 = pnand %p2573_p11, %p2570_p10 }
  0x36   : > { %2578 = shalt.err (!%p2575_p12)
}
  0x37   : > { %s2579_s14 = scalar_lea.vmem %s3255_s27, 256  ;;  %p2587_p4 = scmp.lt.s32.totalorder %s3255_s27, %s3255_s27 }
  0x38   : > { %p2580_p13 = scmp.ne.s32.totalorder %s3255_s27, %s2579_s14  ;;  %p2588_p5 = scmp.lt.s32.totalorder %s2579_s14, %s2579_s14 }
  0x3a   : > { %p2582_p0 = pnand %p2580_p13, %p3278_p8  ;;  %p2589_p7 = por %p2588_p5, %p2587_p4 }
  0x3c   : > { %p2583_p2 = pneg %p2582_p0 }
  0x3e   : > { %p2590_p9 = pnand %p2589_p7, %p2583_p2 }
  0x40   : > { %2593 = shalt.err (!%p2590_p9)
}
  0x41   : > { %s3892_s21 = smov 64   ;;  %s3894_s15 = smov 4  }
  0x42   : > { %2369 = dma.hbm_to_vmem [thread:$0]  (!%p3262_p6), %s3917_s2, 256, %s3255_s27, [#allocation8], %s3892_s21, %s3892_s21, %s3894_s15  }
  0x43   : > { %s3919_s3 = sld [smem:[#allocation49_spill]] }
  0x49   : > { %s2594_s14 = scalar_lea.hbm %s3919_s3, 256 }
  0x4a   : > { %p2595_p5 = scmp.ne.s32.totalorder %s3919_s3, %s2594_s14  ;;  %p2601_p12 = scmp.lt.u32.totalorder %s2594_s14, %s3919_s3 }
  0x4c   : > { %p2597_p10 = pnand %p2595_p5, %p3278_p8 }
  0x4e   : > { %p2598_p11 = pneg %p2597_p10 }
  0x50   : > { %p2603_p13 = pnand %p2601_p12, %p2598_p11 }
  0x52   : > { %2606 = shalt.err (!%p2603_p13)
}
  0x53   : > { %s2607_s27 = scalar_lea.vmem %s3266_s30, 256  ;;  %p2615_p7 = scmp.lt.s32.totalorder %s3266_s30, %s3266_s30 }
  0x54   : > { %p2608_p0 = scmp.ne.s32.totalorder %s3266_s30, %s2607_s27  ;;  %p2616_p9 = scmp.lt.s32.totalorder %s2607_s27, %s2607_s27 }
  0x56   : > { %p2610_p2 = pnand %p2608_p0, %p3278_p8  ;;  %p2617_p5 = por %p2616_p9, %p2615_p7 }
  0x58   : > { %p2611_p4 = pneg %p2610_p2 }
  0x5a   : > { %p2618_p10 = pnand %p2617_p5, %p2611_p4 }
  0x5c   : > { %2621 = shalt.err (!%p2618_p10)
}
  0x5d   : > { %2372 = dma.hbm_to_vmem [thread:$0]  (!%p3262_p6), %s3919_s3, 256, %s3266_s30, [#allocation11], %s3892_s21, %s3892_s21, %s3894_s15  }
  0x5e   : > { %s3920_s5 = sld [smem:[#allocation51_spill]] }
  0x64   : > { %s2622_s25 = scalar_lea.hbm %s3920_s5, 512 }
  0x65   : > { %p2623_p11 = scmp.ne.s32.totalorder %s3920_s5, %s2622_s25  ;;  %p2629_p0 = scmp.lt.u32.totalorder %s2622_s25, %s3920_s5 }
  0x67   : > { %p2625_p12 = pnand %p2623_p11, %p3278_p8 }
  0x69   : > { %p2626_p13 = pneg %p2625_p12 }
  0x6b   : > { %p2631_p2 = pnand %p2629_p0, %p2626_p13 }
  0x6d   : > { %2634 = shalt.err (!%p2631_p2)
}
  0x6e   : > { %s2635_s27 = scalar_lea.vmem %s475_s17, 512  ;;  %p2643_p5 = scmp.lt.s32.totalorder %s475_s17, %s475_s17 }
  0x6f   : > { %p2636_p4 = scmp.ne.s32.totalorder %s475_s17, %s2635_s27  ;;  %p2644_p10 = scmp.lt.s32.totalorder %s2635_s27, %s2635_s27 }
  0x71   : > { %p2638_p7 = pnand %p2636_p4, %p3278_p8  ;;  %p2645_p1 = por %p2644_p10, %p2643_p5 }
  0x73   : > { %p2639_p9 = pneg %p2638_p7 }
  0x75   : > { %p2646_p3 = pnand %p2645_p1, %p2639_p9 }
  0x77   : > { %2649 = shalt.err (!%p2646_p3)
}
  0x78   : > { %2378 = dma.hbm_to_vmem [thread:$0]  (!%p3262_p6), %s3920_s5, 512, %s475_s17, [#allocation14], %s3892_s21, %s3892_s21, %s3894_s15  }
  0x79   : > { %s3115_s18 = smov [#allocation16]   ;;  %s3116_s24 = smov [#allocation19]  }
  0x7a   : > { %s499_s19 = sshll.u32 %s3115_s18, 4  ;;  %s523_s25 = sshll.u32 %s3116_s24, 4  ;;  %s500_s19 = int_to_ptr.vmem [resolvable:$true] %s499_s19  ;;  %s524_s25 = int_to_ptr.vmem [resolvable:$true] %s523_s25 }
  0x7b   : > { %s3921_s7 = sld [smem:[#allocation53_spill]] }
  0x81   : > { %s2650_s16 = scalar_lea.hbm %s3921_s7, 16 }
  0x82   : > { %p2651_p1 = scmp.ne.s32.totalorder %s3921_s7, %s2650_s16  ;;  %p2657_p12 = scmp.lt.u32.totalorder %s2650_s16, %s3921_s7 }
  0x84   : > { %p2653_p3 = pnand %p2651_p1, %p3278_p8 }
  0x86   : > { %p2654_p11 = pneg %p2653_p3 }
  0x88   : > { %p2659_p13 = pnand %p2657_p12, %p2654_p11 }
  0x8a   : > { %2662 = shalt.err (!%p2659_p13)
}
  0x8b   : > { %s2663_s17 = scalar_lea.vmem %s500_s19, 16  ;;  %s2670_s0 = scalar_lea.vmem %s500_s19, 32 }
  0x8c   : > { %p2664_p0 = scmp.ne.s32.totalorder %s500_s19, %s2663_s17  ;;  %p2671_p7 = scmp.lt.s32.totalorder %s500_s19, %s500_s19 }
  0x8d   : > { %p2672_p9 = scmp.lt.s32.totalorder %s2670_s0, %s2663_s17 }
  0x8e   : > { %p2666_p2 = pnand %p2664_p0, %p3278_p8 }
  0x8f   : > { %p2673_p5 = por %p2672_p9, %p2671_p7 }
  0x90   : > { %p2667_p4 = pneg %p2666_p2 }
  0x92   : > { %p2674_p10 = pnand %p2673_p5, %p2667_p4 }
  0x94   : > { %2677 = shalt.err (!%p2674_p10)
}
  0x95   : > { %2384 = dma.hbm_to_vmem [thread:$0]  (!%p3262_p6), %s3921_s7, 16, %s500_s19, [#allocation17]  }
  0x96   : > { %s3922_s9 = sld [smem:[#allocation55_spill]] }
  0x9c   : > { %s2678_s29 = scalar_lea.hbm %s3922_s9, 32 }
  0x9d   : > { %p2679_p1 = scmp.ne.s32.totalorder %s3922_s9, %s2678_s29  ;;  %p2685_p12 = scmp.lt.u32.totalorder %s2678_s29, %s3922_s9 }
  0x9f   : > { %p2681_p3 = pnand %p2679_p1, %p3278_p8 }
  0xa1   : > { %p2682_p11 = pneg %p2681_p3 }
  0xa3   : > { %p2687_p13 = pnand %p2685_p12, %p2682_p11 }
  0xa5   : > { %2690 = shalt.err (!%p2687_p13)
}
  0xa6   : > { %s2691_s17 = scalar_lea.vmem %s524_s25, 32  ;;  %p2699_p7 = scmp.lt.s32.totalorder %s524_s25, %s524_s25 }
  0xa7   : > { %p2692_p0 = scmp.ne.s32.totalorder %s524_s25, %s2691_s17  ;;  %p2700_p9 = scmp.lt.s32.totalorder %s2691_s17, %s2691_s17 }
  0xa9   : > { %p2694_p2 = pnand %p2692_p0, %p3278_p8  ;;  %p2701_p5 = por %p2700_p9, %p2699_p7 }
  0xab   : > { %p2695_p4 = pneg %p2694_p2 }
  0xad   : > { %p2702_p10 = pnand %p2701_p5, %p2695_p4 }
  0xaf   : > { %2705 = shalt.err (!%p2702_p10)
}
  0xb0   : > { %2390 = dma.hbm_to_vmem [thread:$0]  (!%p3262_p6), %s3922_s9, 32, %s524_s25, [#allocation20]  }
  0xb1   : > { %s3117_s18 = smov [#allocation22]   ;;  %s3118_s2 = smov [#allocation12]  }
  0xb2   : > { %s547_s24 = sshll.u32 %s3117_s18, 4  ;;  %s461_s26 = sshll.u32 %s3118_s2, 4  ;;  %s548_s24 = int_to_ptr.vmem [resolvable:$true] %s547_s24  ;;  %s462_s26 = int_to_ptr.vmem [resolvable:$true] %s461_s26 }
  0xb3   : > { %s2706_s14 = scalar_lea.hbm %s3875_s11, 16 }
  0xb4   : > { %p2707_p1 = scmp.ne.s32.totalorder %s3875_s11, %s2706_s14  ;;  %p2713_p12 = scmp.lt.u32.totalorder %s2706_s14, %s3875_s11 }
  0xb6   : > { %p2709_p3 = pnand %p2707_p1, %p3278_p8 }
  0xb8   : > { %p2710_p11 = pneg %p2709_p3 }
  0xba   : > { %p2715_p13 = pnand %p2713_p12, %p2710_p11 }
  0xbc   : > { %2718 = shalt.err (!%p2715_p13)
}
  0xbd   : > { %s2719_s25 = scalar_lea.vmem %s548_s24, 16  ;;  %s2726_s0 = scalar_lea.vmem %s548_s24, 32 }
  0xbe   : > { %p2720_p0 = scmp.ne.s32.totalorder %s548_s24, %s2719_s25  ;;  %p2727_p7 = scmp.lt.s32.totalorder %s548_s24, %s548_s24 }
  0xbf   : > { %p2728_p9 = scmp.lt.s32.totalorder %s2726_s0, %s2719_s25 }
  0xc0   : > { %p2722_p2 = pnand %p2720_p0, %p3278_p8 }
  0xc1   : > { %p2729_p5 = por %p2728_p9, %p2727_p7 }
  0xc2   : > { %p2723_p4 = pneg %p2722_p2 }
  0xc4   : > { %p2730_p10 = pnand %p2729_p5, %p2723_p4 }
  0xc6   : > { %2733 = shalt.err (!%p2730_p10)
}
  0xc7   : > { %2396 = dma.hbm_to_vmem [thread:$0]  (!%p3262_p6), %s3875_s11, 16, %s548_s24, [#allocation23]  }
  0xc8   : > { %s3923_s4 = sld [smem:[#allocation50_spill]] }
  0xce   : > { %s2734_s14 = scalar_lea.hbm %s3923_s4, 256 }
  0xcf   : > { %p2735_p1 = scmp.ne.s32.totalorder %s3923_s4, %s2734_s14  ;;  %p2741_p12 = scmp.lt.u32.totalorder %s2734_s14, %s3923_s4 }
  0xd1   : > { %p2737_p3 = pnand %p2735_p1, %p3278_p8 }
  0xd3   : > { %p2738_p11 = pneg %p2737_p3 }
  0xd5   : > { %p2743_p13 = pnand %p2741_p12, %p2738_p11 }
  0xd7   : > { %2746 = shalt.err (!%p2743_p13)
}
  0xd8   : > { %s2747_s25 = scalar_lea.vmem %s462_s26, 256  ;;  %p2755_p7 = scmp.lt.s32.totalorder %s462_s26, %s462_s26 }
  0xd9   : > { %p2748_p0 = scmp.ne.s32.totalorder %s462_s26, %s2747_s25  ;;  %p2756_p9 = scmp.lt.s32.totalorder %s2747_s25, %s2747_s25 }
  0xdb   : > { %p2750_p2 = pnand %p2748_p0, %p3278_p8  ;;  %p2757_p5 = por %p2756_p9, %p2755_p7 }
  0xdd   : > { %p2751_p4 = pneg %p2750_p2 }
  0xdf   : > { %p2758_p10 = pnand %p2757_p5, %p2751_p4 }
  0xe1   : > { %2761 = shalt.err (!%p2758_p10)
}
  0xe2   : > { %2375 = dma.hbm_to_vmem [thread:$0]  (!%p3262_p6), %s3923_s4, 256, %s462_s26, [#allocation11], %s3892_s21, %s3892_s21, %s3894_s15  }
  0xe3   : > { %s3119_s18 = smov [#allocation15]   ;;  %s3120_s29 = smov [#allocation18]  }
  0xe4   : > { %s488_s2 = sshll.u32 %s3119_s18, 4  ;;  %s509_s16 = sshll.u32 %s3120_s29, 4  ;;  %s489_s2 = int_to_ptr.vmem [resolvable:$true] %s488_s2  ;;  %s510_s16 = int_to_ptr.vmem [resolvable:$true] %s509_s16 }
  0xe5   : > { %s3924_s6 = sld [smem:[#allocation52_spill]] }
  0xeb   : > { %s2762_s30 = scalar_lea.hbm %s3924_s6, 16 }
  0xec   : > { %p2763_p1 = scmp.ne.s32.totalorder %s3924_s6, %s2762_s30  ;;  %p2769_p12 = scmp.lt.u32.totalorder %s2762_s30, %s3924_s6 }
  0xee   : > { %p2765_p3 = pnand %p2763_p1, %p3278_p8 }
  0xf0   : > { %p2766_p11 = pneg %p2765_p3 }
  0xf2   : > { %p2771_p13 = pnand %p2769_p12, %p2766_p11 }
  0xf4   : > { %2774 = shalt.err (!%p2771_p13)
}
  0xf5   : > { %s2775_s26 = scalar_lea.vmem %s489_s2, 16  ;;  %s2782_s0 = scalar_lea.vmem %s489_s2, 32 }
  0xf6   : > { %p2776_p0 = scmp.ne.s32.totalorder %s489_s2, %s2775_s26  ;;  %p2783_p7 = scmp.lt.s32.totalorder %s489_s2, %s489_s2 }
  0xf7   : > { %p2784_p9 = scmp.lt.s32.totalorder %s2782_s0, %s2775_s26 }
  0xf8   : > { %p2778_p2 = pnand %p2776_p0, %p3278_p8 }
  0xf9   : > { %p2785_p5 = por %p2784_p9, %p2783_p7 }
  0xfa   : > { %p2779_p4 = pneg %p2778_p2 }
  0xfc   : > { %p2786_p10 = pnand %p2785_p5, %p2779_p4 }
  0xfe   : > { %2789 = shalt.err (!%p2786_p10)
}
  0xff   : > { %2381 = dma.hbm_to_vmem [thread:$0]  (!%p3262_p6), %s3924_s6, 16, %s489_s2, [#allocation14]  }
 0x100   : > { %s3925_s8 = sld [smem:[#allocation54_spill]] }
 0x106   : > { %s2790_s30 = scalar_lea.hbm %s3925_s8, 1024 }
 0x107   : > { %p2791_p1 = scmp.ne.s32.totalorder %s3925_s8, %s2790_s30  ;;  %p2797_p12 = scmp.lt.u32.totalorder %s2790_s30, %s3925_s8 }
 0x109   : > { %p2793_p3 = pnand %p2791_p1, %p3278_p8 }
 0x10b   : > { %p2794_p11 = pneg %p2793_p3 }
 0x10d   : > { %p2799_p13 = pnand %p2797_p12, %p2794_p11 }
 0x10f   : > { %2802 = shalt.err (!%p2799_p13)
}
 0x110   : > { %s2803_s26 = scalar_lea.vmem %s510_s16, 1024  ;;  %p2811_p7 = scmp.lt.s32.totalorder %s510_s16, %s510_s16 }
 0x111   : > { %p2804_p0 = scmp.ne.s32.totalorder %s510_s16, %s2803_s26  ;;  %p2812_p9 = scmp.lt.s32.totalorder %s2803_s26, %s2803_s26 }
 0x113   : > { %p2806_p2 = pnand %p2804_p0, %p3278_p8  ;;  %p2813_p5 = por %p2812_p9, %p2811_p7 }
 0x115   : > { %p2807_p4 = pneg %p2806_p2 }
 0x117   : > { %p2814_p10 = pnand %p2813_p5, %p2807_p4 }
 0x119   : > { %2817 = shalt.err (!%p2814_p10)
}
 0x11a   : > { %s3121_s2 = smov 128   ;;  %s3122_s0 = smov 8  }
 0x11b   : > { %2387 = dma.hbm_to_vmem [thread:$0]  (!%p3262_p6), %s3925_s8, 1024, %s510_s16, [#allocation17], %s3121_s2, %s3121_s2, %s3122_s0  }
 0x11c   : > { %s3123_s14 = smov [#allocation21]   ;;  %s3124_s30 = smov [#allocation24]  }
 0x11d   : > { %s533_s27 = sshll.u32 %s3123_s14, 4  ;;  %s558_s17 = sshll.u32 %s3124_s30, 4  ;;  %s534_s27 = int_to_ptr.vmem [resolvable:$true] %s533_s27  ;;  %s559_s17 = int_to_ptr.vmem [resolvable:$true] %s558_s17 }
 0x11e   : > { %s3926_s10 = sld [smem:[#allocation56_spill]] }
 0x124   : > { %s2818_s24 = scalar_lea.hbm %s3926_s10, 2048 }
 0x125   : > { %p2819_p1 = scmp.ne.s32.totalorder %s3926_s10, %s2818_s24  ;;  %p2825_p12 = scmp.lt.u32.totalorder %s2818_s24, %s3926_s10 }
 0x127   : > { %p2821_p3 = pnand %p2819_p1, %p3278_p8 }
 0x129   : > { %p2822_p11 = pneg %p2821_p3 }
 0x12b   : > { %p2827_p13 = pnand %p2825_p12, %p2822_p11 }
 0x12d   : > { %2830 = shalt.err (!%p2827_p13)
}
 0x12e   : > { %s2831_s16 = scalar_lea.vmem %s534_s27, 2048  ;;  %p2839_p7 = scmp.lt.s32.totalorder %s534_s27, %s534_s27 }
 0x12f   : > { %p2832_p0 = scmp.ne.s32.totalorder %s534_s27, %s2831_s16  ;;  %p2840_p9 = scmp.lt.s32.totalorder %s2831_s16, %s2831_s16 }
 0x131   : > { %p2834_p2 = pnand %p2832_p0, %p3278_p8  ;;  %p2841_p5 = por %p2840_p9, %p2839_p7 }
 0x133   : > { %p2835_p4 = pneg %p2834_p2 }
 0x135   : > { %p2842_p10 = pnand %p2841_p5, %p2835_p4 }
 0x137   : > { %2845 = shalt.err (!%p2842_p10)
}
 0x138   : > { %s3927_s21 = smov 4   ;;  %s3928_s2 = smov 64  }
 0x139   : > { %2393 = dma.hbm_to_vmem [thread:$0]  (!%p3262_p6), %s3926_s10, 2048, %s534_s27, [#allocation20], %s3928_s2, %s3928_s2, %s3927_s21  }
 0x13a   : > { %s2846_s29 = scalar_lea.hbm %s3876_s12, 16 }
 0x13b   : > { %p2847_p1 = scmp.ne.s32.totalorder %s3876_s12, %s2846_s29  ;;  %p2853_p12 = scmp.lt.u32.totalorder %s2846_s29, %s3876_s12 }
 0x13d   : > { %p2849_p3 = pnand %p2847_p1, %p3278_p8 }
 0x13f   : > { %p2850_p11 = pneg %p2849_p3 }
 0x141   : > { %p2855_p13 = pnand %p2853_p12, %p2850_p11 }
 0x143   : > { %2858 = shalt.err (!%p2855_p13)
}
 0x144   : > { %s2859_s24 = scalar_lea.vmem %s559_s17, 16  ;;  %s2866_s27 = scalar_lea.vmem %s559_s17, 32 }
 0x145   : > { %p2860_p0 = scmp.ne.s32.totalorder %s559_s17, %s2859_s24  ;;  %p2867_p7 = scmp.lt.s32.totalorder %s559_s17, %s559_s17 }
 0x146   : > { %p2868_p9 = scmp.lt.s32.totalorder %s2866_s27, %s2859_s24 }
 0x147   : > { %p2862_p2 = pnand %p2860_p0, %p3278_p8 }
 0x148   : > { %p2869_p5 = por %p2868_p9, %p2867_p7 }
 0x149   : > { %p2863_p4 = pneg %p2862_p2 }
 0x14b   : > { %p2870_p10 = pnand %p2869_p5, %p2863_p4 }
 0x14d   : > { %2873 = shalt.err (!%p2870_p10)
}
 0x14e   : > { %2399 = dma.hbm_to_vmem [thread:$0]  (!%p3262_p6), %s3876_s12, 16, %s559_s17, [#allocation23]  }
 0x14f   : > { %s3125_s3 = smov [#allocation25]   ;;  %s2874_s29 = scalar_lea.hbm %s3877_s13, 16 }
 0x150   : > { %s569_s15 = sshll.u32 %s3125_s3, 4  ;;  %p2875_p1 = scmp.ne.s32.totalorder %s3877_s13, %s2874_s29  ;;  %s570_s15 = int_to_ptr.vmem [resolvable:$true] %s569_s15 }
 0x151   : > { %p2881_p12 = scmp.lt.u32.totalorder %s2874_s29, %s3877_s13 }
 0x152   : > { %p2877_p3 = pnand %p2875_p1, %p3278_p8 }
 0x154   : > { %p2878_p11 = pneg %p2877_p3 }
 0x156   : > { %p2883_p13 = pnand %p2881_p12, %p2878_p11 }
 0x158   : > { %2886 = shalt.err (!%p2883_p13)
}
 0x159   : > { %s2887_s17 = scalar_lea.vmem %s570_s15, 16  ;;  %s2894_s24 = scalar_lea.vmem %s570_s15, 32 }
 0x15a   : > { %p2888_p0 = scmp.ne.s32.totalorder %s570_s15, %s2887_s17  ;;  %p2895_p7 = scmp.lt.s32.totalorder %s570_s15, %s570_s15 }
 0x15b   : > { %p2896_p9 = scmp.lt.s32.totalorder %s2894_s24, %s2887_s17 }
 0x15c   : > { %p2890_p2 = pnand %p2888_p0, %p3278_p8 }
 0x15d   : > { %p2897_p5 = por %p2896_p9, %p2895_p7 }
 0x15e   : > { %p2891_p4 = pneg %p2890_p2 }
 0x160   : > { %p2898_p10 = pnand %p2897_p5, %p2891_p4 }
 0x162   : > { %2901 = shalt.err (!%p2898_p10)
}
 0x163   : > { %s3929_s16 = sld [smem:[#allocation42_spill]]  ;;  %s3930_s1 = sld [smem:[#allocation41_spill]] }
 0x164   : > { %s3931_s3 = sld [smem:[#allocation44_spill]]  ;;  %s2070_s0 = sadd.s32 4294967294, %s3108_s23  }
 0x165   : > { %2402 = dma.hbm_to_vmem [thread:$0]  (!%p3262_p6), %s3877_s13, 16, %s570_s15, [#allocation26]  }
 0x166   : > { %s56_s18 = sadd.s32 1, %s3104_s22  ;;  %s65_s28 = sadd.s32 1, %s3096_s20 }
 0x167   : > { %p58_p8 = scmp.ge.s32.totalorder %s56_s18, 2  ;;  %p73_p3 = scmp.eq.s32.totalorder %s3108_s23, 0 }
 0x168   : > { %p388_p7 = scmp.eq.s32.totalorder %s2070_s0, 1  ;;  %p2429_p5 = scmp.lt.s32.totalorder %s3108_s23, 2 }
 0x169   : > { %p72_p1 = scmp.ne.s32.totalorder %s3096_s20, %s3929_s16  ;;  %s3975_s18 = smov (%p58_p8, %s56_s18), 0 }
 0x16a   : > { %p78_p12 = scmp.ne.s32.totalorder %s3929_s16, %s3930_s1  ;;  %s60_s15 = ssub.s32 %s3104_s22, %s3975_s18 }
 0x16b   : > { %p3526_p11 = por %p73_p3, %p72_p1  ;;  %p382_p6 = scmp.eq.s32.totalorder %s3931_s3, 1 }
 0x16c   : > { %p63_p13 = scmp.eq.s32.totalorder %s60_s15, 0  ;;  %p3933_p0 = scmp.eq.s32.totalorder %s3931_s3, 0 }
 0x16d   : > { %p3541_p4 = por %p382_p6, %p72_p1  ;;  %p3548_p9 = por %p388_p7, %p78_p12 }
 0x16e   : > { %p3537_p2 = por %p3933_p0, %p78_p12  ;;  %s580_s17 = sand.u32 1, %s3096_s20  }
 0x16f   : > { %s3935_s30 = scalar_select %p3541_p4, 1, 0 }
 0x170   : > { %s3546_s19 = scalar_select %p63_p13, %s3096_s20, %s65_s28  }
 0x171   : > { %s3936_s25 = scalar_select %p3548_p9, 1, 0 }
 0x172   : > { %s2086_s24 = sshll.u32 %s3104_s22, 7  ;;  %s3555_s27 = sshll.u32 %s580_s17, 3 }
 0x173   : > { %s3937_s1 = sld [smem:[#allocation46_spill]]  ;;  %s584_s0 = scalar_lea.vmem [#allocation4], %s3555_s27 }
 0x174   : > { %s592_s28 = sshll.u32 %s584_s0, 4  ;;  %p3565_p10 = pnand %p2429_p5, %p3526_p11  ;;  %s3569_s28 = int_to_ptr.vmem [resolvable:$true] %s592_s28 }
 0x175   : > { %s3939_s16 = sld [smem:[#allocation47_spill]]  ;;  %s581_s6 = scalar_lea.sflag [#allocation5], %s580_s17 }
 0x176   : > { %p2904_p1 = pneg %p3565_p10 }
 0x179   : > { %s3560_s3 = scalar_lea.hbm %s3937_s1, %s2086_s24  ;;  %s2907_s8 = scalar_lea.hbm %s3937_s1, 256 }
 0x17a   : > { %s2902_s7 = scalar_lea.hbm %s3560_s3, 128  ;;  %p2908_p12 = scmp.lt.u32.totalorder %s3560_s3, %s3937_s1 }
 0x17b   : > { %s3574_s5 = scalar_lea.hbm %s3939_s16, %s2086_s24  ;;  %p2903_p8 = scmp.ne.s32.totalorder %s3560_s3, %s2902_s7 }
 0x17c   : > { %p2909_p6 = scmp.lt.u32.totalorder %s2907_s8, %s2902_s7  ;;  %p2911_p0 = scmp.lt.u32.totalorder %s2902_s7, %s3560_s3 }
 0x17d   : > { %p2905_p3 = pnand %p2904_p1, %p2903_p8 }
 0x17e   : > { %p2910_p13 = por %p2909_p6, %p2908_p12 }
 0x17f   : > { %p2906_p11 = pneg %p2905_p3 }
 0x180   : > { %p2912_p7 = por %p2911_p0, %p2910_p13 }
 0x182   : > { %p2913_p5 = pnand %p2912_p7, %p2906_p11 }
 0x184   : > { %2916 = shalt.err (!%p2913_p5)
}
 0x185   : > { %s2917_s4 = scalar_lea.vmem %s3569_s28, 128  ;;  %s3126_s17 = smov [#allocation4]  }
 0x186   : > { %p2918_p8 = scmp.ne.s32.totalorder %s3569_s28, %s2917_s4  ;;  %s2922_s24 = sshll.u32 %s3126_s17, 4  ;;  %s2923_s24 = int_to_ptr.vmem [resolvable:$false] %s2922_s24 }
 0x187   : > { %s2924_s9 = scalar_lea.vmem %s2923_s24, 256  ;;  %p2925_p4 = scmp.lt.s32.totalorder %s3569_s28, %s2923_s24 }
 0x188   : > { %p2920_p3 = pnand %p2918_p8, %p2904_p1  ;;  %p2926_p12 = scmp.lt.s32.totalorder %s2924_s9, %s2917_s4 }
 0x18a   : > { %p2921_p9 = pneg %p2920_p3  ;;  %p2927_p6 = por %p2926_p12, %p2925_p4 }
 0x18c   : > { %p2928_p13 = pnand %p2927_p6, %p2921_p9 }
 0x18e   : > { %2931 = shalt.err (!%p2928_p13)
}
 0x18f   : > { %2406 = dma.hbm_to_vmem [thread:$0]  (!%p3565_p10), %s3560_s3, 128, %s3569_s28, %s581_s6  }
 0x190   : > { %s603_s7 = scalar_lea.vmem [#allocation7], %s3555_s27  ;;  %s599_s10 = sand.u32 1, %s3108_s23  }
 0x191   : > { %s610_s8 = sshll.u32 %s603_s7, 4  ;;  %s3605_s26 = scalar_lea.sflag [#allocation8], %s599_s10  ;;  %s3603_s8 = int_to_ptr.vmem [resolvable:$true] %s610_s8 }
 0x192   : > { %s2932_s29 = scalar_lea.hbm %s3574_s5, 128  ;;  %s2937_s17 = scalar_lea.hbm %s3939_s16, 256 }
 0x193   : > { %p2933_p4 = scmp.ne.s32.totalorder %s3574_s5, %s2932_s29  ;;  %p2938_p0 = scmp.lt.u32.totalorder %s3574_s5, %s3939_s16 }
 0x194   : > { %p2939_p7 = scmp.lt.u32.totalorder %s2937_s17, %s2932_s29  ;;  %p2941_p8 = scmp.lt.u32.totalorder %s2932_s29, %s3574_s5 }
 0x195   : > { %p2935_p9 = pnand %p2933_p4, %p2904_p1 }
 0x196   : > { %p2940_p5 = por %p2939_p7, %p2938_p0 }
 0x197   : > { %p2936_p11 = pneg %p2935_p9 }
 0x198   : > { %p2942_p3 = por %p2941_p8, %p2940_p5 }
 0x19a   : > { %p2943_p12 = pnand %p2942_p3, %p2936_p11 }
 0x19c   : > { %2946 = shalt.err (!%p2943_p12)
}
 0x19d   : > { %s2947_s6 = scalar_lea.vmem %s3603_s8, 128  ;;  %s3127_s27 = smov [#allocation7]  }
 0x19e   : > { %p2948_p6 = scmp.ne.s32.totalorder %s3603_s8, %s2947_s6  ;;  %s2952_s3 = sshll.u32 %s3127_s27, 4  ;;  %s2953_s3 = int_to_ptr.vmem [resolvable:$false] %s2952_s3 }
 0x19f   : > { %s2954_s28 = scalar_lea.vmem %s2953_s3, 256  ;;  %p2955_p9 = scmp.lt.s32.totalorder %s3603_s8, %s2953_s3 }
 0x1a0   : > { %p2950_p13 = pnand %p2948_p6, %p2904_p1  ;;  %p2956_p0 = scmp.lt.s32.totalorder %s2954_s28, %s2947_s6 }
 0x1a2   : > { %p2951_p4 = pneg %p2950_p13  ;;  %p2957_p7 = por %p2956_p0, %p2955_p9 }
 0x1a4   : > { %p2958_p5 = pnand %p2957_p7, %p2951_p4 }
 0x1a6   : > { %2961 = shalt.err (!%p2958_p5)
}
 0x1a7   : > { %2409 = dma.hbm_to_vmem [thread:$0]  (!%p3565_p10), %s3574_s5, 128, %s3603_s8, %s3605_s26, %s3928_s2, %s3928_s2, %s3927_s21  }
 0x1a8   : > { %s3940_s7 = sld [smem:[#allocation45_spill]] }
 0x1ae   : > { %p3941_p1 = scmp.ne.s32.totalorder %s3940_s7, 0 }
 0x1af   : > { %s3942_s10 = sld [smem:[#allocation42_spill]] (!%p3941_p1) }
 0x1b0   : > { %622 = sbr.rel (%p3941_p1) target bundleno = 2634 (0xa4a), region = 76 }
 0x1b5   : > { %s3637_s29 = sand.u32 (!%p3941_p1), 1, %s3942_s10  }
 0x1b6   : > { %s3640_s0 = sshll.u32 (!%p3941_p1), %s3637_s29, 3  ;;  %s625_s15 = scalar_lea.sflag (!%p3941_p1), [#allocation5], %s3637_s29 }
 0x1b7   : > { %s628_s4 = scalar_lea.vmem [#allocation4], %s3640_s0 }
 0x1b8   : > { %3043 = dma.done.wait (%p3537_p2), %s625_s15, 128  }
 0x1b9   : > { %3045 = vsyncadd (%p3537_p2), %s625_s15, 4294967168  ;;  %s3943_s5 = sld [smem:[#allocation44_spill]]  ;;  %s3650_s8 = scalar_lea.vmem [#allocation7], %s3640_s0 }
 0x1bf   : > { %s633_s21 = sand.u32 1, %s3943_s5  }
 0x1c0   : > { %s634_s2 = scalar_lea.sflag [#allocation8], %s633_s21 }
 0x1c1   : > { %3047 = dma.done.wait (%p3537_p2), %s634_s2, 128  }
 0x1c2   : > { %3049 = vsyncadd (%p3537_p2), %s634_s2, 4294967168  ;;  %p3944_p10 = scmp.eq.s32.totalorder %s3943_s5, 0 }
 0x1c4   : > { %3051 = dma.done.wait (%p3944_p10), [#allocation8], 256   ;;  %p3945_p11 = pmov %p3944_p10 }
 0x1c5   : > { %p3946_p8 = pmov %p3944_p10 }
 0x1c6   : > { %3053 = vsyncadd (%p3945_p11), [#allocation8], 4294967040 }
 0x1c7   : > { %3055 = dma.done.wait (%p3946_p8), [#allocation11], 512   ;;  %p3947_p3 = pmov %p3946_p8 }
 0x1c9   : > { %3057 = vsyncadd (%p3947_p3), [#allocation11], 4294966784  ;;  %p3948_p12 = pmov %p3947_p3 }
 0x1ca   : > { %p3949_p6 = pmov %p3947_p3 }
 0x1cb   : > { %3059 = dma.done.wait (%p3948_p12), [#allocation14], 528  }
 0x1cc   : > { %3061 = vsyncadd (%p3949_p6), [#allocation14], 4294966768  ;;  %p3950_p2 = pmov %p3947_p3 }
 0x1ce   : > { %3063 = dma.done.wait (%p3950_p2), [#allocation17], 1040   ;;  %p3951_p13 = pmov %p3950_p2 }
 0x1cf   : > { %p3952_p4 = pmov %p3950_p2 }
 0x1d0   : > { %3065 = vsyncadd (%p3951_p13), [#allocation17], 4294966256 }
 0x1d1   : > { %3067 = dma.done.wait (%p3952_p4), [#allocation20], 2080   ;;  %p3953_p9 = pmov %p3950_p2 }
 0x1d2   : > { %p3954_p0 = pmov %p3950_p2 }
 0x1d3   : > { %3069 = vsyncadd (%p3953_p9), [#allocation20], 4294965216 }
 0x1d4   : > { %3071 = dma.done.wait (%p3954_p0), [#allocation23], 32   ;;  %p3955_p7 = pmov %p3954_p0 }
 0x1d5   : > { %p3956_p5 = pmov %p3954_p0 }
 0x1d6   : > { %3073 = vsyncadd (%p3955_p7), [#allocation23], 4294967264 }
 0x1d7   : > { %3075 = dma.done.wait (%p3956_p5), [#allocation26], 16   ;;  %p3957_p1 = pmov %p3954_p0 }
 0x1d8   : > { %v3128_v0 = vmov 0.0   ;;  %vm3129_vm0 = vmmov 0   ;;  %v2512_v1 = vld [vmem:[#allocation10] sm:$0xff]   ;;  %v2513_v2 = vld [vmem:[#allocation10 + $0x8] sm:$0xff]   ;;  %v2514_v3 = vld [vmem:[#allocation12] sm:$0xff]   ;;  %vm769_vm1 = vcmask 261120  }
 0x1d9   : > { %3077 = vsyncadd (%p3957_p1), [#allocation26], 4294967280  ;;  %2222 = vmatprep.subr.bf16.mxu0 %v3128_v0  ;;  %2226 = vmatprep.mubr.msk.bf16.mxu0 %vm3129_vm0, %v3128_v0  ;;  %v2515_v4 = vld [vmem:[#allocation12 + $0x8] sm:$0xff]   ;;  %v747_v5 = vld [vmem:[%s3650_s8] sm:$0xf]  ;;  %vm858_vm2 = vcmask 257024  }
 0x1da   : > { %2246 = vmatprep.subr.bf16.mxu1 %v3128_v0  ;;  %2250 = vmatprep.mubr.msk.bf16.mxu1 %vm3129_vm0, %v3128_v0  ;;  %v2516_v6 = vld [vmem:[#allocation9] sm:$0xff]   ;;  %v748_v7 = vld [vmem:[%s3650_s8 + $0x4] sm:$0xf]  ;;  %v2517_v8 = vld [vmem:[#allocation9 + $0x8] sm:$0xff]   ;;  %vm1198_vm3 = vcmask 1043456   ;;  %vm1168_vm4 = vcmask 64512  }
 0x1db   : > { %2223 = vmatpush3.bf16.msra.mxu0 %v2512_v1  ;;  %2247 = vmatpush3.bf16.msra.mxu1 %v2514_v3  ;;  %v963_v9 = vld [vmem:[%s3650_s8 + $0x4] sm:$0xf]  ;;  %v962_v10 = vld [vmem:[%s3650_s8] sm:$0xf]  ;;  %vm1165_vm5 = vcmask 60416   ;;  %s3742_s14 = scalar_lea.vmem [#allocation28], %s3640_s0 }
 0x1dc   : > { %2224 = vmatprep.subr.bf16.mxu0 %v3128_v0  ;;  %2248 = vmatprep.subr.bf16.mxu1 %v3128_v0  ;;  %vm1412_vm6 = vcmask 523264   ;;  %s3958_s26 = sld [smem:[#allocation43_spill]]  ;;  %s3959_s6 = sld [smem:[#allocation58_spill]] }
 0x1dd   : > { %s1813_s3 = sshll.u32 %s3742_s14, 4  ;;  %s1785_s28 = scalar_lea.sflag [#allocation29], %s3637_s29  ;;  %s3782_s3 = int_to_ptr.vmem [resolvable:$true] %s1813_s3 }
 0x1de   : > { %s2962_s7 = scalar_lea.vmem %s3782_s3, 128  ;;  %p3960_p11 = scmp.ne.s32.totalorder %s3935_s30, 0 }
 0x1df   : > { %2225 = vmatpush3.bf16.msra.mxu0 %v2513_v2  ;;  %2249 = vmatpush3.bf16.msra.mxu1 %v2515_v4  ;;  %p2963_p10 = scmp.ne.s32.totalorder %s3782_s3, %s2962_s7  ;;  %s3131_s10 = smov [#allocation28]  }
 0x1e0   : > { %2230 = vmatprep.subr.bf16.mxu0 %v3128_v0  ;;  %2262 = vmatprep.subr.bf16.mxu1 %v3128_v0  ;;  %s2966_s15 = sshll.u32 %s3131_s10, 4  ;;  %s2967_s15 = int_to_ptr.vmem [resolvable:$false] %s2966_s15 }
 0x1e1   : > { %p2964_p8 = pnand %p2963_p10, %p3960_p11  ;;  %p2969_p12 = scmp.lt.s32.totalorder %s3782_s3, %s2967_s15 }
 0x1e2   : > { %2227 = vmatmul.mubr.msk.bf16.vlgmr.msra.gmra.mrb[0].mxu0 %vm769_vm1, %v747_v5  ;;  %2251 = vmatmul.mubr.msk.bf16.vlgmr.msra.gmra.mrb[0].mxu1 %vm769_vm1, %v748_v7  ;;  %s2161_s17 = sshll.u32 %s3958_s26, 7 }
 0x1e3   : > { %2231 = vmatpush3.bf16.msra.mxu0 %v2512_v1  ;;  %2234 = vmatprep.mubr.msk.bf16.mxu0 %vm3129_vm0, %v3128_v0  ;;  %s3779_s27 = scalar_lea.hbm %s3959_s6, %s2161_s17  ;;  %p2965_p3 = pneg %p2964_p8 }
 0x1e4   : > { %2232 = vmatprep.subr.bf16.mxu0 %v3128_v0  ;;  %2263 = vmatpush3.bf16.msra.mxu1 %v2516_v6 }
 0x1e5   : > { %2266 = vmatprep.mubr.msk.bf16.mxu1 %vm3129_vm0, %v3128_v0  ;;  %2264 = vmatprep.subr.bf16.mxu1 %v3128_v0 }
 0x1e7   : > { %2233 = vmatpush3.bf16.msra.mxu0 %v2513_v2 }
 0x1e8   : > { %2238 = vmatprep.subr.bf16.mxu0 %v3128_v0  ;;  %2265 = vmatpush3.bf16.msra.mxu1 %v2517_v8 }
 0x1e9   : > { %2276 = vmatprep.subr.bf16.mxu1 %v3128_v0 }
 0x1ea   : > { %2235 = vmatmul.mubr.msk.bf16.vlgmr.msra.gmra.mrb[4].mxu0 %vm769_vm1, %v748_v7 }
 0x1eb   : > { %2239 = vmatpush3.bf16.msra.mxu0 %v2514_v3  ;;  %2242 = vmatprep.mubr.msk.bf16.mxu0 %vm3129_vm0, %v3128_v0 }
 0x1ec   : > { %2240 = vmatprep.subr.bf16.mxu0 %v3128_v0  ;;  %2267 = vmatmul.mubr.msk.bf16.vlgmr.msra.gmra.mrb[4].mxu1 %vm769_vm1, %v963_v9 }
 0x1ed   : > { %2278 = vmatprep.mubr.msk.bf16.mxu1 %vm3129_vm0, %v3128_v0 }
 0x1ef   : > { %2241 = vmatpush3.bf16.msra.mxu0 %v2515_v4 }
 0x1f0   : > { %2254 = vmatprep.subr.bf16.mxu0 %v3128_v0 }
 0x1f2   : > { %2243 = vmatmul.mubr.msk.bf16.vlgmr.msra.gmra.mrb[8].mxu0 %vm769_vm1, %v747_v5 }
 0x1f3   : > { %2255 = vmatpush3.bf16.msra.mxu0 %v2516_v6  ;;  %2258 = vmatprep.mubr.msk.bf16.mxu0 %vm3129_vm0, %v3128_v0 }
 0x1f4   : > { %2256 = vmatprep.subr.bf16.mxu0 %v3128_v0 }
 0x1f7   : > { %2257 = vmatpush3.bf16.msra.mxu0 %v2517_v8 }
 0x1f8   : > { %2270 = vmatprep.subr.bf16.mxu0 %v3128_v0 }
 0x1fa   : > { %2259 = vmatmul.mubr.msk.bf16.vlgmr.msra.gmra.mrb[12].mxu0 %vm769_vm1, %v962_v10 }
 0x1fb   : > { %2272 = vmatprep.mubr.msk.bf16.mxu0 %vm3129_vm0, %v3128_v0 }
 0x2b5   : > { %v807_v11 = vpop.f32.mrb[0].mxu0  ;;  %v947_v16 = vpop.f32.mrb[0].mxu1 }
 0x2b6   : > { %v856_v12 = vpack.c.bf16 %v807_v11, %v807_v11  ;;  %v2228_v13 = vpop.f32.mrb[1].mxu0  ;;  %v954_v17 = vpack.c.bf16 %v947_v16, %v947_v16  ;;  %v2252_v18 = vpop.f32.mrb[1].mxu1 }
 0x2b7   : > { %v810_v14 = vpop.f32.mrb[2].mxu0  ;;  %v950_v19 = vpop.f32.mrb[2].mxu1  ;;  %v2519_v13 = vld [vmem:[#allocation13 + $0x8] sm:$0xff]  }
 0x2b8   : > { %859 = vst.msk [vmem:[#allocation2] sm:$0xf] %vm858_vm2, %v856_v12  ;;  %v2229_v15 = vpop.f32.mrb[3].mxu0  ;;  %956 = vst.msk [vmem:[#allocation3 + $0x4] sm:$0xf] %vm858_vm2, %v954_v17  ;;  %v2253_v20 = vpop.f32.mrb[3].mxu1 }
 0x2b9   : > { %v2518_v12 = vld [vmem:[#allocation13] sm:$0xff]   ;;  %v2520_v14 = vld [vmem:[#allocation13 + $0x10] sm:$0xff]   ;;  %v2521_v15 = vld [vmem:[#allocation13 + $0x18] sm:$0xff]  }
 0x2bd   : > { %v850_v21 = vpop.f32.mrb[4].mxu0 }
 0x2be   : > { %v857_v22 = vpack.c.bf16 %v850_v21, %v850_v21  ;;  %v2236_v23 = vpop.f32.mrb[5].mxu0 }
 0x2bf   : > { %v853_v24 = vpop.f32.mrb[6].mxu0  ;;  %v1069_v25 = vld [vmem:[#allocation2] sm:$0xf]  ;;  %v1061_v28 = vpop.f32.mrb[4].mxu1  ;;  %v1194_v39 = vld [vmem:[#allocation3 + $0x4] sm:$0xf] }
 0x2c0   : > { %860 = vst.msk [vmem:[#allocation2 + $0x4] sm:$0xf] %vm858_vm2, %v857_v22  ;;  %v2237_v26 = vpop.f32.mrb[7].mxu0  ;;  %v1075_v27 = vsel %vm769_vm1, %v1069_v25, 0  ;;  %v2268_v29 = vpop.f32.mrb[5].mxu1  ;;  %v1068_v40 = vpack.c.bf16 %v1061_v28, %v1061_v28  ;;  %v1246_v44 = vsel %vm1198_vm3, %v1194_v39, 0 }
 0x2c1   : > { %2271 = vmatpush3.bf16.xpose.msra.mxu0 %v1075_v27  ;;  %v1064_v30 = vpop.f32.mrb[6].mxu1  ;;  %v1416_v39 = vld [vmem:[%s628_s4] sm:$0xff]  ;;  %s2968_s4 = scalar_lea.vmem %s2967_s15, 256 }
 0x2c2   : > { %2282 = vmatprep.subr.bf16.mxu0 %v3128_v0  ;;  %v2269_v31 = vpop.f32.mrb[7].mxu1  ;;  %p2970_p6 = scmp.lt.s32.totalorder %s2968_s4, %s2962_s7 }
 0x2c4   : > { %p2971_p2 = por %p2970_p6, %p2969_p12 }
 0x2c5   : > { %v907_v32 = vpop.f32.mrb[8].mxu0 }
 0x2c6   : > { %v953_v33 = vpack.c.bf16 %v907_v32, %v907_v32  ;;  %v2244_v34 = vpop.f32.mrb[9].mxu0  ;;  %p2972_p13 = pnand %p2971_p2, %p2965_p3 }
 0x2c7   : > { %v910_v35 = vpop.f32.mrb[10].mxu0  ;;  %v1070_v36 = vld [vmem:[#allocation2 + $0x4] sm:$0xf] }
 0x2c8   : > { %955 = vst.msk [vmem:[#allocation3] sm:$0xf] %vm858_vm2, %v953_v33  ;;  %v2245_v37 = vpop.f32.mrb[11].mxu0  ;;  %v1121_v38 = vsel %vm769_vm1, %v1070_v36, 0 }
 0x2c9   : > { %2277 = vmatpush3.bf16.xpose.msra.mxu1 %v1121_v38 }
 0x2ca   : > { %2288 = vmatprep.subr.bf16.mxu1 %v3128_v0 }
 0x2cd   : > { %v1018_v41 = vpop.f32.mrb[12].mxu0 }
 0x2ce   : > { %v1067_v42 = vpack.c.bf16 %v1018_v41, %v1018_v41  ;;  %v2260_v43 = vpop.f32.mrb[13].mxu0 }
 0x2cf   : > { %v1021_v45 = vpop.f32.mrb[14].mxu0  ;;  %v1193_v46 = vld [vmem:[#allocation3] sm:$0xf] }
 0x2d0   : > { %v2261_v47 = vpop.f32.mrb[15].mxu0  ;;  %2273 = vmatmul.mubr.msk.bf16.vlgmr.msra.gmra.mrb[16].mxu0 %vm769_vm1, %v1067_v42  ;;  %2279 = vmatmul.mubr.msk.bf16.vlgmr.msra.gmra.mrb[8].mxu1 %vm769_vm1, %v1068_v40  ;;  %v1200_v48 = vsel %vm1198_vm3, %v1193_v46, 0 }
 0x2d1   : > { %2283 = vmatpush3.bf16.msra.mxu0 %v1200_v48  ;;  %2289 = vmatpush3.bf16.msra.mxu1 %v1246_v44 }
 0x2d2   : > { %2284 = vmatprep.mubr.msk.bf16.mxu0 %vm3129_vm0, %v3128_v0  ;;  %2290 = vmatprep.mubr.msk.bf16.mxu1 %vm3129_vm0, %v3128_v0 }
 0x2d3   : > { %2294 = vmatprep.subr.bf16.mxu0 %v3128_v0  ;;  %2302 = vmatprep.subr.bf16.mxu1 %v3128_v0 }
 0x3a3   : > { %v1111_v49 = vpop.f32.mrb[16].mxu0  ;;  %v1157_v50 = vpop.f32.mrb[8].mxu1 }
 0x3a4   : > { %v1163_v51 = vpack.c.bf16 %v1111_v49, %v1111_v49  ;;  %v2274_v52 = vpop.f32.mrb[17].mxu0  ;;  %v1164_v53 = vpack.c.bf16 %v1157_v50, %v1157_v50  ;;  %v1169_v54 = vsel %vm1168_vm4, %v1111_v49, -inf  ;;  %v2280_v55 = vpop.f32.mrb[9].mxu1  ;;  %v1172_v60 = vsel %vm1168_vm4, %v1157_v50, -inf }
 0x3a5   : > { %1170 = vmax.xlane.f32.xlu0 %v1169_v54  ;;  %v1114_v56 = vpop.f32.mrb[18].mxu0  ;;  %v1160_v57 = vpop.f32.mrb[10].mxu1  ;;  %v2527_v52 = vld [vmem:[#allocation18 + $0x14] ss:$8 sps:$4 sm:$0xff]   ;;  %v2530_v54 = vld [vmem:[#allocation18 + $0x24] ss:$8 sps:$4 sm:$0xff]  }
 0x3a6   : > { %1166 = vst.msk [vmem:[%s3742_s14] sm:$0xf] %vm1165_vm5, %v1163_v51  ;;  %1167 = vst.msk [vmem:[%s3742_s14 + $0x4] sm:$0xf] %vm1165_vm5, %v1164_v53  ;;  %v2275_v58 = vpop.f32.mrb[19].mxu0  ;;  %v2281_v59 = vpop.f32.mrb[11].mxu1 }
 0x3a7   : > { %v2522_v51 = vld [vmem:[#allocation18] ss:$8 sps:$4 sm:$0xff]   ;;  %v2525_v53 = vld [vmem:[#allocation18 + $0x10] ss:$8 sps:$4 sm:$0xff]   ;;  %v2533_v57 = vld [vmem:[#allocation18 + $0x34] ss:$8 sps:$4 sm:$0xff]  }
 0x3a8   : > { %v2528_v55 = vld [vmem:[#allocation18 + $0x20] ss:$8 sps:$4 sm:$0xff]   ;;  %v2531_v56 = vld [vmem:[#allocation18 + $0x30] ss:$8 sps:$4 sm:$0xff]   ;;  %v3130_v58 = vmov 0  }
 0x3a9   : > { %1173 = vmax.xlane.f32.xlu0 %v1172_v60 }
 0x432   : > { %v1171_v61 = vpop.xlane.xlu0 %1170 }
 0x433   : > { %v1175_v62 = vsub.f32 %v1111_v49, %v1171_v61 }
 0x435   : > { %v1177_v63 = vpack.c.bf16 %v1175_v62, %v1175_v62 }
 0x436   : > { %v1174_v1 = vpop.xlane.xlu0 %1173 }
 0x437   : > { %v1180_v2 = vmul.bf16 1069105081, %v1177_v63  ;;  %v1176_v3 = vsub.f32 %v1157_v50, %v1174_v1  ;;  %v2524_v50 = vld [vmem:[#allocation18 + $0x4] ss:$8 sps:$4 sm:$0xff]   ;;  %v2129_v63 = vld [vmem:[#allocation15] ss:$0 sm:$0xff] }
 0x439   : > { %2550 = vpow.bf16 %v1180_v2  ;;  %v1178_v4 = vpack.c.bf16 %v1176_v3, %v1176_v3  ;;  %v2130_v2 = vld [vmem:[#allocation16] ss:$0 sm:$0xff] }
 0x43b   : > { %v1183_v5 = vmul.bf16 1069105081, %v1178_v4 }
 0x43d   : > { %2552 = vpow.bf16 %v1183_v5 }
 0x444   : > { %v2551_v6 = vpop.eup %2550 }
 0x445   : > { %2285 = vmatmul.mubr.msk.bf16.vlgmr.msra.gmra.mrb[20].mxu0 %vm1168_vm4, %v2551_v6  ;;  %v1185_v7 = vunpack.c.l.bf16 %v2551_v6  ;;  %v2534_v6 = vld [vmem:[#allocation21 + $0x40] sm:$0xff]  }
 0x446   : > { %2298 = vmatprep.mubr.msk.bf16.mxu0 %vm3129_vm0, %v3128_v0  ;;  %2295 = vmatpush3.bf16.msra.mxu0 %v2518_v12  ;;  %v2540_v12 = vld [vmem:[#allocation21 + $0x58] sm:$0xff]  }
 0x447   : > { %v1187_v8 = vsel %vm1168_vm4, %v1185_v7, 0.0  ;;  %2296 = vmatprep.subr.bf16.mxu0 %v3128_v0  ;;  %v2535_v7 = vld [vmem:[#allocation21] sm:$0xff]  }
 0x448   : > { %v2553_v9 = vpop.eup %2552  ;;  %1188 = vadd.xlane.f32.xlu1 %v1187_v8  ;;  %v2536_v8 = vld [vmem:[#allocation21 + $0x48] sm:$0xff]  }
 0x449   : > { %2291 = vmatmul.mubr.msk.bf16.vlgmr.msra.gmra.mrb[12].mxu1 %vm1168_vm4, %v2553_v9  ;;  %v1186_v10 = vunpack.c.l.bf16 %v2553_v9  ;;  %v2537_v9 = vld [vmem:[#allocation21 + $0x8] sm:$0xff]  }
 0x44a   : > { %2306 = vmatprep.mubr.msk.bf16.mxu1 %vm3129_vm0, %v3128_v0  ;;  %2297 = vmatpush3.bf16.msra.mxu0 %v2519_v13  ;;  %v2541_v13 = vld [vmem:[#allocation21 + $0x18] sm:$0xff]  }
 0x44b   : > { %v1190_v11 = vsel %vm1168_vm4, %v1186_v10, 0.0  ;;  %2303 = vmatpush3.bf16.msra.mxu1 %v2520_v14  ;;  %1512 = vmatprep.subr.bf16.mxu0 %v2524_v50  ;;  %v2538_v10 = vld [vmem:[#allocation21 + $0x50] sm:$0xff]   ;;  %v2542_v14 = vld [vmem:[#allocation21 + $0x60] sm:$0xff]  }
 0x44c   : > { %1191 = vadd.xlane.f32.xlu1 %v1190_v11  ;;  %2304 = vmatprep.subr.bf16.mxu1 %v3128_v0  ;;  %v2539_v11 = vld [vmem:[#allocation21 + $0x10] sm:$0xff]  }
 0x44f   : > { %2305 = vmatpush3.bf16.msra.mxu1 %v2521_v15  ;;  %v2543_v15 = vld [vmem:[#allocation21 + $0x20] sm:$0xff]  }
 0x450   : > { %2200 = vmatprep.subr.bf16.mxu1 %v2534_v6 }
 0x4d5   : > { %v1189_v16 = vpop.xlane.xlu1 %1188 }
 0x4d6   : > { %2554 = vrcp.f32 %v1189_v16  ;;  %v2544_v16 = vld [vmem:[#allocation21 + $0x68] sm:$0xff]  }
 0x4d9   : > { %v1192_v17 = vpop.xlane.xlu1 %1191 }
 0x4da   : > { %2556 = vrcp.f32 %v1192_v17  ;;  %v2545_v17 = vld [vmem:[#allocation21 + $0x28] sm:$0xff]  }
 0x4e0   : > { %v2555_v18 = vpop.eup %2554 }
 0x4e4   : > { %v2557_v25 = vpop.eup %2556 }
 0x518   : > { %v1236_v19 = vpop.f32.mrb[20].mxu0 }
 0x519   : > { %v1290_v20 = vmul.f32 %v2555_v18, %v1236_v19  ;;  %v2286_v21 = vpop.f32.mrb[21].mxu0  ;;  %v2546_v18 = vld [vmem:[#allocation21 + $0x70] sm:$0xff]  }
 0x51a   : > { %v1239_v22 = vpop.f32.mrb[22].mxu0  ;;  %v2547_v19 = vld [vmem:[#allocation21 + $0x30] sm:$0xff]   ;;  %v2549_v21 = vld [vmem:[#allocation21 + $0x38] sm:$0xff]  }
 0x51b   : > { %v1292_v23 = vpack.c.bf16 %v1290_v20, %v1290_v20  ;;  %v2287_v24 = vpop.f32.mrb[23].mxu0  ;;  %v2548_v20 = vld [vmem:[#allocation21 + $0x78] sm:$0xff]   ;;  %v1459_v22 = vlaneseq }
 0x51c   : > { %v1282_v26 = vpop.f32.mrb[12].mxu1 }
 0x51d   : > { %v1291_v27 = vmul.f32 %v2557_v25, %v1282_v26  ;;  %v2292_v28 = vpop.f32.mrb[13].mxu1  ;;  %2299 = vmatmul.mubr.msk.bf16.vlgmr.msra.gmra.mrb[24].mxu0 %vm769_vm1, %v1292_v23  ;;  %v1460_v23 = vshrl.u32 %v1459_v22, 7  ;;  %v1457_v25 = vld [vmem:[#allocation19] sm:$0x3] }
 0x51e   : > { %v1285_v0 = vpop.f32.mrb[14].mxu1  ;;  %1513 = vmatpush1.bf16.msra.mxu0 %v2522_v51  ;;  %1544 = vmatprep.mubr.bf16.mxu0 %v3130_v58 }
 0x51f   : > { %v1293_v29 = vpack.c.bf16 %v1291_v27, %v1291_v27  ;;  %v2293_v30 = vpop.f32.mrb[15].mxu1  ;;  %1514 = vmatprep.subr.bf16.mxu0 %v2527_v52  ;;  %v1461_v24 = vsub.s32 0, %v1460_v23  ;;  %v1465_v26 = vsub.s32 1, %v1460_v23 }
 0x521   : > { %2307 = vmatmul.mubr.msk.bf16.vlgmr.msra.gmra.mrb[16].mxu1 %vm769_vm1, %v1293_v29  ;;  %v1462_v27 = vrot.slane %v1457_v25, %v1461_v24  ;;  %v1466_v28 = vrot.slane %v1457_v25, %v1465_v26 }
 0x522   : > { %1515 = vmatpush1.bf16.msra.mxu0 %v2525_v53  ;;  %2201 = vmatpush3.bf16.msra.mxu1 %v2535_v7 }
 0x523   : > { %1516 = vmatprep.subr.bf16.mxu0 %v2530_v54  ;;  %2202 = vmatprep.subr.bf16.mxu1 %v2536_v8 }
 0x526   : > { %1517 = vmatpush1.bf16.msra.mxu0 %v2528_v55  ;;  %2203 = vmatpush3.bf16.msra.mxu1 %v2537_v9  ;;  %v2140_v55 = vld [vmem:[#allocation22] ss:$0 sm:$0xff] }
 0x527   : > { %1518 = vmatprep.subr.bf16.mxu0 %v2533_v57  ;;  %2204 = vmatprep.subr.bf16.mxu1 %v2538_v10 }
 0x52a   : > { %1519 = vmatpush1.bf16.msra.mxu0 %v2531_v56  ;;  %2205 = vmatpush3.bf16.msra.mxu1 %v2539_v11 }
 0x52b   : > { %2206 = vmatprep.subr.bf16.mxu1 %v2540_v12 }
 0x52e   : > { %2207 = vmatpush3.bf16.msra.mxu1 %v2541_v13 }
 0x52f   : > { %2208 = vmatprep.subr.bf16.mxu1 %v2542_v14 }
 0x532   : > { %2209 = vmatpush3.bf16.msra.mxu1 %v2543_v15 }
 0x533   : > { %2210 = vmatprep.subr.bf16.mxu1 %v2544_v16 }
 0x536   : > { %2211 = vmatpush3.bf16.msra.mxu1 %v2545_v17 }
 0x537   : > { %2212 = vmatprep.subr.bf16.mxu1 %v2546_v18 }
 0x53a   : > { %2213 = vmatpush3.bf16.msra.mxu1 %v2547_v19 }
 0x53b   : > { %2214 = vmatprep.subr.bf16.mxu1 %v2548_v20 }
 0x53e   : > { %2215 = vmatpush3.bf16.msra.mxu1 %v2549_v21 }
 0x5f0   : > { %v1351_v31 = vpop.f32.mrb[24].mxu0 }
 0x5f1   : > { %v2300_v32 = vpop.f32.mrb[25].mxu0  ;;  %v1413_v36 = vsel %vm1412_vm6, %v1351_v31, 0.0 }
 0x5f2   : > { %v1354_v33 = vpop.f32.mrb[26].mxu0 }
 0x5f3   : > { %v2301_v34 = vpop.f32.mrb[27].mxu0 }
 0x5f4   : > { %v1406_v35 = vpop.f32.mrb[16].mxu1 }
 0x5f5   : > { %v1414_v37 = vsel %vm1412_vm6, %v1406_v35, 0.0  ;;  %v2308_v38 = vpop.f32.mrb[17].mxu1 }
 0x5f6   : > { %v1415_v40 = vadd.f32 %v1414_v37, %v1413_v36  ;;  %v1409_v41 = vpop.f32.mrb[18].mxu1 }
 0x5f7   : > { %v2309_v42 = vpop.f32.mrb[19].mxu1 }
 0x5f8   : > { %v1417_v43 = vadd.f32 %v1416_v39, %v1415_v40 }
 0x5fa   : > { %v1420_v44 = vsel %vm1412_vm6, %v1417_v43, 0.0 }
 0x5fb   : > { %1421 = vadd.xlane.f32.xlu0 %v1420_v44 }
 0x688   : > { %v1422_v45 = vpop.xlane.xlu0 %1421 }
 0x689   : > { %v1424_v46 = vmul.f32 0.015625, %v1422_v45 }
 0x68b   : > { %v1425_v47 = vsub.f32 %v1417_v43, %v1424_v46 }
 0x68d   : > { %v1426_v48 = vmul.f32 %v1425_v47, %v1425_v47 }
 0x68f   : > { %v1427_v49 = vsel %vm1412_vm6, %v1426_v48, 0.0 }
 0x690   : > { %1428 = vadd.xlane.f32.xlu1 %v1427_v49 }
 0x71d   : > { %v1429_v59 = vpop.xlane.xlu1 %1428 }
 0x71e   : > { %v1430_v60 = vmul.f32 0.015625, %v1429_v59 }
 0x720   : > { %v1431_v61 = vadd.f32 1e-05, %v1430_v60 }
 0x722   : > { %2558 = vrsqrt.f32 %v1431_v61 }
 0x72c   : > { %v2559_v62 = vpop.eup %2558 }
 0x72d   : > { %v1433_v1 = vmul.f32 %v2559_v62, %v1425_v47 }
 0x72f   : > { %v1440_v3 = vmul.f32 %v2129_v63, %v1433_v1 }
 0x731   : > { %v3765_v4 = vadd.f32 %v2130_v2, %v1440_v3 }
 0x733   : > { %v1448_v5 = vpack.c.bf16 %v3765_v4, %v3765_v4 }
 0x735   : > { %2139 = vmatmul.mubr.msk.bf16.vlgmr.msra.gmra.mrb[28].mxu0 %vm1412_vm6, %v1448_v5 }
 0x808   : > { %v1546_v0 = vpop.f32.mrb[28].mxu0 }
 0x809   : > { %v1547_v29 = vadd.f32 %v1546_v0, %v1462_v27  ;;  %v1548_v30 = vpop.f32.mrb[29].mxu0 }
 0x80a   : > { %v1549_v31 = vadd.f32 %v1548_v30, %v1466_v28  ;;  %v1550_v32 = vpop.f32.mrb[30].mxu0 }
 0x80b   : > { %v1555_v33 = vmul.f32 %v1547_v29, %v1547_v29  ;;  %v1551_v34 = vpop.f32.mrb[31].mxu0  ;;  %v1553_v46 = vmul.f32 0.5, %v1547_v29 }
 0x80c   : > { %v1556_v35 = vmul.f32 %v1549_v31, %v1549_v31  ;;  %v1554_v48 = vmul.f32 0.5, %v1549_v31 }
 0x80d   : > { %v1557_v36 = vmul.f32 %v1555_v33, %v1547_v29 }
 0x80e   : > { %v1558_v37 = vmul.f32 %v1556_v35, %v1549_v31 }
 0x80f   : > { %v1559_v38 = vmul.f32 0.044715, %v1557_v36 }
 0x810   : > { %v1560_v39 = vmul.f32 0.044715, %v1558_v37 }
 0x811   : > { %v1561_v40 = vadd.f32 %v1559_v38, %v1547_v29 }
 0x812   : > { %v1562_v41 = vadd.f32 %v1560_v39, %v1549_v31 }
 0x813   : > { %v1563_v42 = vmul.f32 0.7978846, %v1561_v40 }
 0x814   : > { %v1564_v43 = vmul.f32 0.7978846, %v1562_v41 }
 0x815   : > { %2560 = vtanh.f32 %v1563_v42 }
 0x816   : > { %2562 = vtanh.f32 %v1564_v43 }
 0x81f   : > { %v2561_v44 = vpop.eup %2560 }
 0x820   : > { %v2563_v45 = vpop.eup %2562  ;;  %v1567_v47 = vadd.f32 1.0, %v2561_v44 }
 0x821   : > { %v1568_v49 = vadd.f32 1.0, %v2563_v45 }
 0x822   : > { %v1569_v50 = vmul.f32 %v1567_v47, %v1553_v46 }
 0x823   : > { %v1570_v51 = vmul.f32 %v1568_v49, %v1554_v48 }
 0x824   : > { %v1571_v53 = vpack.c.bf16 %v1569_v50, %v1569_v50 }
 0x825   : > { %v1572_v52 = vpack.c.bf16 %v1570_v51, %v1570_v51 }
 0x827   : > { %1740 = vmatprep.mubr.bf16.mxu1 %v1572_v52 }
 0x828   : > { %1741 = vmatmul.mubr.bf16.vlgmr.msra.gmra.mrb[20].mxu1 %v1571_v53 }
 0x8fb   : > { %v2216_v54 = vpop.f32.mrb[20].mxu1 }
 0x8fc   : > { %v2217_v56 = vpop.f32.mrb[21].mxu1 }
 0x8fd   : > { %v2218_v57 = vadd.f32 %v2217_v56, %v2216_v54  ;;  %v2219_v58 = vpop.f32.mrb[22].mxu1 }
 0x8fe   : > { %v2220_v59 = vpop.f32.mrb[23].mxu1 }
 0x8ff   : > { %v1743_v60 = vadd.f32 %v2218_v57, %v2140_v55 }
 0x901   : > { %v1748_v61 = vadd.f32 %v1743_v60, %v3765_v4 }
 0x903   : > { %v1751_v62 = vsel %vm1412_vm6, %v1748_v61, 0.0 }
 0x904   : > { %1752 = vadd.xlane.f32.xlu0 %v1751_v62 }
 0x991   : > { %v1753_v63 = vpop.xlane.xlu0 %1752 }
 0x992   : > { %v1754_v1 = vmul.f32 0.015625, %v1753_v63 }
 0x994   : > { %v1755_v2 = vsub.f32 %v1748_v61, %v1754_v1 }
 0x996   : > { %v1756_v3 = vmul.f32 %v1755_v2, %v1755_v2 }
 0x998   : > { %v1757_v5 = vsel %vm1412_vm6, %v1756_v3, 0.0 }
 0x999   : > { %1758 = vadd.xlane.f32.xlu1 %v1757_v5 }
 0x99a   : > { %2975 = shalt.err (!%p2972_p13)
}
 0x99b   : > { %s2976_s5 = scalar_lea.hbm %s3779_s27, 128  ;;  %s2980_s8 = scalar_lea.hbm %s3959_s6, 256 }
 0x99c   : > { %p2977_p4 = scmp.ne.s32.totalorder %s3779_s27, %s2976_s5  ;;  %p2981_p7 = scmp.lt.u32.totalorder %s3779_s27, %s3959_s6 }
 0x99d   : > { %p2982_p5 = scmp.lt.u32.totalorder %s2980_s8, %s2976_s5  ;;  %p2984_p10 = scmp.lt.u32.totalorder %s2976_s5, %s3779_s27 }
 0x99e   : > { %p2978_p9 = pnand %p2977_p4, %p3960_p11 }
 0x99f   : > { %p2983_p1 = por %p2982_p5, %p2981_p7 }
 0x9a0   : > { %p2979_p0 = pneg %p2978_p9 }
 0x9a1   : > { %p2985_p8 = por %p2984_p10, %p2983_p1 }
 0x9a3   : > { %p2986_p3 = pnand %p2985_p8, %p2979_p0 }
 0x9a5   : > { %2989 = shalt.err (!%p2986_p3)
}
 0x9a6   : > { %s3132_s9 = smov 64   ;;  %s3133_s7 = smov 4   ;;  %v2157_v9 = vld [vmem:[#allocation24] ss:$0 sm:$0xff]  ;;  %v2158_v11 = vld [vmem:[#allocation25] ss:$0 sm:$0xff] }
 0x9a7   : > { %2363 = dma.vmem_to_hbm [thread:$0]  (%p3960_p11), %s3782_s3, 128, %s3779_s27, %s1785_s28, %s3132_s9, %s3132_s9, %s3133_s7  }
 0x9a8   : > { %s734_s10 = scalar_lea.vmem [#allocation27], %s3640_s0  ;;  %s3961_s21 = sld [smem:[#allocation57_spill]] }
 0x9a9   : > { %s1799_s15 = sshll.u32 %s734_s10, 4  ;;  %s1780_s27 = scalar_lea.sflag [#allocation6], %s3637_s29  ;;  %s3816_s15 = int_to_ptr.vmem [resolvable:$true] %s1799_s15 }
 0x9aa   : > { %s2990_s3 = scalar_lea.vmem %s3816_s15, 128  ;;  %s3134_s0 = smov [#allocation27]  }
 0x9ab   : > { %p2991_p12 = scmp.ne.s32.totalorder %s3816_s15, %s2990_s3  ;;  %s2994_s26 = sshll.u32 %s3134_s0, 4  ;;  %s2995_s26 = int_to_ptr.vmem [resolvable:$false] %s2994_s26 }
 0x9ac   : > { %s2996_s28 = scalar_lea.vmem %s2995_s26, 256  ;;  %p2997_p13 = scmp.lt.s32.totalorder %s3816_s15, %s2995_s26 }
 0x9ad   : > { %p2992_p6 = pnand %p2991_p12, %p3960_p11  ;;  %p2998_p4 = scmp.lt.s32.totalorder %s2996_s28, %s2990_s3 }
 0x9ae   : > { %s3962_s2 = smov %s3961_s21  ;;  %s3814_s8 = scalar_lea.hbm %s3961_s21, %s2161_s17 }
 0x9af   : > { %p2993_p2 = pneg %p2992_p6  ;;  %p2999_p9 = por %p2998_p4, %p2997_p13 }
 0x9b1   : > { %p3000_p0 = pnand %p2999_p9, %p2993_p2 }
 0xa26   : > { %v1759_v4 = vpop.xlane.xlu1 %1758 }
 0xa27   : > { %v1760_v6 = vmul.f32 0.015625, %v1759_v4 }
 0xa29   : > { %v1761_v7 = vadd.f32 1e-05, %v1760_v6 }
 0xa2b   : > { %2564 = vrsqrt.f32 %v1761_v7 }
 0xa35   : > { %v2565_v8 = vpop.eup %2564 }
 0xa36   : > { %v1763_v10 = vmul.f32 %v2565_v8, %v1755_v2 }
 0xa38   : > { %v1770_v12 = vmul.f32 %v2157_v9, %v1763_v10 }
 0xa3a   : > { %v1777_v13 = vadd.f32 %v2158_v11, %v1770_v12 }
 0xa3c   : > { %1778 = vst.msk [vmem:[%s734_s10] sm:$0xff] %vm1412_vm6, %v1777_v13 }
 0xa3d   : > { %3003 = shalt.err (!%p3000_p0)
}
 0xa3e   : > { %s3004_s29 = scalar_lea.hbm %s3814_s8, 128  ;;  %s3008_s24 = scalar_lea.hbm %s3962_s2, 256 }
 0xa3f   : > { %p3005_p7 = scmp.ne.s32.totalorder %s3814_s8, %s3004_s29  ;;  %p3009_p10 = scmp.lt.u32.totalorder %s3814_s8, %s3962_s2 }
 0xa40   : > { %p3010_p8 = scmp.lt.u32.totalorder %s3008_s24, %s3004_s29  ;;  %p3012_p12 = scmp.lt.u32.totalorder %s3004_s29, %s3814_s8 }
 0xa41   : > { %p3006_p5 = pnand %p3005_p7, %p3960_p11 }
 0xa42   : > { %p3011_p3 = por %p3010_p8, %p3009_p10 }
 0xa43   : > { %p3007_p1 = pneg %p3006_p5 }
 0xa44   : > { %p3013_p6 = por %p3012_p12, %p3011_p3 }
 0xa46   : > { %p3014_p2 = pnand %p3013_p6, %p3007_p1 }
 0xa48   : > { %3017 = shalt.err (!%p3014_p2)
}
 0xa49   : > { %2362 = dma.vmem_to_hbm [thread:$0]  (%p3960_p11), %s3816_s15, 128, %s3814_s8, %s1780_s27  }
 0xa4a PF: > { %s3963_s10 = sld [smem:[#allocation41_spill]]  ;;  %p3964_p13 = scmp.ne.s32.totalorder %s3936_s25, 0 }
 0xa4b   : > { %p3965_p4 = scmp.ge.s32.totalorder %s3108_s23, 2 }
 0xa4d   : > { %p2411_p9 = pnand %p3965_p4, %p3964_p13 }
 0xa50   : > { %s1828_s4 = sand.u32 1, %s3963_s10  }
 0xa51   : > { %s1829_s5 = scalar_lea.sflag [#allocation6], %s1828_s4 }
 0xa52   : > { %3079 = dma.done.wait (!%p2411_p9), %s1829_s5, 128  }
 0xa53   : > { %3081 = vsyncadd (!%p2411_p9), %s1829_s5, 4294967168  ;;  %s1838_s21 = scalar_lea.sflag [#allocation29], %s1828_s4 }
 0xa54   : > { %3083 = dma.done.wait (!%p2411_p9), %s1838_s21, 128  }
 0xa55   : > { %3085 = vsyncadd (!%p2411_p9), %s1838_s21, 4294967168  ;;  %s44_s23 = sadd.s32 1, %s3108_s23   ;;  %s3966_s30 = sld [smem:[#allocation42_spill]] }
 0xa56   : > { %p41_p0 = scmp.ge.s32.totalorder %s44_s23, 4   ;;  %s3967_s15 = smov %s3546_s19 }
 0xa57   : > { %s3968_s8 = smov %s3975_s18  ;;  %s3970_s19 = smov %s3096_s20 }
 0xa58   : > { %s3971_s20 = smov %s3967_s15  ;;  %s3972_s21 = smov %s3104_s22 }
 0xa59   : > { %s3973_s22 = smov %s3968_s8  ;;  %43 = sbr.rel (!%p41_p0) target bundleno = 30 (0x1e), region = 204 }
 0xa5b   : > { %s3969_s18 = smov %s3966_s30 }
 0xa60   :  { %1843 = vsyncpa [#allocation5], 1 }
 0xa61   :  { %1845 = vsyncpa [#allocation5 + $0x1], 1 }
 0xa62   :  { %1846 = vsyncpa [#allocation8], 1 }
 0xa63   :  { %1848 = vsyncpa [#allocation8 + $0x1], 1 }
 0xa64   :  { %1849 = vsyncpa [#allocation11], 1 }
 0xa65   :  { %1850 = vsyncpa [#allocation14], 1 }
 0xa66   :  { %1851 = vsyncpa [#allocation17], 1 }
 0xa67   :  { %1852 = vsyncpa [#allocation20], 1 }
 0xa68   :  { %1853 = vsyncpa [#allocation23], 1 }
 0xa69   :  { %1854 = vsyncpa [#allocation26], 1 }
 0xa6a   :  { %1855 = vsyncpa [#allocation6], 1 }
 0xa6b   :  { %1857 = vsyncpa [#allocation6 + $0x1], 1 }
 0xa6c   :  { %1858 = vsyncpa [#allocation29], 1 }
 0xa6d   :  { %1860 = vsyncpa [#allocation29 + $0x1], 1 }

// kernel: tpu_custom_call.1
= control target key start
LH: loop header
LB: loop body
LE: loop exit
PB: predicated region body
PF: predicated region fallthrough
CT: control target
= control target key end

     0   :  { %s3864_s0 = inlined_call_operand.hbm [shape: f32[2,8,64], index: 0, kind: input, shape index: {}]   ;;  %s3865_s1 = inlined_call_operand.hbm [shape: bf16[2,2,8,32], index: 1, kind: input, shape index: {}]   ;;  %s3866_s2 = inlined_call_operand.hbm [shape: bf16[32,32], index: 2, kind: input, shape index: {}]   ;;  %s3867_s3 = inlined_call_operand.hbm [shape: bf16[32,32], index: 3, kind: input, shape index: {}]   ;;  %s3868_s4 = inlined_call_operand.hbm [shape: bf16[32,32], index: 4, kind: input, shape index: {}]   ;;  %s3869_s5 = inlined_call_operand.hbm [shape: bf16[2,32,64], index: 5, kind: input, shape index: {}]   ;;  %s3870_s6 = inlined_call_operand.hbm [shape: f32[1,64], index: 6, kind: input, shape index: {}]   ;;  %s3871_s7 = inlined_call_operand.hbm [shape: f32[1,64], index: 7, kind: input, shape index: {}]   ;;  %s3872_s8 = inlined_call_operand.hbm [shape: bf16[64,256], index: 8, kind: input, shape index: {}]   ;;  %s3873_s9 = inlined_call_operand.hbm [shape: f32[1,256], index: 9, kind: input, shape index: {}]   ;;  %s3874_s10 = inlined_call_operand.hbm [shape: bf16[256,64], index: 10, kind: input, shape index: {}]   ;;  %s3875_s11 = inlined_call_operand.hbm [shape: f32[1,64], index: 11, kind: input, shape index: {}]   ;;  %s3876_s12 = inlined_call_operand.hbm [shape: f32[1,64], index: 12, kind: input, shape index: {}]   ;;  %s3877_s13 = inlined_call_operand.hbm [shape: f32[1,64], index: 13, kind: input, shape index: {}]   ;;  %s3878_s14 = inlined_call_operand.hbm [shape: f32[2,8,64], index: 14, kind: output, shape index: {0}]   ;;  %s3879_s15 = inlined_call_operand.hbm [shape: bf16[2,2,8,8], index: 15, kind: output, shape index: {1}]  }
   0x1   :  { %3897 = sst [smem:[#allocation46_spill]] %s3864_s0 }
   0x2   :  { %3898 = sst [smem:[#allocation47_spill]] %s3865_s1 }
   0x3   :  { %3899 = sst [smem:[#allocation48_spill]] %s3866_s2 }
   0x4   :  { %3900 = sst [smem:[#allocation49_spill]] %s3867_s3 }
   0x5   :  { %3901 = sst [smem:[#allocation50_spill]] %s3868_s4 }
   0x6   :  { %3902 = sst [smem:[#allocation51_spill]] %s3869_s5 }
   0x7   :  { %3903 = sst [smem:[#allocation52_spill]] %s3870_s6 }
   0x8   :  { %3904 = sst [smem:[#allocation53_spill]] %s3871_s7 }
   0x9   :  { %3905 = sst [smem:[#allocation54_spill]] %s3872_s8 }
   0xa   :  { %3906 = sst [smem:[#allocation55_spill]] %s3873_s9 }
   0xb   :  { %3907 = sst [smem:[#allocation56_spill]] %s3874_s10 }
   0xc   :  { %3908 = sst [smem:[#allocation57_spill]] %s3878_s14 }
   0xd   :  { %3909 = sst [smem:[#allocation58_spill]] %s3879_s15 }
   0xe   :  { %21 = vsyncpa [#allocation5], 0 }
   0xf   :  { %23 = vsyncpa [#allocation5 + $0x1], 0 }
  0x10   :  { %24 = vsyncpa [#allocation8], 0 }
  0x11   :  { %26 = vsyncpa [#allocation8 + $0x1], 0 }
  0x12   :  { %27 = vsyncpa [#allocation11], 0 }
  0x13   :  { %28 = vsyncpa [#allocation14], 0 }
  0x14   :  { %29 = vsyncpa [#allocation17], 0 }
  0x15   :  { %30 = vsyncpa [#allocation20], 0 }
  0x16   :  { %31 = vsyncpa [#allocation23], 0 }
  0x17   :  { %32 = vsyncpa [#allocation26], 0 }
  0x18   :  { %33 = vsyncpa [#allocation6], 0 }
  0x19   :  { %35 = vsyncpa [#allocation6 + $0x1], 0 }
  0x1a   :  { %36 = vsyncpa [#allocation29], 0 }
  0x1b   :  { %38 = vsyncpa [#allocation29 + $0x1], 0  ;;  %s3215_s18 = smov 0   ;;  %s3217_s19 = smov 0  }
  0x1c   :  { %s3219_s20 = smov 0   ;;  %s3221_s21 = smov 0  }
  0x1d   :  { %s3223_s22 = smov 0   ;;  %s3225_s23 = smov 0  }
  0x1e LB: > { %3910 = sst [smem:[#allocation41_spill]] %s3088_s18  ;;  %s3246_s24 = sadd.s32 4294967295, %s3108_s23   ;;  %s3108_s23 = sphi %s3225_s23, %s44_s23   ;;  %s3104_s22 = sphi %s3223_s22, %s3973_s22   ;;  %s3100_s21 = sphi %s3221_s21, %s3972_s21   ;;  %s3096_s20 = sphi %s3219_s20, %s3971_s20   ;;  %s3092_s19 = sphi %s3217_s19, %s3970_s19   ;;  %s3088_s18 = sphi %s3215_s18, %s3969_s18  }
  0x1f   : > { %3911 = sst [smem:[#allocation42_spill]] %s3092_s19  ;;  %p2071_p0 = scmp.ge.s32.totalorder %s3108_s23, 1 }
  0x20   : > { %3912 = sst [smem:[#allocation43_spill]] %s3100_s21  ;;  %p3890_p1 = scmp.eq.s32.totalorder %s3246_s24, 0 }
  0x21   : > { %3913 = sst [smem:[#allocation44_spill]] %s3246_s24  ;;  %p423_p2 = scmp.lt.s32.totalorder %s3108_s23, 3 }
  0x22   : > { %s3110_s26 = smov [#allocation9]   ;;  %s3111_s29 = smov [#allocation10]  }
  0x23   : > { %p3251_p3 = pnand %p2071_p0, %p423_p2  ;;  %s435_s27 = sshll.u32 %s3110_s26, 4  ;;  %s3255_s27 = int_to_ptr.vmem [resolvable:$true] %s435_s27 }
  0x24   : > { %s448_s30 = sshll.u32 %s3111_s29, 4  ;;  %s3112_s16 = smov [#allocation13]   ;;  %s3266_s30 = int_to_ptr.vmem [resolvable:$true] %s448_s30 }
  0x25   : > { %s3914_s25 = scalar_select %p3251_p3, 1, 0 }
  0x26   : > { %p2366_p4 = pneg %p3251_p3  ;;  %s3268_s17 = sshll.u32 %s3112_s16, 4  ;;  %s475_s17 = int_to_ptr.vmem [resolvable:$true] %s3268_s17 }
  0x27   : > { %3915 = sst [smem:[#allocation45_spill]] %s3914_s25  ;;  %s3917_s2 = sld [smem:[#allocation48_spill]] }
  0x28   : > { %p3262_p6 = pnand %p2366_p4, %p3890_p1 }
  0x2a   : > { %p3278_p8 = pneg %p3262_p6 }
  0x2d   : > { %s2566_s15 = scalar_lea.hbm %s3917_s2, 256 }
  0x2e   : > { %p2567_p7 = scmp.ne.s32.totalorder %s3917_s2, %s2566_s15  ;;  %p2573_p11 = scmp.lt.u32.totalorder %s2566_s15, %s3917_s2 }
  0x30   : > { %p2569_p9 = pnand %p3278_p8, %p2567_p7 }
  0x32   : > { %p2570_p10 = pneg %p2569_p9 }
  0x34   : > { %p2575_p12 = pnand %p2573_p11, %p2570_p10 }
  0x36   : > { %2578 = shalt.err (!%p2575_p12)
}
  0x37   : > { %s2579_s14 = scalar_lea.vmem %s3255_s27, 256  ;;  %p2587_p4 = scmp.lt.s32.totalorder %s3255_s27, %s3255_s27 }
  0x38   : > { %p2580_p13 = scmp.ne.s32.totalorder %s3255_s27, %s2579_s14  ;;  %p2588_p5 = scmp.lt.s32.totalorder %s2579_s14, %s2579_s14 }
  0x3a   : > { %p2582_p0 = pnand %p2580_p13, %p3278_p8  ;;  %p2589_p7 = por %p2588_p5, %p2587_p4 }
  0x3c   : > { %p2583_p2 = pneg %p2582_p0 }
  0x3e   : > { %p2590_p9 = pnand %p2589_p7, %p2583_p2 }
  0x40   : > { %2593 = shalt.err (!%p2590_p9)
}
  0x41   : > { %s3892_s21 = smov 64   ;;  %s3894_s15 = smov 4  }
  0x42   : > { %2369 = dma.hbm_to_vmem [thread:$0]  (!%p3262_p6), %s3917_s2, 256, %s3255_s27, [#allocation8], %s3892_s21, %s3892_s21, %s3894_s15  }
  0x43   : > { %s3919_s3 = sld [smem:[#allocation49_spill]] }
  0x49   : > { %s2594_s14 = scalar_lea.hbm %s3919_s3, 256 }
  0x4a   : > { %p2595_p5 = scmp.ne.s32.totalorder %s3919_s3, %s2594_s14  ;;  %p2601_p12 = scmp.lt.u32.totalorder %s2594_s14, %s3919_s3 }
  0x4c   : > { %p2597_p10 = pnand %p2595_p5, %p3278_p8 }
  0x4e   : > { %p2598_p11 = pneg %p2597_p10 }
  0x50   : > { %p2603_p13 = pnand %p2601_p12, %p2598_p11 }
  0x52   : > { %2606 = shalt.err (!%p2603_p13)
}
  0x53   : > { %s2607_s27 = scalar_lea.vmem %s3266_s30, 256  ;;  %p2615_p7 = scmp.lt.s32.totalorder %s3266_s30, %s3266_s30 }
  0x54   : > { %p2608_p0 = scmp.ne.s32.totalorder %s3266_s30, %s2607_s27  ;;  %p2616_p9 = scmp.lt.s32.totalorder %s2607_s27, %s2607_s27 }
  0x56   : > { %p2610_p2 = pnand %p2608_p0, %p3278_p8  ;;  %p2617_p5 = por %p2616_p9, %p2615_p7 }
  0x58   : > { %p2611_p4 = pneg %p2610_p2 }
  0x5a   : > { %p2618_p10 = pnand %p2617_p5, %p2611_p4 }
  0x5c   : > { %2621 = shalt.err (!%p2618_p10)
}
  0x5d   : > { %2372 = dma.hbm_to_vmem [thread:$0]  (!%p3262_p6), %s3919_s3, 256, %s3266_s30, [#allocation11], %s3892_s21, %s3892_s21, %s3894_s15  }
  0x5e   : > { %s3920_s5 = sld [smem:[#allocation51_spill]] }
  0x64   : > { %s2622_s25 = scalar_lea.hbm %s3920_s5, 512 }
  0x65   : > { %p2623_p11 = scmp.ne.s32.totalorder %s3920_s5, %s2622_s25  ;;  %p2629_p0 = scmp.lt.u32.totalorder %s2622_s25, %s3920_s5 }
  0x67   : > { %p2625_p12 = pnand %p2623_p11, %p3278_p8 }
  0x69   : > { %p2626_p13 = pneg %p2625_p12 }
  0x6b   : > { %p2631_p2 = pnand %p2629_p0, %p2626_p13 }
  0x6d   : > { %2634 = shalt.err (!%p2631_p2)
}
  0x6e   : > { %s2635_s27 = scalar_lea.vmem %s475_s17, 512  ;;  %p2643_p5 = scmp.lt.s32.totalorder %s475_s17, %s475_s17 }
  0x6f   : > { %p2636_p4 = scmp.ne.s32.totalorder %s475_s17, %s2635_s27  ;;  %p2644_p10 = scmp.lt.s32.totalorder %s2635_s27, %s2635_s27 }
  0x71   : > { %p2638_p7 = pnand %p2636_p4, %p3278_p8  ;;  %p2645_p1 = por %p2644_p10, %p2643_p5 }
  0x73   : > { %p2639_p9 = pneg %p2638_p7 }
  0x75   : > { %p2646_p3 = pnand %p2645_p1, %p2639_p9 }
  0x77   : > { %2649 = shalt.err (!%p2646_p3)
}
  0x78   : > { %2378 = dma.hbm_to_vmem [thread:$0]  (!%p3262_p6), %s3920_s5, 512, %s475_s17, [#allocation14], %s3892_s21, %s3892_s21, %s3894_s15  }
  0x79   : > { %s3115_s18 = smov [#allocation16]   ;;  %s3116_s24 = smov [#allocation19]  }
  0x7a   : > { %s499_s19 = sshll.u32 %s3115_s18, 4  ;;  %s523_s25 = sshll.u32 %s3116_s24, 4  ;;  %s500_s19 = int_to_ptr.vmem [resolvable:$true] %s499_s19  ;;  %s524_s25 = int_to_ptr.vmem [resolvable:$true] %s523_s25 }
  0x7b   : > { %s3921_s7 = sld [smem:[#allocation53_spill]] }
  0x81   : > { %s2650_s16 = scalar_lea.hbm %s3921_s7, 16 }
  0x82   : > { %p2651_p1 = scmp.ne.s32.totalorder %s3921_s7, %s2650_s16  ;;  %p2657_p12 = scmp.lt.u32.totalorder %s2650_s16, %s3921_s7 }
  0x84   : > { %p2653_p3 = pnand %p2651_p1, %p3278_p8 }
  0x86   : > { %p2654_p11 = pneg %p2653_p3 }
  0x88   : > { %p2659_p13 = pnand %p2657_p12, %p2654_p11 }
  0x8a   : > { %2662 = shalt.err (!%p2659_p13)
}
  0x8b   : > { %s2663_s17 = scalar_lea.vmem %s500_s19, 16  ;;  %s2670_s0 = scalar_lea.vmem %s500_s19, 32 }
  0x8c   : > { %p2664_p0 = scmp.ne.s32.totalorder %s500_s19, %s2663_s17  ;;  %p2671_p7 = scmp.lt.s32.totalorder %s500_s19, %s500_s19 }
  0x8d   : > { %p2672_p9 = scmp.lt.s32.totalorder %s2670_s0, %s2663_s17 }
  0x8e   : > { %p2666_p2 = pnand %p2664_p0, %p3278_p8 }
  0x8f   : > { %p2673_p5 = por %p2672_p9, %p2671_p7 }
  0x90   : > { %p2667_p4 = pneg %p2666_p2 }
  0x92   : > { %p2674_p10 = pnand %p2673_p5, %p2667_p4 }
  0x94   : > { %2677 = shalt.err (!%p2674_p10)
}
  0x95   : > { %2384 = dma.hbm_to_vmem [thread:$0]  (!%p3262_p6), %s3921_s7, 16, %s500_s19, [#allocation17]  }
  0x96   : > { %s3922_s9 = sld [smem:[#allocation55_spill]] }
  0x9c   : > { %s2678_s29 = scalar_lea.hbm %s3922_s9, 32 }
  0x9d   : > { %p2679_p1 = scmp.ne.s32.totalorder %s3922_s9, %s2678_s29  ;;  %p2685_p12 = scmp.lt.u32.totalorder %s2678_s29, %s3922_s9 }
  0x9f   : > { %p2681_p3 = pnand %p2679_p1, %p3278_p8 }
  0xa1   : > { %p2682_p11 = pneg %p2681_p3 }
  0xa3   : > { %p2687_p13 = pnand %p2685_p12, %p2682_p11 }
  0xa5   : > { %2690 = shalt.err (!%p2687_p13)
}
  0xa6   : > { %s2691_s17 = scalar_lea.vmem %s524_s25, 32  ;;  %p2699_p7 = scmp.lt.s32.totalorder %s524_s25, %s524_s25 }
  0xa7   : > { %p2692_p0 = scmp.ne.s32.totalorder %s524_s25, %s2691_s17  ;;  %p2700_p9 = scmp.lt.s32.totalorder %s2691_s17, %s2691_s17 }
  0xa9   : > { %p2694_p2 = pnand %p2692_p0, %p3278_p8  ;;  %p2701_p5 = por %p2700_p9, %p2699_p7 }
  0xab   : > { %p2695_p4 = pneg %p2694_p2 }
  0xad   : > { %p2702_p10 = pnand %p2701_p5, %p2695_p4 }
  0xaf   : > { %2705 = shalt.err (!%p2702_p10)
}
  0xb0   : > { %2390 = dma.hbm_to_vmem [thread:$0]  (!%p3262_p6), %s3922_s9, 32, %s524_s25, [#allocation20]  }
  0xb1   : > { %s3117_s18 = smov [#allocation22]   ;;  %s3118_s2 = smov [#allocation12]  }
  0xb2   : > { %s547_s24 = sshll.u32 %s3117_s18, 4  ;;  %s461_s26 = sshll.u32 %s3118_s2, 4  ;;  %s548_s24 = int_to_ptr.vmem [resolvable:$true] %s547_s24  ;;  %s462_s26 = int_to_ptr.vmem [resolvable:$true] %s461_s26 }
  0xb3   : > { %s2706_s14 = scalar_lea.hbm %s3875_s11, 16 }
  0xb4   : > { %p2707_p1 = scmp.ne.s32.totalorder %s3875_s11, %s2706_s14  ;;  %p2713_p12 = scmp.lt.u32.totalorder %s2706_s14, %s3875_s11 }
  0xb6   : > { %p2709_p3 = pnand %p2707_p1, %p3278_p8 }
  0xb8   : > { %p2710_p11 = pneg %p2709_p3 }
  0xba   : > { %p2715_p13 = pnand %p2713_p12, %p2710_p11 }
  0xbc   : > { %2718 = shalt.err (!%p2715_p13)
}
  0xbd   : > { %s2719_s25 = scalar_lea.vmem %s548_s24, 16  ;;  %s2726_s0 = scalar_lea.vmem %s548_s24, 32 }
  0xbe   : > { %p2720_p0 = scmp.ne.s32.totalorder %s548_s24, %s2719_s25  ;;  %p2727_p7 = scmp.lt.s32.totalorder %s548_s24, %s548_s24 }
  0xbf   : > { %p2728_p9 = scmp.lt.s32.totalorder %s2726_s0, %s2719_s25 }
  0xc0   : > { %p2722_p2 = pnand %p2720_p0, %p3278_p8 }
  0xc1   : > { %p2729_p5 = por %p2728_p9, %p2727_p7 }
  0xc2   : > { %p2723_p4 = pneg %p2722_p2 }
  0xc4   : > { %p2730_p10 = pnand %p2729_p5, %p2723_p4 }
  0xc6   : > { %2733 = shalt.err (!%p2730_p10)
}
  0xc7   : > { %2396 = dma.hbm_to_vmem [thread:$0]  (!%p3262_p6), %s3875_s11, 16, %s548_s24, [#allocation23]  }
  0xc8   : > { %s3923_s4 = sld [smem:[#allocation50_spill]] }
  0xce   : > { %s2734_s14 = scalar_lea.hbm %s3923_s4, 256 }
  0xcf   : > { %p2735_p1 = scmp.ne.s32.totalorder %s3923_s4, %s2734_s14  ;;  %p2741_p12 = scmp.lt.u32.totalorder %s2734_s14, %s3923_s4 }
  0xd1   : > { %p2737_p3 = pnand %p2735_p1, %p3278_p8 }
  0xd3   : > { %p2738_p11 = pneg %p2737_p3 }
  0xd5   : > { %p2743_p13 = pnand %p2741_p12, %p2738_p11 }
  0xd7   : > { %2746 = shalt.err (!%p2743_p13)
}
  0xd8   : > { %s2747_s25 = scalar_lea.vmem %s462_s26, 256  ;;  %p2755_p7 = scmp.lt.s32.totalorder %s462_s26, %s462_s26 }
  0xd9   : > { %p2748_p0 = scmp.ne.s32.totalorder %s462_s26, %s2747_s25  ;;  %p2756_p9 = scmp.lt.s32.totalorder %s2747_s25, %s2747_s25 }
  0xdb   : > { %p2750_p2 = pnand %p2748_p0, %p3278_p8  ;;  %p2757_p5 = por %p2756_p9, %p2755_p7 }
  0xdd   : > { %p2751_p4 = pneg %p2750_p2 }
  0xdf   : > { %p2758_p10 = pnand %p2757_p5, %p2751_p4 }
  0xe1   : > { %2761 = shalt.err (!%p2758_p10)
}
  0xe2   : > { %2375 = dma.hbm_to_vmem [thread:$0]  (!%p3262_p6), %s3923_s4, 256, %s462_s26, [#allocation11], %s3892_s21, %s3892_s21, %s3894_s15  }
  0xe3   : > { %s3119_s18 = smov [#allocation15]   ;;  %s3120_s29 = smov [#allocation18]  }
  0xe4   : > { %s488_s2 = sshll.u32 %s3119_s18, 4  ;;  %s509_s16 = sshll.u32 %s3120_s29, 4  ;;  %s489_s2 = int_to_ptr.vmem [resolvable:$true] %s488_s2  ;;  %s510_s16 = int_to_ptr.vmem [resolvable:$true] %s509_s16 }
  0xe5   : > { %s3924_s6 = sld [smem:[#allocation52_spill]] }
  0xeb   : > { %s2762_s30 = scalar_lea.hbm %s3924_s6, 16 }
  0xec   : > { %p2763_p1 = scmp.ne.s32.totalorder %s3924_s6, %s2762_s30  ;;  %p2769_p12 = scmp.lt.u32.totalorder %s2762_s30, %s3924_s6 }
  0xee   : > { %p2765_p3 = pnand %p2763_p1, %p3278_p8 }
  0xf0   : > { %p2766_p11 = pneg %p2765_p3 }
  0xf2   : > { %p2771_p13 = pnand %p2769_p12, %p2766_p11 }
  0xf4   : > { %2774 = shalt.err (!%p2771_p13)
}
  0xf5   : > { %s2775_s26 = scalar_lea.vmem %s489_s2, 16  ;;  %s2782_s0 = scalar_lea.vmem %s489_s2, 32 }
  0xf6   : > { %p2776_p0 = scmp.ne.s32.totalorder %s489_s2, %s2775_s26  ;;  %p2783_p7 = scmp.lt.s32.totalorder %s489_s2, %s489_s2 }
  0xf7   : > { %p2784_p9 = scmp.lt.s32.totalorder %s2782_s0, %s2775_s26 }
  0xf8   : > { %p2778_p2 = pnand %p2776_p0, %p3278_p8 }
  0xf9   : > { %p2785_p5 = por %p2784_p9, %p2783_p7 }
  0xfa   : > { %p2779_p4 = pneg %p2778_p2 }
  0xfc   : > { %p2786_p10 = pnand %p2785_p5, %p2779_p4 }
  0xfe   : > { %2789 = shalt.err (!%p2786_p10)
}
  0xff   : > { %2381 = dma.hbm_to_vmem [thread:$0]  (!%p3262_p6), %s3924_s6, 16, %s489_s2, [#allocation14]  }
 0x100   : > { %s3925_s8 = sld [smem:[#allocation54_spill]] }
 0x106   : > { %s2790_s30 = scalar_lea.hbm %s3925_s8, 1024 }
 0x107   : > { %p2791_p1 = scmp.ne.s32.totalorder %s3925_s8, %s2790_s30  ;;  %p2797_p12 = scmp.lt.u32.totalorder %s2790_s30, %s3925_s8 }
 0x109   : > { %p2793_p3 = pnand %p2791_p1, %p3278_p8 }
 0x10b   : > { %p2794_p11 = pneg %p2793_p3 }
 0x10d   : > { %p2799_p13 = pnand %p2797_p12, %p2794_p11 }
 0x10f   : > { %2802 = shalt.err (!%p2799_p13)
}
 0x110   : > { %s2803_s26 = scalar_lea.vmem %s510_s16, 1024  ;;  %p2811_p7 = scmp.lt.s32.totalorder %s510_s16, %s510_s16 }
 0x111   : > { %p2804_p0 = scmp.ne.s32.totalorder %s510_s16, %s2803_s26  ;;  %p2812_p9 = scmp.lt.s32.totalorder %s2803_s26, %s2803_s26 }
 0x113   : > { %p2806_p2 = pnand %p2804_p0, %p3278_p8  ;;  %p2813_p5 = por %p2812_p9, %p2811_p7 }
 0x115   : > { %p2807_p4 = pneg %p2806_p2 }
 0x117   : > { %p2814_p10 = pnand %p2813_p5, %p2807_p4 }
 0x119   : > { %2817 = shalt.err (!%p2814_p10)
}
 0x11a   : > { %s3121_s2 = smov 128   ;;  %s3122_s0 = smov 8  }
 0x11b   : > { %2387 = dma.hbm_to_vmem [thread:$0]  (!%p3262_p6), %s3925_s8, 1024, %s510_s16, [#allocation17], %s3121_s2, %s3121_s2, %s3122_s0  }
 0x11c   : > { %s3123_s14 = smov [#allocation21]   ;;  %s3124_s30 = smov [#allocation24]  }
 0x11d   : > { %s533_s27 = sshll.u32 %s3123_s14, 4  ;;  %s558_s17 = sshll.u32 %s3124_s30, 4  ;;  %s534_s27 = int_to_ptr.vmem [resolvable:$true] %s533_s27  ;;  %s559_s17 = int_to_ptr.vmem [resolvable:$true] %s558_s17 }
 0x11e   : > { %s3926_s10 = sld [smem:[#allocation56_spill]] }
 0x124   : > { %s2818_s24 = scalar_lea.hbm %s3926_s10, 2048 }
 0x125   : > { %p2819_p1 = scmp.ne.s32.totalorder %s3926_s10, %s2818_s24  ;;  %p2825_p12 = scmp.lt.u32.totalorder %s2818_s24, %s3926_s10 }
 0x127   : > { %p2821_p3 = pnand %p2819_p1, %p3278_p8 }
 0x129   : > { %p2822_p11 = pneg %p2821_p3 }
 0x12b   : > { %p2827_p13 = pnand %p2825_p12, %p2822_p11 }
 0x12d   : > { %2830 = shalt.err (!%p2827_p13)
}
 0x12e   : > { %s2831_s16 = scalar_lea.vmem %s534_s27, 2048  ;;  %p2839_p7 = scmp.lt.s32.totalorder %s534_s27, %s534_s27 }
 0x12f   : > { %p2832_p0 = scmp.ne.s32.totalorder %s534_s27, %s2831_s16  ;;  %p2840_p9 = scmp.lt.s32.totalorder %s2831_s16, %s2831_s16 }
 0x131   : > { %p2834_p2 = pnand %p2832_p0, %p3278_p8  ;;  %p2841_p5 = por %p2840_p9, %p2839_p7 }
 0x133   : > { %p2835_p4 = pneg %p2834_p2 }
 0x135   : > { %p2842_p10 = pnand %p2841_p5, %p2835_p4 }
 0x137   : > { %2845 = shalt.err (!%p2842_p10)
}
 0x138   : > { %s3927_s21 = smov 4   ;;  %s3928_s2 = smov 64  }
 0x139   : > { %2393 = dma.hbm_to_vmem [thread:$0]  (!%p3262_p6), %s3926_s10, 2048, %s534_s27, [#allocation20], %s3928_s2, %s3928_s2, %s3927_s21  }
 0x13a   : > { %s2846_s29 = scalar_lea.hbm %s3876_s12, 16 }
 0x13b   : > { %p2847_p1 = scmp.ne.s32.totalorder %s3876_s12, %s2846_s29  ;;  %p2853_p12 = scmp.lt.u32.totalorder %s2846_s29, %s3876_s12 }
 0x13d   : > { %p2849_p3 = pnand %p2847_p1, %p3278_p8 }
 0x13f   : > { %p2850_p11 = pneg %p2849_p3 }
 0x141   : > { %p2855_p13 = pnand %p2853_p12, %p2850_p11 }
 0x143   : > { %2858 = shalt.err (!%p2855_p13)
}
 0x144   : > { %s2859_s24 = scalar_lea.vmem %s559_s17, 16  ;;  %s2866_s27 = scalar_lea.vmem %s559_s17, 32 }
 0x145   : > { %p2860_p0 = scmp.ne.s32.totalorder %s559_s17, %s2859_s24  ;;  %p2867_p7 = scmp.lt.s32.totalorder %s559_s17, %s559_s17 }
 0x146   : > { %p2868_p9 = scmp.lt.s32.totalorder %s2866_s27, %s2859_s24 }
 0x147   : > { %p2862_p2 = pnand %p2860_p0, %p3278_p8 }
 0x148   : > { %p2869_p5 = por %p2868_p9, %p2867_p7 }
 0x149   : > { %p2863_p4 = pneg %p2862_p2 }
 0x14b   : > { %p2870_p10 = pnand %p2869_p5, %p2863_p4 }
 0x14d   : > { %2873 = shalt.err (!%p2870_p10)
}
 0x14e   : > { %2399 = dma.hbm_to_vmem [thread:$0]  (!%p3262_p6), %s3876_s12, 16, %s559_s17, [#allocation23]  }
 0x14f   : > { %s3125_s3 = smov [#allocation25]   ;;  %s2874_s29 = scalar_lea.hbm %s3877_s13, 16 }
 0x150   : > { %s569_s15 = sshll.u32 %s3125_s3, 4  ;;  %p2875_p1 = scmp.ne.s32.totalorder %s3877_s13, %s2874_s29  ;;  %s570_s15 = int_to_ptr.vmem [resolvable:$true] %s569_s15 }
 0x151   : > { %p2881_p12 = scmp.lt.u32.totalorder %s2874_s29, %s3877_s13 }
 0x152   : > { %p2877_p3 = pnand %p2875_p1, %p3278_p8 }
 0x154   : > { %p2878_p11 = pneg %p2877_p3 }
 0x156   : > { %p2883_p13 = pnand %p2881_p12, %p2878_p11 }
 0x158   : > { %2886 = shalt.err (!%p2883_p13)
}
 0x159   : > { %s2887_s17 = scalar_lea.vmem %s570_s15, 16  ;;  %s2894_s24 = scalar_lea.vmem %s570_s15, 32 }
 0x15a   : > { %p2888_p0 = scmp.ne.s32.totalorder %s570_s15, %s2887_s17  ;;  %p2895_p7 = scmp.lt.s32.totalorder %s570_s15, %s570_s15 }
 0x15b   : > { %p2896_p9 = scmp.lt.s32.totalorder %s2894_s24, %s2887_s17 }
 0x15c   : > { %p2890_p2 = pnand %p2888_p0, %p3278_p8 }
 0x15d   : > { %p2897_p5 = por %p2896_p9, %p2895_p7 }
 0x15e   : > { %p2891_p4 = pneg %p2890_p2 }
 0x160   : > { %p2898_p10 = pnand %p2897_p5, %p2891_p4 }
 0x162   : > { %2901 = shalt.err (!%p2898_p10)
}
 0x163   : > { %s3929_s16 = sld [smem:[#allocation42_spill]]  ;;  %s3930_s1 = sld [smem:[#allocation41_spill]] }
 0x164   : > { %s3931_s3 = sld [smem:[#allocation44_spill]]  ;;  %s2070_s0 = sadd.s32 4294967294, %s3108_s23  }
 0x165   : > { %2402 = dma.hbm_to_vmem [thread:$0]  (!%p3262_p6), %s3877_s13, 16, %s570_s15, [#allocation26]  }
 0x166   : > { %s56_s18 = sadd.s32 1, %s3104_s22  ;;  %s65_s28 = sadd.s32 1, %s3096_s20 }
 0x167   : > { %p58_p8 = scmp.ge.s32.totalorder %s56_s18, 2  ;;  %p73_p3 = scmp.eq.s32.totalorder %s3108_s23, 0 }
 0x168   : > { %p388_p7 = scmp.eq.s32.totalorder %s2070_s0, 1  ;;  %p2429_p5 = scmp.lt.s32.totalorder %s3108_s23, 2 }
 0x169   : > { %p72_p1 = scmp.ne.s32.totalorder %s3096_s20, %s3929_s16  ;;  %s3975_s18 = smov (%p58_p8, %s56_s18), 0 }
 0x16a   : > { %p78_p12 = scmp.ne.s32.totalorder %s3929_s16, %s3930_s1  ;;  %s60_s15 = ssub.s32 %s3104_s22, %s3975_s18 }
 0x16b   : > { %p3526_p11 = por %p73_p3, %p72_p1  ;;  %p382_p6 = scmp.eq.s32.totalorder %s3931_s3, 1 }
 0x16c   : > { %p63_p13 = scmp.eq.s32.totalorder %s60_s15, 0  ;;  %p3933_p0 = scmp.eq.s32.totalorder %s3931_s3, 0 }
 0x16d   : > { %p3541_p4 = por %p382_p6, %p72_p1  ;;  %p3548_p9 = por %p388_p7, %p78_p12 }
 0x16e   : > { %p3537_p2 = por %p3933_p0, %p78_p12  ;;  %s580_s17 = sand.u32 1, %s3096_s20  }
 0x16f   : > { %s3935_s30 = scalar_select %p3541_p4, 1, 0 }
 0x170   : > { %s3546_s19 = scalar_select %p63_p13, %s3096_s20, %s65_s28  }
 0x171   : > { %s3936_s25 = scalar_select %p3548_p9, 1, 0 }
 0x172   : > { %s2086_s24 = sshll.u32 %s3104_s22, 7  ;;  %s3555_s27 = sshll.u32 %s580_s17, 3 }
 0x173   : > { %s3937_s1 = sld [smem:[#allocation46_spill]]  ;;  %s584_s0 = scalar_lea.vmem [#allocation4], %s3555_s27 }
 0x174   : > { %s592_s28 = sshll.u32 %s584_s0, 4  ;;  %p3565_p10 = pnand %p2429_p5, %p3526_p11  ;;  %s3569_s28 = int_to_ptr.vmem [resolvable:$true] %s592_s28 }
 0x175   : > { %s3939_s16 = sld [smem:[#allocation47_spill]]  ;;  %s581_s6 = scalar_lea.sflag [#allocation5], %s580_s17 }
 0x176   : > { %p2904_p1 = pneg %p3565_p10 }
 0x179   : > { %s3560_s3 = scalar_lea.hbm %s3937_s1, %s2086_s24  ;;  %s2907_s8 = scalar_lea.hbm %s3937_s1, 256 }
 0x17a   : > { %s2902_s7 = scalar_lea.hbm %s3560_s3, 128  ;;  %p2908_p12 = scmp.lt.u32.totalorder %s3560_s3, %s3937_s1 }
 0x17b   : > { %s3574_s5 = scalar_lea.hbm %s3939_s16, %s2086_s24  ;;  %p2903_p8 = scmp.ne.s32.totalorder %s3560_s3, %s2902_s7 }
 0x17c   : > { %p2909_p6 = scmp.lt.u32.totalorder %s2907_s8, %s2902_s7  ;;  %p2911_p0 = scmp.lt.u32.totalorder %s2902_s7, %s3560_s3 }
 0x17d   : > { %p2905_p3 = pnand %p2904_p1, %p2903_p8 }
 0x17e   : > { %p2910_p13 = por %p2909_p6, %p2908_p12 }
 0x17f   : > { %p2906_p11 = pneg %p2905_p3 }
 0x180   : > { %p2912_p7 = por %p2911_p0, %p2910_p13 }
 0x182   : > { %p2913_p5 = pnand %p2912_p7, %p2906_p11 }
 0x184   : > { %2916 = shalt.err (!%p2913_p5)
}
 0x185   : > { %s2917_s4 = scalar_lea.vmem %s3569_s28, 128  ;;  %s3126_s17 = smov [#allocation4]  }
 0x186   : > { %p2918_p8 = scmp.ne.s32.totalorder %s3569_s28, %s2917_s4  ;;  %s2922_s24 = sshll.u32 %s3126_s17, 4  ;;  %s2923_s24 = int_to_ptr.vmem [resolvable:$false] %s2922_s24 }
 0x187   : > { %s2924_s9 = scalar_lea.vmem %s2923_s24, 256  ;;  %p2925_p4 = scmp.lt.s32.totalorder %s3569_s28, %s2923_s24 }
 0x188   : > { %p2920_p3 = pnand %p2918_p8, %p2904_p1  ;;  %p2926_p12 = scmp.lt.s32.totalorder %s2924_s9, %s2917_s4 }
 0x18a   : > { %p2921_p9 = pneg %p2920_p3  ;;  %p2927_p6 = por %p2926_p12, %p2925_p4 }
 0x18c   : > { %p2928_p13 = pnand %p2927_p6, %p2921_p9 }
 0x18e   : > { %2931 = shalt.err (!%p2928_p13)
}
 0x18f   : > { %2406 = dma.hbm_to_vmem [thread:$0]  (!%p3565_p10), %s3560_s3, 128, %s3569_s28, %s581_s6  }
 0x190   : > { %s603_s7 = scalar_lea.vmem [#allocation7], %s3555_s27  ;;  %s599_s10 = sand.u32 1, %s3108_s23  }
 0x191   : > { %s610_s8 = sshll.u32 %s603_s7, 4  ;;  %s3605_s26 = scalar_lea.sflag [#allocation8], %s599_s10  ;;  %s3603_s8 = int_to_ptr.vmem [resolvable:$true] %s610_s8 }
 0x192   : > { %s2932_s29 = scalar_lea.hbm %s3574_s5, 128  ;;  %s2937_s17 = scalar_lea.hbm %s3939_s16, 256 }
 0x193   : > { %p2933_p4 = scmp.ne.s32.totalorder %s3574_s5, %s2932_s29  ;;  %p2938_p0 = scmp.lt.u32.totalorder %s3574_s5, %s3939_s16 }
 0x194   : > { %p2939_p7 = scmp.lt.u32.totalorder %s2937_s17, %s2932_s29  ;;  %p2941_p8 = scmp.lt.u32.totalorder %s2932_s29, %s3574_s5 }
 0x195   : > { %p2935_p9 = pnand %p2933_p4, %p2904_p1 }
 0x196   : > { %p2940_p5 = por %p2939_p7, %p2938_p0 }
 0x197   : > { %p2936_p11 = pneg %p2935_p9 }
 0x198   : > { %p2942_p3 = por %p2941_p8, %p2940_p5 }
 0x19a   : > { %p2943_p12 = pnand %p2942_p3, %p2936_p11 }
 0x19c   : > { %2946 = shalt.err (!%p2943_p12)
}
 0x19d   : > { %s2947_s6 = scalar_lea.vmem %s3603_s8, 128  ;;  %s3127_s27 = smov [#allocation7]  }
 0x19e   : > { %p2948_p6 = scmp.ne.s32.totalorder %s3603_s8, %s2947_s6  ;;  %s2952_s3 = sshll.u32 %s3127_s27, 4  ;;  %s2953_s3 = int_to_ptr.vmem [resolvable:$false] %s2952_s3 }
 0x19f   : > { %s2954_s28 = scalar_lea.vmem %s2953_s3, 256  ;;  %p2955_p9 = scmp.lt.s32.totalorder %s3603_s8, %s2953_s3 }
 0x1a0   : > { %p2950_p13 = pnand %p2948_p6, %p2904_p1  ;;  %p2956_p0 = scmp.lt.s32.totalorder %s2954_s28, %s2947_s6 }
 0x1a2   : > { %p2951_p4 = pneg %p2950_p13  ;;  %p2957_p7 = por %p2956_p0, %p2955_p9 }
 0x1a4   : > { %p2958_p5 = pnand %p2957_p7, %p2951_p4 }
 0x1a6   : > { %2961 = shalt.err (!%p2958_p5)
}
 0x1a7   : > { %2409 = dma.hbm_to_vmem [thread:$0]  (!%p3565_p10), %s3574_s5, 128, %s3603_s8, %s3605_s26, %s3928_s2, %s3928_s2, %s3927_s21  }
 0x1a8   : > { %s3940_s7 = sld [smem:[#allocation45_spill]] }
 0x1ae   : > { %p3941_p1 = scmp.ne.s32.totalorder %s3940_s7, 0 }
 0x1af   : > { %s3942_s10 = sld [smem:[#allocation42_spill]] (!%p3941_p1) }
 0x1b0   : > { %622 = sbr.rel (%p3941_p1) target bundleno = 2634 (0xa4a), region = 76 }
 0x1b5   : > { %s3637_s29 = sand.u32 (!%p3941_p1), 1, %s3942_s10  }
 0x1b6   : > { %s3640_s0 = sshll.u32 (!%p3941_p1), %s3637_s29, 3  ;;  %s625_s15 = scalar_lea.sflag (!%p3941_p1), [#allocation5], %s3637_s29 }
 0x1b7   : > { %s628_s4 = scalar_lea.vmem [#allocation4], %s3640_s0 }
 0x1b8   : > { %3043 = dma.done.wait (%p3537_p2), %s625_s15, 128  }
 0x1b9   : > { %3045 = vsyncadd (%p3537_p2), %s625_s15, 4294967168  ;;  %s3943_s5 = sld [smem:[#allocation44_spill]]  ;;  %s3650_s8 = scalar_lea.vmem [#allocation7], %s3640_s0 }
 0x1bf   : > { %s633_s21 = sand.u32 1, %s3943_s5  }
 0x1c0   : > { %s634_s2 = scalar_lea.sflag [#allocation8], %s633_s21 }
 0x1c1   : > { %3047 = dma.done.wait (%p3537_p2), %s634_s2, 128  }
 0x1c2   : > { %3049 = vsyncadd (%p3537_p2), %s634_s2, 4294967168  ;;  %p3944_p10 = scmp.eq.s32.totalorder %s3943_s5, 0 }
 0x1c4   : > { %3051 = dma.done.wait (%p3944_p10), [#allocation8], 256   ;;  %p3945_p11 = pmov %p3944_p10 }
 0x1c5   : > { %p3946_p8 = pmov %p3944_p10 }
 0x1c6   : > { %3053 = vsyncadd (%p3945_p11), [#allocation8], 4294967040 }
 0x1c7   : > { %3055 = dma.done.wait (%p3946_p8), [#allocation11], 512   ;;  %p3947_p3 = pmov %p3946_p8 }
 0x1c9   : > { %3057 = vsyncadd (%p3947_p3), [#allocation11], 4294966784  ;;  %p3948_p12 = pmov %p3947_p3 }
 0x1ca   : > { %p3949_p6 = pmov %p3947_p3 }
 0x1cb   : > { %3059 = dma.done.wait (%p3948_p12), [#allocation14], 528  }
 0x1cc   : > { %3061 = vsyncadd (%p3949_p6), [#allocation14], 4294966768  ;;  %p3950_p2 = pmov %p3947_p3 }
 0x1ce   : > { %3063 = dma.done.wait (%p3950_p2), [#allocation17], 1040   ;;  %p3951_p13 = pmov %p3950_p2 }
 0x1cf   : > { %p3952_p4 = pmov %p3950_p2 }
 0x1d0   : > { %3065 = vsyncadd (%p3951_p13), [#allocation17], 4294966256 }
 0x1d1   : > { %3067 = dma.done.wait (%p3952_p4), [#allocation20], 2080   ;;  %p3953_p9 = pmov %p3950_p2 }
 0x1d2   : > { %p3954_p0 = pmov %p3950_p2 }
 0x1d3   : > { %3069 = vsyncadd (%p3953_p9), [#allocation20], 4294965216 }
 0x1d4   : > { %3071 = dma.done.wait (%p3954_p0), [#allocation23], 32   ;;  %p3955_p7 = pmov %p3954_p0 }
 0x1d5   : > { %p3956_p5 = pmov %p3954_p0 }
 0x1d6   : > { %3073 = vsyncadd (%p3955_p7), [#allocation23], 4294967264 }
 0x1d7   : > { %3075 = dma.done.wait (%p3956_p5), [#allocation26], 16   ;;  %p3957_p1 = pmov %p3954_p0 }
 0x1d8   : > { %v3128_v0 = vmov 0.0   ;;  %vm3129_vm0 = vmmov 0   ;;  %v2512_v1 = vld [vmem:[#allocation10] sm:$0xff]   ;;  %v2513_v2 = vld [vmem:[#allocation10 + $0x8] sm:$0xff]   ;;  %v2514_v3 = vld [vmem:[#allocation12] sm:$0xff]   ;;  %vm769_vm1 = vcmask 261120  }
 0x1d9   : > { %3077 = vsyncadd (%p3957_p1), [#allocation26], 4294967280  ;;  %2222 = vmatprep.subr.bf16.mxu0 %v3128_v0  ;;  %2226 = vmatprep.mubr.msk.bf16.mxu0 %vm3129_vm0, %v3128_v0  ;;  %v2515_v4 = vld [vmem:[#allocation12 + $0x8] sm:$0xff]   ;;  %v747_v5 = vld [vmem:[%s3650_s8] sm:$0xf]  ;;  %vm858_vm2 = vcmask 257024  }
 0x1da   : > { %2246 = vmatprep.subr.bf16.mxu1 %v3128_v0  ;;  %2250 = vmatprep.mubr.msk.bf16.mxu1 %vm3129_vm0, %v3128_v0  ;;  %v2516_v6 = vld [vmem:[#allocation9] sm:$0xff]   ;;  %v748_v7 = vld [vmem:[%s3650_s8 + $0x4] sm:$0xf]  ;;  %v2517_v8 = vld [vmem:[#allocation9 + $0x8] sm:$0xff]   ;;  %vm1198_vm3 = vcmask 1043456   ;;  %vm1168_vm4 = vcmask 64512  }
 0x1db   : > { %2223 = vmatpush3.bf16.msra.mxu0 %v2512_v1  ;;  %2247 = vmatpush3.bf16.msra.mxu1 %v2514_v3  ;;  %v963_v9 = vld [vmem:[%s3650_s8 + $0x4] sm:$0xf]  ;;  %v962_v10 = vld [vmem:[%s3650_s8] sm:$0xf]  ;;  %vm1165_vm5 = vcmask 60416   ;;  %s3742_s14 = scalar_lea.vmem [#allocation28], %s3640_s0 }
 0x1dc   : > { %2224 = vmatprep.subr.bf16.mxu0 %v3128_v0  ;;  %2248 = vmatprep.subr.bf16.mxu1 %v3128_v0  ;;  %vm1412_vm6 = vcmask 523264   ;;  %s3958_s26 = sld [smem:[#allocation43_spill]]  ;;  %s3959_s6 = sld [smem:[#allocation58_spill]] }
 0x1dd   : > { %s1813_s3 = sshll.u32 %s3742_s14, 4  ;;  %s1785_s28 = scalar_lea.sflag [#allocation29], %s3637_s29  ;;  %s3782_s3 = int_to_ptr.vmem [resolvable:$true] %s1813_s3 }
 0x1de   : > { %s2962_s7 = scalar_lea.vmem %s3782_s3, 128  ;;  %p3960_p11 = scmp.ne.s32.totalorder %s3935_s30, 0 }
 0x1df   : > { %2225 = vmatpush3.bf16.msra.mxu0 %v2513_v2  ;;  %2249 = vmatpush3.bf16.msra.mxu1 %v2515_v4  ;;  %p2963_p10 = scmp.ne.s32.totalorder %s3782_s3, %s2962_s7  ;;  %s3131_s10 = smov [#allocation28]  }
 0x1e0   : > { %2230 = vmatprep.subr.bf16.mxu0 %v3128_v0  ;;  %2262 = vmatprep.subr.bf16.mxu1 %v3128_v0  ;;  %s2966_s15 = sshll.u32 %s3131_s10, 4  ;;  %s2967_s15 = int_to_ptr.vmem [resolvable:$false] %s2966_s15 }
 0x1e1   : > { %p2964_p8 = pnand %p2963_p10, %p3960_p11  ;;  %p2969_p12 = scmp.lt.s32.totalorder %s3782_s3, %s2967_s15 }
 0x1e2   : > { %2227 = vmatmul.mubr.msk.bf16.vlgmr.msra.gmra.mrb[0].mxu0 %vm769_vm1, %v747_v5  ;;  %2251 = vmatmul.mubr.msk.bf16.vlgmr.msra.gmra.mrb[0].mxu1 %vm769_vm1, %v748_v7  ;;  %s2161_s17 = sshll.u32 %s3958_s26, 7 }
 0x1e3   : > { %2231 = vmatpush3.bf16.msra.mxu0 %v2512_v1  ;;  %2234 = vmatprep.mubr.msk.bf16.mxu0 %vm3129_vm0, %v3128_v0  ;;  %s3779_s27 = scalar_lea.hbm %s3959_s6, %s2161_s17  ;;  %p2965_p3 = pneg %p2964_p8 }
 0x1e4   : > { %2232 = vmatprep.subr.bf16.mxu0 %v3128_v0  ;;  %2263 = vmatpush3.bf16.msra.mxu1 %v2516_v6 }
 0x1e5   : > { %2266 = vmatprep.mubr.msk.bf16.mxu1 %vm3129_vm0, %v3128_v0  ;;  %2264 = vmatprep.subr.bf16.mxu1 %v3128_v0 }
 0x1e7   : > { %2233 = vmatpush3.bf16.msra.mxu0 %v2513_v2 }
 0x1e8   : > { %2238 = vmatprep.subr.bf16.mxu0 %v3128_v0  ;;  %2265 = vmatpush3.bf16.msra.mxu1 %v2517_v8 }
 0x1e9   : > { %2276 = vmatprep.subr.bf16.mxu1 %v3128_v0 }
 0x1ea   : > { %2235 = vmatmul.mubr.msk.bf16.vlgmr.msra.gmra.mrb[4].mxu0 %vm769_vm1, %v748_v7 }
 0x1eb   : > { %2239 = vmatpush3.bf16.msra.mxu0 %v2514_v3  ;;  %2242 = vmatprep.mubr.msk.bf16.mxu0 %vm3129_vm0, %v3128_v0 }
 0x1ec   : > { %2240 = vmatprep.subr.bf16.mxu0 %v3128_v0  ;;  %2267 = vmatmul.mubr.msk.bf16.vlgmr.msra.gmra.mrb[4].mxu1 %vm769_vm1, %v963_v9 }
 0x1ed   : > { %2278 = vmatprep.mubr.msk.bf16.mxu1 %vm3129_vm0, %v3128_v0 }
 0x1ef   : > { %2241 = vmatpush3.bf16.msra.mxu0 %v2515_v4 }
 0x1f0   : > { %2254 = vmatprep.subr.bf16.mxu0 %v3128_v0 }
 0x1f2   : > { %2243 = vmatmul.mubr.msk.bf16.vlgmr.msra.gmra.mrb[8].mxu0 %vm769_vm1, %v747_v5 }
 0x1f3   : > { %2255 = vmatpush3.bf16.msra.mxu0 %v2516_v6  ;;  %2258 = vmatprep.mubr.msk.bf16.mxu0 %vm3129_vm0, %v3128_v0 }
 0x1f4   : > { %2256 = vmatprep.subr.bf16.mxu0 %v3128_v0 }
 0x1f7   : > { %2257 = vmatpush3.bf16.msra.mxu0 %v2517_v8 }
 0x1f8   : > { %2270 = vmatprep.subr.bf16.mxu0 %v3128_v0 }
 0x1fa   : > { %2259 = vmatmul.mubr.msk.bf16.vlgmr.msra.gmra.mrb[12].mxu0 %vm769_vm1, %v962_v10 }
 0x1fb   : > { %2272 = vmatprep.mubr.msk.bf16.mxu0 %vm3129_vm0, %v3128_v0 }
 0x2b5   : > { %v807_v11 = vpop.f32.mrb[0].mxu0  ;;  %v947_v16 = vpop.f32.mrb[0].mxu1 }
 0x2b6   : > { %v856_v12 = vpack.c.bf16 %v807_v11, %v807_v11  ;;  %v2228_v13 = vpop.f32.mrb[1].mxu0  ;;  %v954_v17 = vpack.c.bf16 %v947_v16, %v947_v16  ;;  %v2252_v18 = vpop.f32.mrb[1].mxu1 }
 0x2b7   : > { %v810_v14 = vpop.f32.mrb[2].mxu0  ;;  %v950_v19 = vpop.f32.mrb[2].mxu1  ;;  %v2519_v13 = vld [vmem:[#allocation13 + $0x8] sm:$0xff]  }
 0x2b8   : > { %859 = vst.msk [vmem:[#allocation2] sm:$0xf] %vm858_vm2, %v856_v12  ;;  %v2229_v15 = vpop.f32.mrb[3].mxu0  ;;  %956 = vst.msk [vmem:[#allocation3 + $0x4] sm:$0xf] %vm858_vm2, %v954_v17  ;;  %v2253_v20 = vpop.f32.mrb[3].mxu1 }
 0x2b9   : > { %v2518_v12 = vld [vmem:[#allocation13] sm:$0xff]   ;;  %v2520_v14 = vld [vmem:[#allocation13 + $0x10] sm:$0xff]   ;;  %v2521_v15 = vld [vmem:[#allocation13 + $0x18] sm:$0xff]  }
 0x2bd   : > { %v850_v21 = vpop.f32.mrb[4].mxu0 }
 0x2be   : > { %v857_v22 = vpack.c.bf16 %v850_v21, %v850_v21  ;;  %v2236_v23 = vpop.f32.mrb[5].mxu0 }
 0x2bf   : > { %v853_v24 = vpop.f32.mrb[6].mxu0  ;;  %v1069_v25 = vld [vmem:[#allocation2] sm:$0xf]  ;;  %v1061_v28 = vpop.f32.mrb[4].mxu1  ;;  %v1194_v39 = vld [vmem:[#allocation3 + $0x4] sm:$0xf] }
 0x2c0   : > { %860 = vst.msk [vmem:[#allocation2 + $0x4] sm:$0xf] %vm858_vm2, %v857_v22  ;;  %v2237_v26 = vpop.f32.mrb[7].mxu0  ;;  %v1075_v27 = vsel %vm769_vm1, %v1069_v25, 0  ;;  %v2268_v29 = vpop.f32.mrb[5].mxu1  ;;  %v1068_v40 = vpack.c.bf16 %v1061_v28, %v1061_v28  ;;  %v1246_v44 = vsel %vm1198_vm3, %v1194_v39, 0 }
 0x2c1   : > { %2271 = vmatpush3.bf16.xpose.msra.mxu0 %v1075_v27  ;;  %v1064_v30 = vpop.f32.mrb[6].mxu1  ;;  %v1416_v39 = vld [vmem:[%s628_s4] sm:$0xff]  ;;  %s2968_s4 = scalar_lea.vmem %s2967_s15, 256 }
 0x2c2   : > { %2282 = vmatprep.subr.bf16.mxu0 %v3128_v0  ;;  %v2269_v31 = vpop.f32.mrb[7].mxu1  ;;  %p2970_p6 = scmp.lt.s32.totalorder %s2968_s4, %s2962_s7 }
 0x2c4   : > { %p2971_p2 = por %p2970_p6, %p2969_p12 }
 0x2c5   : > { %v907_v32 = vpop.f32.mrb[8].mxu0 }
 0x2c6   : > { %v953_v33 = vpack.c.bf16 %v907_v32, %v907_v32  ;;  %v2244_v34 = vpop.f32.mrb[9].mxu0  ;;  %p2972_p13 = pnand %p2971_p2, %p2965_p3 }
 0x2c7   : > { %v910_v35 = vpop.f32.mrb[10].mxu0  ;;  %v1070_v36 = vld [vmem:[#allocation2 + $0x4] sm:$0xf] }
 0x2c8   : > { %955 = vst.msk [vmem:[#allocation3] sm:$0xf] %vm858_vm2, %v953_v33  ;;  %v2245_v37 = vpop.f32.mrb[11].mxu0  ;;  %v1121_v38 = vsel %vm769_vm1, %v1070_v36, 0 }
 0x2c9   : > { %2277 = vmatpush3.bf16.xpose.msra.mxu1 %v1121_v38 }
 0x2ca   : > { %2288 = vmatprep.subr.bf16.mxu1 %v3128_v0 }
 0x2cd   : > { %v1018_v41 = vpop.f32.mrb[12].mxu0 }
 0x2ce   : > { %v1067_v42 = vpack.c.bf16 %v1018_v41, %v1018_v41  ;;  %v2260_v43 = vpop.f32.mrb[13].mxu0 }
 0x2cf   : > { %v1021_v45 = vpop.f32.mrb[14].mxu0  ;;  %v1193_v46 = vld [vmem:[#allocation3] sm:$0xf] }
 0x2d0   : > { %v2261_v47 = vpop.f32.mrb[15].mxu0  ;;  %2273 = vmatmul.mubr.msk.bf16.vlgmr.msra.gmra.mrb[16].mxu0 %vm769_vm1, %v1067_v42  ;;  %2279 = vmatmul.mubr.msk.bf16.vlgmr.msra.gmra.mrb[8].mxu1 %vm769_vm1, %v1068_v40  ;;  %v1200_v48 = vsel %vm1198_vm3, %v1193_v46, 0 }
 0x2d1   : > { %2283 = vmatpush3.bf16.msra.mxu0 %v1200_v48  ;;  %2289 = vmatpush3.bf16.msra.mxu1 %v1246_v44 }
 0x2d2   : > { %2284 = vmatprep.mubr.msk.bf16.mxu0 %vm3129_vm0, %v3128_v0  ;;  %2290 = vmatprep.mubr.msk.bf16.mxu1 %vm3129_vm0, %v3128_v0 }
 0x2d3   : > { %2294 = vmatprep.subr.bf16.mxu0 %v3128_v0  ;;  %2302 = vmatprep.subr.bf16.mxu1 %v3128_v0 }
 0x3a3   : > { %v1111_v49 = vpop.f32.mrb[16].mxu0  ;;  %v1157_v50 = vpop.f32.mrb[8].mxu1 }
 0x3a4   : > { %v1163_v51 = vpack.c.bf16 %v1111_v49, %v1111_v49  ;;  %v2274_v52 = vpop.f32.mrb[17].mxu0  ;;  %v1164_v53 = vpack.c.bf16 %v1157_v50, %v1157_v50  ;;  %v1169_v54 = vsel %vm1168_vm4, %v1111_v49, -inf  ;;  %v2280_v55 = vpop.f32.mrb[9].mxu1  ;;  %v1172_v60 = vsel %vm1168_vm4, %v1157_v50, -inf }
 0x3a5   : > { %1170 = vmax.xlane.f32.xlu0 %v1169_v54  ;;  %v1114_v56 = vpop.f32.mrb[18].mxu0  ;;  %v1160_v57 = vpop.f32.mrb[10].mxu1  ;;  %v2527_v52 = vld [vmem:[#allocation18 + $0x14] ss:$8 sps:$4 sm:$0xff]   ;;  %v2530_v54 = vld [vmem:[#allocation18 + $0x24] ss:$8 sps:$4 sm:$0xff]  }
 0x3a6   : > { %1166 = vst.msk [vmem:[%s3742_s14] sm:$0xf] %vm1165_vm5, %v1163_v51  ;;  %1167 = vst.msk [vmem:[%s3742_s14 + $0x4] sm:$0xf] %vm1165_vm5, %v1164_v53  ;;  %v2275_v58 = vpop.f32.mrb[19].mxu0  ;;  %v2281_v59 = vpop.f32.mrb[11].mxu1 }
 0x3a7   : > { %v2522_v51 = vld [vmem:[#allocation18] ss:$8 sps:$4 sm:$0xff]   ;;  %v2525_v53 = vld [vmem:[#allocation18 + $0x10] ss:$8 sps:$4 sm:$0xff]   ;;  %v2533_v57 = vld [vmem:[#allocation18 + $0x34] ss:$8 sps:$4 sm:$0xff]  }
 0x3a8   : > { %v2528_v55 = vld [vmem:[#allocation18 + $0x20] ss:$8 sps:$4 sm:$0xff]   ;;  %v2531_v56 = vld [vmem:[#allocation18 + $0x30] ss:$8 sps:$4 sm:$0xff]   ;;  %v3130_v58 = vmov 0  }
 0x3a9   : > { %1173 = vmax.xlane.f32.xlu0 %v1172_v60 }
 0x432   : > { %v1171_v61 = vpop.xlane.xlu0 %1170 }
 0x433   : > { %v1175_v62 = vsub.f32 %v1111_v49, %v1171_v61 }
 0x435   : > { %v1177_v63 = vpack.c.bf16 %v1175_v62, %v1175_v62 }
 0x436   : > { %v1174_v1 = vpop.xlane.xlu0 %1173 }
 0x437   : > { %v1180_v2 = vmul.bf16 1069105081, %v1177_v63  ;;  %v1176_v3 = vsub.f32 %v1157_v50, %v1174_v1  ;;  %v2524_v50 = vld [vmem:[#allocation18 + $0x4] ss:$8 sps:$4 sm:$0xff]   ;;  %v2129_v63 = vld [vmem:[#allocation15] ss:$0 sm:$0xff] }
 0x439   : > { %2550 = vpow.bf16 %v1180_v2  ;;  %v1178_v4 = vpack.c.bf16 %v1176_v3, %v1176_v3  ;;  %v2130_v2 = vld [vmem:[#allocation16] ss:$0 sm:$0xff] }
 0x43b   : > { %v1183_v5 = vmul.bf16 1069105081, %v1178_v4 }
 0x43d   : > { %2552 = vpow.bf16 %v1183_v5 }
 0x444   : > { %v2551_v6 = vpop.eup %2550 }
 0x445   : > { %2285 = vmatmul.mubr.msk.bf16.vlgmr.msra.gmra.mrb[20].mxu0 %vm1168_vm4, %v2551_v6  ;;  %v1185_v7 = vunpack.c.l.bf16 %v2551_v6  ;;  %v2534_v6 = vld [vmem:[#allocation21 + $0x40] sm:$0xff]  }
 0x446   : > { %2298 = vmatprep.mubr.msk.bf16.mxu0 %vm3129_vm0, %v3128_v0  ;;  %2295 = vmatpush3.bf16.msra.mxu0 %v2518_v12  ;;  %v2540_v12 = vld [vmem:[#allocation21 + $0x58] sm:$0xff]  }
 0x447   : > { %v1187_v8 = vsel %vm1168_vm4, %v1185_v7, 0.0  ;;  %2296 = vmatprep.subr.bf16.mxu0 %v3128_v0  ;;  %v2535_v7 = vld [vmem:[#allocation21] sm:$0xff]  }
 0x448   : > { %v2553_v9 = vpop.eup %2552  ;;  %1188 = vadd.xlane.f32.xlu1 %v1187_v8  ;;  %v2536_v8 = vld [vmem:[#allocation21 + $0x48] sm:$0xff]  }
 0x449   : > { %2291 = vmatmul.mubr.msk.bf16.vlgmr.msra.gmra.mrb[12].mxu1 %vm1168_vm4, %v2553_v9  ;;  %v1186_v10 = vunpack.c.l.bf16 %v2553_v9  ;;  %v2537_v9 = vld [vmem:[#allocation21 + $0x8] sm:$0xff]  }
 0x44a   : > { %2306 = vmatprep.mubr.msk.bf16.mxu1 %vm3129_vm0, %v3128_v0  ;;  %2297 = vmatpush3.bf16.msra.mxu0 %v2519_v13  ;;  %v2541_v13 = vld [vmem:[#allocation21 + $0x18] sm:$0xff]  }
 0x44b   : > { %v1190_v11 = vsel %vm1168_vm4, %v1186_v10, 0.0  ;;  %2303 = vmatpush3.bf16.msra.mxu1 %v2520_v14  ;;  %1512 = vmatprep.subr.bf16.mxu0 %v2524_v50  ;;  %v2538_v10 = vld [vmem:[#allocation21 + $0x50] sm:$0xff]   ;;  %v2542_v14 = vld [vmem:[#allocation21 + $0x60] sm:$0xff]  }
 0x44c   : > { %1191 = vadd.xlane.f32.xlu1 %v1190_v11  ;;  %2304 = vmatprep.subr.bf16.mxu1 %v3128_v0  ;;  %v2539_v11 = vld [vmem:[#allocation21 + $0x10] sm:$0xff]  }
 0x44f   : > { %2305 = vmatpush3.bf16.msra.mxu1 %v2521_v15  ;;  %v2543_v15 = vld [vmem:[#allocation21 + $0x20] sm:$0xff]  }
 0x450   : > { %2200 = vmatprep.subr.bf16.mxu1 %v2534_v6 }
 0x4d5   : > { %v1189_v16 = vpop.xlane.xlu1 %1188 }
 0x4d6   : > { %2554 = vrcp.f32 %v1189_v16  ;;  %v2544_v16 = vld [vmem:[#allocation21 + $0x68] sm:$0xff]  }
 0x4d9   : > { %v1192_v17 = vpop.xlane.xlu1 %1191 }
 0x4da   : > { %2556 = vrcp.f32 %v1192_v17  ;;  %v2545_v17 = vld [vmem:[#allocation21 + $0x28] sm:$0xff]  }
 0x4e0   : > { %v2555_v18 = vpop.eup %2554 }
 0x4e4   : > { %v2557_v25 = vpop.eup %2556 }
 0x518   : > { %v1236_v19 = vpop.f32.mrb[20].mxu0 }
 0x519   : > { %v1290_v20 = vmul.f32 %v2555_v18, %v1236_v19  ;;  %v2286_v21 = vpop.f32.mrb[21].mxu0  ;;  %v2546_v18 = vld [vmem:[#allocation21 + $0x70] sm:$0xff]  }
 0x51a   : > { %v1239_v22 = vpop.f32.mrb[22].mxu0  ;;  %v2547_v19 = vld [vmem:[#allocation21 + $0x30] sm:$0xff]   ;;  %v2549_v21 = vld [vmem:[#allocation21 + $0x38] sm:$0xff]  }
 0x51b   : > { %v1292_v23 = vpack.c.bf16 %v1290_v20, %v1290_v20  ;;  %v2287_v24 = vpop.f32.mrb[23].mxu0  ;;  %v2548_v20 = vld [vmem:[#allocation21 + $0x78] sm:$0xff]   ;;  %v1459_v22 = vlaneseq }
 0x51c   : > { %v1282_v26 = vpop.f32.mrb[12].mxu1 }
 0x51d   : > { %v1291_v27 = vmul.f32 %v2557_v25, %v1282_v26  ;;  %v2292_v28 = vpop.f32.mrb[13].mxu1  ;;  %2299 = vmatmul.mubr.msk.bf16.vlgmr.msra.gmra.mrb[24].mxu0 %vm769_vm1, %v1292_v23  ;;  %v1460_v23 = vshrl.u32 %v1459_v22, 7  ;;  %v1457_v25 = vld [vmem:[#allocation19] sm:$0x3] }
 0x51e   : > { %v1285_v0 = vpop.f32.mrb[14].mxu1  ;;  %1513 = vmatpush1.bf16.msra.mxu0 %v2522_v51  ;;  %1544 = vmatprep.mubr.bf16.mxu0 %v3130_v58 }
 0x51f   : > { %v1293_v29 = vpack.c.bf16 %v1291_v27, %v1291_v27  ;;  %v2293_v30 = vpop.f32.mrb[15].mxu1  ;;  %1514 = vmatprep.subr.bf16.mxu0 %v2527_v52  ;;  %v1461_v24 = vsub.s32 0, %v1460_v23  ;;  %v1465_v26 = vsub.s32 1, %v1460_v23 }
 0x521   : > { %2307 = vmatmul.mubr.msk.bf16.vlgmr.msra.gmra.mrb[16].mxu1 %vm769_vm1, %v1293_v29  ;;  %v1462_v27 = vrot.slane %v1457_v25, %v1461_v24  ;;  %v1466_v28 = vrot.slane %v1457_v25, %v1465_v26 }
 0x522   : > { %1515 = vmatpush1.bf16.msra.mxu0 %v2525_v53  ;;  %2201 = vmatpush3.bf16.msra.mxu1 %v2535_v7 }
 0x523   : > { %1516 = vmatprep.subr.bf16.mxu0 %v2530_v54  ;;  %2202 = vmatprep.subr.bf16.mxu1 %v2536_v8 }
 0x526   : > { %1517 = vmatpush1.bf16.msra.mxu0 %v2528_v55  ;;  %2203 = vmatpush3.bf16.msra.mxu1 %v2537_v9  ;;  %v2140_v55 = vld [vmem:[#allocation22] ss:$0 sm:$0xff] }
 0x527   : > { %1518 = vmatprep.subr.bf16.mxu0 %v2533_v57  ;;  %2204 = vmatprep.subr.bf16.mxu1 %v2538_v10 }
 0x52a   : > { %1519 = vmatpush1.bf16.msra.mxu0 %v2531_v56  ;;  %2205 = vmatpush3.bf16.msra.mxu1 %v2539_v11 }
 0x52b   : > { %2206 = vmatprep.subr.bf16.mxu1 %v2540_v12 }
 0x52e   : > { %2207 = vmatpush3.bf16.msra.mxu1 %v2541_v13 }
 0x52f   : > { %2208 = vmatprep.subr.bf16.mxu1 %v2542_v14 }
 0x532   : > { %2209 = vmatpush3.bf16.msra.mxu1 %v2543_v15 }
 0x533   : > { %2210 = vmatprep.subr.bf16.mxu1 %v2544_v16 }
 0x536   : > { %2211 = vmatpush3.bf16.msra.mxu1 %v2545_v17 }
 0x537   : > { %2212 = vmatprep.subr.bf16.mxu1 %v2546_v18 }
 0x53a   : > { %2213 = vmatpush3.bf16.msra.mxu1 %v2547_v19 }
 0x53b   : > { %2214 = vmatprep.subr.bf16.mxu1 %v2548_v20 }
 0x53e   : > { %2215 = vmatpush3.bf16.msra.mxu1 %v2549_v21 }
 0x5f0   : > { %v1351_v31 = vpop.f32.mrb[24].mxu0 }
 0x5f1   : > { %v2300_v32 = vpop.f32.mrb[25].mxu0  ;;  %v1413_v36 = vsel %vm1412_vm6, %v1351_v31, 0.0 }
 0x5f2   : > { %v1354_v33 = vpop.f32.mrb[26].mxu0 }
 0x5f3   : > { %v2301_v34 = vpop.f32.mrb[27].mxu0 }
 0x5f4   : > { %v1406_v35 = vpop.f32.mrb[16].mxu1 }
 0x5f5   : > { %v1414_v37 = vsel %vm1412_vm6, %v1406_v35, 0.0  ;;  %v2308_v38 = vpop.f32.mrb[17].mxu1 }
 0x5f6   : > { %v1415_v40 = vadd.f32 %v1414_v37, %v1413_v36  ;;  %v1409_v41 = vpop.f32.mrb[18].mxu1 }
 0x5f7   : > { %v2309_v42 = vpop.f32.mrb[19].mxu1 }
 0x5f8   : > { %v1417_v43 = vadd.f32 %v1416_v39, %v1415_v40 }
 0x5fa   : > { %v1420_v44 = vsel %vm1412_vm6, %v1417_v43, 0.0 }
 0x5fb   : > { %1421 = vadd.xlane.f32.xlu0 %v1420_v44 }
 0x688   : > { %v1422_v45 = vpop.xlane.xlu0 %1421 }
 0x689   : > { %v1424_v46 = vmul.f32 0.015625, %v1422_v45 }
 0x68b   : > { %v1425_v47 = vsub.f32 %v1417_v43, %v1424_v46 }
 0x68d   : > { %v1426_v48 = vmul.f32 %v1425_v47, %v1425_v47 }
 0x68f   : > { %v1427_v49 = vsel %vm1412_vm6, %v1426_v48, 0.0 }
 0x690   : > { %1428 = vadd.xlane.f32.xlu1 %v1427_v49 }
 0x71d   : > { %v1429_v59 = vpop.xlane.xlu1 %1428 }
 0x71e   : > { %v1430_v60 = vmul.f32 0.015625, %v1429_v59 }
 0x720   : > { %v1431_v61 = vadd.f32 1e-05, %v1430_v60 }
 0x722   : > { %2558 = vrsqrt.f32 %v1431_v61 }
 0x72c   : > { %v2559_v62 = vpop.eup %2558 }
 0x72d   : > { %v1433_v1 = vmul.f32 %v2559_v62, %v1425_v47 }
 0x72f   : > { %v1440_v3 = vmul.f32 %v2129_v63, %v1433_v1 }
 0x731   : > { %v3765_v4 = vadd.f32 %v2130_v2, %v1440_v3 }
 0x733   : > { %v1448_v5 = vpack.c.bf16 %v3765_v4, %v3765_v4 }
 0x735   : > { %2139 = vmatmul.mubr.msk.bf16.vlgmr.msra.gmra.mrb[28].mxu0 %vm1412_vm6, %v1448_v5 }
 0x808   : > { %v1546_v0 = vpop.f32.mrb[28].mxu0 }
 0x809   : > { %v1547_v29 = vadd.f32 %v1546_v0, %v1462_v27  ;;  %v1548_v30 = vpop.f32.mrb[29].mxu0 }
 0x80a   : > { %v1549_v31 = vadd.f32 %v1548_v30, %v1466_v28  ;;  %v1550_v32 = vpop.f32.mrb[30].mxu0 }
 0x80b   : > { %v1555_v33 = vmul.f32 %v1547_v29, %v1547_v29  ;;  %v1551_v34 = vpop.f32.mrb[31].mxu0  ;;  %v1553_v46 = vmul.f32 0.5, %v1547_v29 }
 0x80c   : > { %v1556_v35 = vmul.f32 %v1549_v31, %v1549_v31  ;;  %v1554_v48 = vmul.f32 0.5, %v1549_v31 }
 0x80d   : > { %v1557_v36 = vmul.f32 %v1555_v33, %v1547_v29 }
 0x80e   : > { %v1558_v37 = vmul.f32 %v1556_v35, %v1549_v31 }
 0x80f   : > { %v1559_v38 = vmul.f32 0.044715, %v1557_v36 }
 0x810   : > { %v1560_v39 = vmul.f32 0.044715, %v1558_v37 }
 0x811   : > { %v1561_v40 = vadd.f32 %v1559_v38, %v1547_v29 }
 0x812   : > { %v1562_v41 = vadd.f32 %v1560_v39, %v1549_v31 }
 0x813   : > { %v1563_v42 = vmul.f32 0.7978846, %v1561_v40 }
 0x814   : > { %v1564_v43 = vmul.f32 0.7978846, %v1562_v41 }
 0x815   : > { %2560 = vtanh.f32 %v1563_v42 }
 0x816   : > { %2562 = vtanh.f32 %v1564_v43 }
 0x81f   : > { %v2561_v44 = vpop.eup %2560 }
 0x820   : > { %v2563_v45 = vpop.eup %2562  ;;  %v1567_v47 = vadd.f32 1.0, %v2561_v44 }
 0x821   : > { %v1568_v49 = vadd.f32 1.0, %v2563_v45 }
 0x822   : > { %v1569_v50 = vmul.f32 %v1567_v47, %v1553_v46 }
 0x823   : > { %v1570_v51 = vmul.f32 %v1568_v49, %v1554_v48 }
 0x824   : > { %v1571_v53 = vpack.c.bf16 %v1569_v50, %v1569_v50 }
 0x825   : > { %v1572_v52 = vpack.c.bf16 %v1570_v51, %v1570_v51 }
 0x827   : > { %1740 = vmatprep.mubr.bf16.mxu1 %v1572_v52 }
 0x828   : > { %1741 = vmatmul.mubr.bf16.vlgmr.msra.gmra.mrb[20].mxu1 %v1571_v53 }
 0x8fb   : > { %v2216_v54 = vpop.f32.mrb[20].mxu1 }
 0x8fc   : > { %v2217_v56 = vpop.f32.mrb[21].mxu1 }
 0x8fd   : > { %v2218_v57 = vadd.f32 %v2217_v56, %v2216_v54  ;;  %v2219_v58 = vpop.f32.mrb[22].mxu1 }
 0x8fe   : > { %v2220_v59 = vpop.f32.mrb[23].mxu1 }
 0x8ff   : > { %v1743_v60 = vadd.f32 %v2218_v57, %v2140_v55 }
 0x901   : > { %v1748_v61 = vadd.f32 %v1743_v60, %v3765_v4 }
 0x903   : > { %v1751_v62 = vsel %vm1412_vm6, %v1748_v61, 0.0 }
 0x904   : > { %1752 = vadd.xlane.f32.xlu0 %v1751_v62 }
 0x991   : > { %v1753_v63 = vpop.xlane.xlu0 %1752 }
 0x992   : > { %v1754_v1 = vmul.f32 0.015625, %v1753_v63 }
 0x994   : > { %v1755_v2 = vsub.f32 %v1748_v61, %v1754_v1 }
 0x996   : > { %v1756_v3 = vmul.f32 %v1755_v2, %v1755_v2 }
 0x998   : > { %v1757_v5 = vsel %vm1412_vm6, %v1756_v3, 0.0 }
 0x999   : > { %1758 = vadd.xlane.f32.xlu1 %v1757_v5 }
 0x99a   : > { %2975 = shalt.err (!%p2972_p13)
}
 0x99b   : > { %s2976_s5 = scalar_lea.hbm %s3779_s27, 128  ;;  %s2980_s8 = scalar_lea.hbm %s3959_s6, 256 }
 0x99c   : > { %p2977_p4 = scmp.ne.s32.totalorder %s3779_s27, %s2976_s5  ;;  %p2981_p7 = scmp.lt.u32.totalorder %s3779_s27, %s3959_s6 }
 0x99d   : > { %p2982_p5 = scmp.lt.u32.totalorder %s2980_s8, %s2976_s5  ;;  %p2984_p10 = scmp.lt.u32.totalorder %s2976_s5, %s3779_s27 }
 0x99e   : > { %p2978_p9 = pnand %p2977_p4, %p3960_p11 }
 0x99f   : > { %p2983_p1 = por %p2982_p5, %p2981_p7 }
 0x9a0   : > { %p2979_p0 = pneg %p2978_p9 }
 0x9a1   : > { %p2985_p8 = por %p2984_p10, %p2983_p1 }
 0x9a3   : > { %p2986_p3 = pnand %p2985_p8, %p2979_p0 }
 0x9a5   : > { %2989 = shalt.err (!%p2986_p3)
}
 0x9a6   : > { %s3132_s9 = smov 64   ;;  %s3133_s7 = smov 4   ;;  %v2157_v9 = vld [vmem:[#allocation24] ss:$0 sm:$0xff]  ;;  %v2158_v11 = vld [vmem:[#allocation25] ss:$0 sm:$0xff] }
 0x9a7   : > { %2363 = dma.vmem_to_hbm [thread:$0]  (%p3960_p11), %s3782_s3, 128, %s3779_s27, %s1785_s28, %s3132_s9, %s3132_s9, %s3133_s7  }
 0x9a8   : > { %s734_s10 = scalar_lea.vmem [#allocation27], %s3640_s0  ;;  %s3961_s21 = sld [smem:[#allocation57_spill]] }
 0x9a9   : > { %s1799_s15 = sshll.u32 %s734_s10, 4  ;;  %s1780_s27 = scalar_lea.sflag [#allocation6], %s3637_s29  ;;  %s3816_s15 = int_to_ptr.vmem [resolvable:$true] %s1799_s15 }
 0x9aa   : > { %s2990_s3 = scalar_lea.vmem %s3816_s15, 128  ;;  %s3134_s0 = smov [#allocation27]  }
 0x9ab   : > { %p2991_p12 = scmp.ne.s32.totalorder %s3816_s15, %s2990_s3  ;;  %s2994_s26 = sshll.u32 %s3134_s0, 4  ;;  %s2995_s26 = int_to_ptr.vmem [resolvable:$false] %s2994_s26 }
 0x9ac   : > { %s2996_s28 = scalar_lea.vmem %s2995_s26, 256  ;;  %p2997_p13 = scmp.lt.s32.totalorder %s3816_s15, %s2995_s26 }
 0x9ad   : > { %p2992_p6 = pnand %p2991_p12, %p3960_p11  ;;  %p2998_p4 = scmp.lt.s32.totalorder %s2996_s28, %s2990_s3 }
 0x9ae   : > { %s3962_s2 = smov %s3961_s21  ;;  %s3814_s8 = scalar_lea.hbm %s3961_s21, %s2161_s17 }
 0x9af   : > { %p2993_p2 = pneg %p2992_p6  ;;  %p2999_p9 = por %p2998_p4, %p2997_p13 }
 0x9b1   : > { %p3000_p0 = pnand %p2999_p9, %p2993_p2 }
 0xa26   : > { %v1759_v4 = vpop.xlane.xlu1 %1758 }
 0xa27   : > { %v1760_v6 = vmul.f32 0.015625, %v1759_v4 }
 0xa29   : > { %v1761_v7 = vadd.f32 1e-05, %v1760_v6 }
 0xa2b   : > { %2564 = vrsqrt.f32 %v1761_v7 }
 0xa35   : > { %v2565_v8 = vpop.eup %2564 }
 0xa36   : > { %v1763_v10 = vmul.f32 %v2565_v8, %v1755_v2 }
 0xa38   : > { %v1770_v12 = vmul.f32 %v2157_v9, %v1763_v10 }
 0xa3a   : > { %v1777_v13 = vadd.f32 %v2158_v11, %v1770_v12 }
 0xa3c   : > { %1778 = vst.msk [vmem:[%s734_s10] sm:$0xff] %vm1412_vm6, %v1777_v13 }
 0xa3d   : > { %3003 = shalt.err (!%p3000_p0)
}
 0xa3e   : > { %s3004_s29 = scalar_lea.hbm %s3814_s8, 128  ;;  %s3008_s24 = scalar_lea.hbm %s3962_s2, 256 }
 0xa3f   : > { %p3005_p7 = scmp.ne.s32.totalorder %s3814_s8, %s3004_s29  ;;  %p3009_p10 = scmp.lt.u32.totalorder %s3814_s8, %s3962_s2 }
 0xa40   : > { %p3010_p8 = scmp.lt.u32.totalorder %s3008_s24, %s3004_s29  ;;  %p3012_p12 = scmp.lt.u32.totalorder %s3004_s29, %s3814_s8 }
 0xa41   : > { %p3006_p5 = pnand %p3005_p7, %p3960_p11 }
 0xa42   : > { %p3011_p3 = por %p3010_p8, %p3009_p10 }
 0xa43   : > { %p3007_p1 = pneg %p3006_p5 }
 0xa44   : > { %p3013_p6 = por %p3012_p12, %p3011_p3 }
 0xa46   : > { %p3014_p2 = pnand %p3013_p6, %p3007_p1 }
 0xa48   : > { %3017 = shalt.err (!%p3014_p2)
}
 0xa49   : > { %2362 = dma.vmem_to_hbm [thread:$0]  (%p3960_p11), %s3816_s15, 128, %s3814_s8, %s1780_s27  }
 0xa4a PF: > { %s3963_s10 = sld [smem:[#allocation41_spill]]  ;;  %p3964_p13 = scmp.ne.s32.totalorder %s3936_s25, 0 }
 0xa4b   : > { %p3965_p4 = scmp.ge.s32.totalorder %s3108_s23, 2 }
 0xa4d   : > { %p2411_p9 = pnand %p3965_p4, %p3964_p13 }
 0xa50   : > { %s1828_s4 = sand.u32 1, %s3963_s10  }
 0xa51   : > { %s1829_s5 = scalar_lea.sflag [#allocation6], %s1828_s4 }
 0xa52   : > { %3079 = dma.done.wait (!%p2411_p9), %s1829_s5, 128  }
 0xa53   : > { %3081 = vsyncadd (!%p2411_p9), %s1829_s5, 4294967168  ;;  %s1838_s21 = scalar_lea.sflag [#allocation29], %s1828_s4 }
 0xa54   : > { %3083 = dma.done.wait (!%p2411_p9), %s1838_s21, 128  }
 0xa55   : > { %3085 = vsyncadd (!%p2411_p9), %s1838_s21, 4294967168  ;;  %s44_s23 = sadd.s32 1, %s3108_s23   ;;  %s3966_s30 = sld [smem:[#allocation42_spill]] }
 0xa56   : > { %p41_p0 = scmp.ge.s32.totalorder %s44_s23, 4   ;;  %s3967_s15 = smov %s3546_s19 }
 0xa57   : > { %s3968_s8 = smov %s3975_s18  ;;  %s3970_s19 = smov %s3096_s20 }
 0xa58   : > { %s3971_s20 = smov %s3967_s15  ;;  %s3972_s21 = smov %s3104_s22 }
 0xa59   : > { %s3973_s22 = smov %s3968_s8  ;;  %43 = sbr.rel (!%p41_p0) target bundleno = 30 (0x1e), region = 204 }
 0xa5b   : > { %s3969_s18 = smov %s3966_s30 }
 0xa60   :  { %1843 = vsyncpa [#allocation5], 1 }
 0xa61   :  { %1845 = vsyncpa [#allocation5 + $0x1], 1 }
 0xa62   :  { %1846 = vsyncpa [#allocation8], 1 }
 0xa63   :  { %1848 = vsyncpa [#allocation8 + $0x1], 1 }
 0xa64   :  { %1849 = vsyncpa [#allocation11], 1 }
 0xa65   :  { %1850 = vsyncpa [#allocation14], 1 }
 0xa66   :  { %1851 = vsyncpa [#allocation17], 1 }
 0xa67   :  { %1852 = vsyncpa [#allocation20], 1 }
 0xa68   :  { %1853 = vsyncpa [#allocation23], 1 }
 0xa69   :  { %1854 = vsyncpa [#allocation26], 1 }
 0xa6a   :  { %1855 = vsyncpa [#allocation6], 1 }
 0xa6b   :  { %1857 = vsyncpa [#allocation6 + $0x1], 1 }
 0xa6c   :  { %1858 = vsyncpa [#allocation29], 1 }
 0xa6d   :  { %1860 = vsyncpa [#allocation29 + $0x1], 1 }

</bundles_post_ra>
